<compile_context>
chip_gen: v7x
topology: tpu7x:2x2x1
jax: 0.10.0
libtpu: 0.0.40
codegen_flags: <defaults>
</compile_context>

<pallas_src>
import functools
import math

import jax
import jax.numpy as jnp
import numpy as np
from jax import lax
from jax.experimental import pallas as pl
from jax.experimental.pallas import tpu as pltpu

EPS = 1e-6
# Below v7x's 64 MiB physical VMEM, above the 16/32 MiB scoped defaults.
_VMEM_LIMIT = 48 * 1024 * 1024


# ------------------------------ tiling helpers ------------------------------

def _row_tile(m, max_rows=512):
    """Largest multiple of 8 that divides m and is <= max_rows (else full m)."""
    if m <= max_rows or m % 8 != 0:
        # TODO(synk): pad M to a multiple of 8 instead of a single full block.
        return m
    best, t = 8, 8
    while t <= max_rows:
        if m % t == 0:
            best = t
        t += 8
    return best


def _lane_tile(n, max_lanes=512):
    """Largest multiple of 128 that divides n and is <= max_lanes (else full n)."""
    if n <= max_lanes or n % 128 != 0:
        return n
    best, t = 128, 128
    while t <= max_lanes:
        if n % t == 0:
            best = t
        t += 128
    return best


def _q_tile(s, cap=256):
    """Query tile: multiple of 8 dividing s (sublane dim), else full s."""
    if s <= cap or s % 8 != 0:
        return s
    best, t = 8, 8
    while t <= cap:
        if s % t == 0:
            best = t
        t += 8
    return best


def _k_tile(s, cap=512):
    """Key tile: multiple of 128 dividing s (lane dim of scores/mask), else full."""
    if s <= cap or s % 128 != 0:
        return s
    best, t = 128, 128
    while t <= cap:
        if s % t == 0:
            best = t
        t += 128
    return best


# ------------------------------ Pallas kernels ------------------------------

def _layernorm_kernel(x_ref, a_ref, b_ref, o_ref):
    """Final LayerNorm — exact divide for parity with the torch reference."""
    x = x_ref[...].astype(jnp.float32)
    d = x.shape[-1]
    mean = jnp.mean(x, axis=-1, keepdims=True)
    var = jnp.sum((x - mean) ** 2, axis=-1, keepdims=True) / (d - 1)  # ddof=1
    y = a_ref[...] * (x - mean) / (jnp.sqrt(var) + EPS) + b_ref[...]
    o_ref[...] = y.astype(o_ref.dtype)


def _ln_linear_kernel(x_ref, a_ref, bln_ref, w_ref, b_ref, o_ref, *, activation):
    """o = act( LN(x) @ W + b );  LN stats in f32, matmul on bf16 MXU inputs."""
    x = x_ref[...].astype(jnp.float32)
    d = x.shape[-1]
    mean = jnp.mean(x, axis=-1, keepdims=True)
    var = jnp.sum((x - mean) ** 2, axis=-1, keepdims=True) / (d - 1)
    inv = pl.reciprocal(jnp.sqrt(var) + EPS, approx=True)
    xn = a_ref[...] * (x - mean) * inv + bln_ref[...]
    y = jnp.dot(xn.astype(jnp.bfloat16), w_ref[...].astype(jnp.bfloat16),
                preferred_element_type=jnp.float32)
    y = y + b_ref[...]
    if activation == "relu":
        y = jnp.maximum(y, 0.0)
    o_ref[...] = y.astype(o_ref.dtype)


def _linear_kernel(x_ref, w_ref, b_ref, o_ref, *, activation):
    y = jnp.dot(x_ref[...].astype(jnp.bfloat16), w_ref[...].astype(jnp.bfloat16),
                preferred_element_type=jnp.float32)
    y = y + b_ref[...]
    if activation == "relu":
        y = jnp.maximum(y, 0.0)
    o_ref[...] = y.astype(o_ref.dtype)


def _linear_residual_kernel(x_ref, res_ref, w_ref, b_ref, o_ref):
    """o = res + x @ W + b  (residual add fused into the projection)."""
    y = jnp.dot(x_ref[...].astype(jnp.bfloat16), w_ref[...].astype(jnp.bfloat16),
                preferred_element_type=jnp.float32)
    y = y + b_ref[...] + res_ref[...].astype(jnp.float32)
    o_ref[...] = y.astype(o_ref.dtype)


def _flash_attn_kernel(q_ref, kv_ref, mask_ref, o_ref, acc_sc, m_sc, l_sc, *, h):
    """Online-softmax attention over one (b, q-tile, k-tile) grid step.

    q_ref:   (tq, D)  bf16   (1/sqrt(dk) pre-folded into the Q projection)
    kv_ref:  (tk, 2D) bf16   ([:, :D] = K, [:, D:] = V)
    mask_ref:(tq|1, tk) bf16 additive mask (0 keep / -1e9 masked)
    o_ref:   (tq, D)  written on the last k-tile only
    """
    ki = pl.program_id(2)
    nk = pl.num_programs(2)

    @pl.when(ki == 0)
    def _():
        acc_sc[...] = jnp.zeros_like(acc_sc)
        m_sc[...] = jnp.full_like(m_sc, -jnp.inf)
        l_sc[...] = jnp.zeros_like(l_sc)

    d = o_ref.shape[-1]
    dk = d // h
    q = q_ref[...]
    kv = kv_ref[...]
    mask = mask_ref[...].astype(jnp.float32)

    dn_qk = (((1,), (1,)), ((), ()))   # contract last dims: no explicit K.T
    dn_pv = (((1,), (0,)), ((), ()))

    for i in range(h):                 # static unrolled head loop (small h)
        qi = q[:, i * dk:(i + 1) * dk]
        ki_h = kv[:, i * dk:(i + 1) * dk]
        vi_h = kv[:, d + i * dk: d + (i + 1) * dk]
        s = lax.dot_general(qi, ki_h, dn_qk, preferred_element_type=jnp.float32)
        s = s + mask                   # broadcasts if mask is (1, tk)
        m_prev = m_sc[i]
        m_new = jnp.maximum(m_prev, jnp.max(s, axis=-1, keepdims=True))
        alpha = jnp.exp(m_prev - m_new)
        p = jnp.exp(s - m_new)
        l_sc[i] = alpha * l_sc[i] + jnp.sum(p, axis=-1, keepdims=True)
        pv = lax.dot_general(p.astype(jnp.bfloat16), vi_h, dn_pv,
                             preferred_element_type=jnp.float32)
        acc_sc[:, i * dk:(i + 1) * dk] = alpha * acc_sc[:, i * dk:(i + 1) * dk] + pv
        m_sc[i] = m_new

    @pl.when(ki == nk - 1)
    def _():
        for i in range(h):             # per-head stores, no trailing concat
            inv = pl.reciprocal(l_sc[i], approx=True)
            o_ref[:, i * dk:(i + 1) * dk] = (
                acc_sc[:, i * dk:(i + 1) * dk] * inv).astype(o_ref.dtype)


# ------------------------------ kernel wrappers ------------------------------

def layernorm(x2d, alpha, beta):
    m, d = x2d.shape
    tm = _row_tile(m)
    return pl.pallas_call(
        _layernorm_kernel,
        out_shape=jax.ShapeDtypeStruct((m, d), x2d.dtype),
        grid_spec=pltpu.PrefetchScalarGridSpec(
            num_scalar_prefetch=0, grid=(m // tm,),
            in_specs=[pl.BlockSpec((tm, d), lambda i: (i, 0)),
                      pl.BlockSpec((1, d), lambda i: (0, 0)),
                      pl.BlockSpec((1, d), lambda i: (0, 0))],
            out_specs=pl.BlockSpec((tm, d), lambda i: (i, 0))),
        compiler_params=pltpu.CompilerParams(
            dimension_semantics=("parallel",), vmem_limit_bytes=_VMEM_LIMIT),
    )(x2d, alpha.reshape(1, d), beta.reshape(1, d))


def ln_linear(x2d, alpha, beta, w, b, activation=None, out_dtype=None):
    m, k = x2d.shape
    _, n = w.shape
    tm, tn = _row_tile(m), _lane_tile(n)
    out_dtype = out_dtype or x2d.dtype
    return pl.pallas_call(
        functools.partial(_ln_linear_kernel, activation=activation),
        out_shape=jax.ShapeDtypeStruct((m, n), out_dtype),
        grid_spec=pltpu.PrefetchScalarGridSpec(
            num_scalar_prefetch=0, grid=(m // tm, n // tn),
            in_specs=[pl.BlockSpec((tm, k), lambda i, j: (i, 0)),
                      pl.BlockSpec((1, k), lambda i, j: (0, 0)),
                      pl.BlockSpec((1, k), lambda i, j: (0, 0)),
                      pl.BlockSpec((k, tn), lambda i, j: (0, j)),
                      pl.BlockSpec((1, tn), lambda i, j: (0, j))],
            out_specs=pl.BlockSpec((tm, tn), lambda i, j: (i, j))),
        compiler_params=pltpu.CompilerParams(
            dimension_semantics=("parallel", "parallel"),
            vmem_limit_bytes=_VMEM_LIMIT),
    )(x2d, alpha.reshape(1, k), beta.reshape(1, k), w, b.reshape(1, n))


def linear(x2d, w, b, activation=None, out_dtype=None):
    m, k = x2d.shape
    _, n = w.shape
    tm, tn = _row_tile(m), _lane_tile(n)
    out_dtype = out_dtype or x2d.dtype
    return pl.pallas_call(
        functools.partial(_linear_kernel, activation=activation),
        out_shape=jax.ShapeDtypeStruct((m, n), out_dtype),
        grid_spec=pltpu.PrefetchScalarGridSpec(
            num_scalar_prefetch=0, grid=(m // tm, n // tn),
            in_specs=[pl.BlockSpec((tm, k), lambda i, j: (i, 0)),
                      pl.BlockSpec((k, tn), lambda i, j: (0, j)),
                      pl.BlockSpec((1, tn), lambda i, j: (0, j))],
            out_specs=pl.BlockSpec((tm, tn), lambda i, j: (i, j))),
        compiler_params=pltpu.CompilerParams(
            dimension_semantics=("parallel", "parallel"),
            vmem_limit_bytes=_VMEM_LIMIT),
    )(x2d, w, b.reshape(1, n))


def linear_residual(x2d, res2d, w, b):
    m, k = x2d.shape
    _, n = w.shape
    tm, tn = _row_tile(m), _lane_tile(n)
    return pl.pallas_call(
        _linear_residual_kernel,
        out_shape=jax.ShapeDtypeStruct((m, n), res2d.dtype),
        grid_spec=pltpu.PrefetchScalarGridSpec(
            num_scalar_prefetch=0, grid=(m // tm, n // tn),
            in_specs=[pl.BlockSpec((tm, k), lambda i, j: (i, 0)),
                      pl.BlockSpec((tm, tn), lambda i, j: (i, j)),
                      pl.BlockSpec((k, tn), lambda i, j: (0, j)),
                      pl.BlockSpec((1, tn), lambda i, j: (0, j))],
            out_specs=pl.BlockSpec((tm, tn), lambda i, j: (i, j))),
        compiler_params=pltpu.CompilerParams(
            dimension_semantics=("parallel", "parallel"),
            vmem_limit_bytes=_VMEM_LIMIT),
    )(x2d, res2d, w, b.reshape(1, n))


def flash_attention(q, kv, mask_add, h):
    """q: (B, Sq, D) bf16 (pre-scaled); kv: (B, Sk, 2D) bf16; mask: (B, Mq, Sk)."""
    B, Sq, D = q.shape
    Sk = kv.shape[1]
    Mq = mask_add.shape[1]
    tq, tk = _q_tile(Sq), _k_tile(Sk)
    nq, nk = Sq // tq, Sk // tk
    if Mq == 1:
        mask_spec = pl.BlockSpec((None, 1, tk), lambda b, qi, ki: (b, 0, ki))
    else:
        mask_spec = pl.BlockSpec((None, tq, tk), lambda b, qi, ki: (b, qi, ki))
    return pl.pallas_call(
        functools.partial(_flash_attn_kernel, h=h),
        out_shape=jax.ShapeDtypeStruct((B, Sq, D), q.dtype),
        grid_spec=pltpu.PrefetchScalarGridSpec(
            num_scalar_prefetch=0, grid=(B, nq, nk),
            in_specs=[pl.BlockSpec((None, tq, D), lambda b, qi, ki: (b, qi, 0)),
                      pl.BlockSpec((None, tk, 2 * D), lambda b, qi, ki: (b, ki, 0)),
                      mask_spec],
            out_specs=pl.BlockSpec((None, tq, D), lambda b, qi, ki: (b, qi, 0)),
            scratch_shapes=[pltpu.VMEM((tq, D), jnp.float32),
                            pltpu.VMEM((h, tq, 1), jnp.float32),
                            pltpu.VMEM((h, tq, 1), jnp.float32)]),
        compiler_params=pltpu.CompilerParams(
            dimension_semantics=("parallel", "parallel", "arbitrary"),
            vmem_limit_bytes=_VMEM_LIMIT),
    )(q, kv, mask_add)


# ---------------------------- parameter preparation -------------------------

def prepare_params(params, h):
    """One-time (outside jit / scan): cast weights to bf16, fold 1/sqrt(dk)
    into the Q projections, keep LN params / biases in f32."""
    L = params["layers"]
    D = L["sa_w_o"].shape[-1]
    scale = 1.0 / math.sqrt(D // h)
    bf16 = lambda w: w.astype(jnp.bfloat16)
    layers = dict(
        sa_w_qkv=bf16(L["sa_w_qkv"].at[..., :D].multiply(scale)),
        sa_b_qkv=L["sa_b_qkv"].at[..., :D].multiply(scale),
        sa_w_o=bf16(L["sa_w_o"]), sa_b_o=L["sa_b_o"],
        ca_w_q=bf16(L["ca_w_q"] * scale), ca_b_q=L["ca_b_q"] * scale,
        ca_w_kv=bf16(L["ca_w_kv"]), ca_b_kv=L["ca_b_kv"],
        ca_w_o=bf16(L["ca_w_o"]), ca_b_o=L["ca_b_o"],
        ff_w1=bf16(L["ff_w1"]), ff_b1=L["ff_b1"],
        ff_w2=bf16(L["ff_w2"]), ff_b2=L["ff_b2"],
        ln1_a=L["ln1_a"], ln1_b=L["ln1_b"],
        ln2_a=L["ln2_a"], ln2_b=L["ln2_b"],
        ln3_a=L["ln3_a"], ln3_b=L["ln3_b"])
    return dict(layers=layers, norm_a=params["norm_a"], norm_b=params["norm_b"])


# ---------------------------- model composition ----------------------------

@functools.partial(jax.jit, static_argnames=("h",))
def decoder_forward(kparams, x, enc, src_mask, tgt_mask, *, h):
    B, Sq, D = x.shape
    Ssrc = enc.shape[1]
    # additive masks, computed once (0 keep, -1e9 masked), stored bf16
    tgt_add = ((tgt_mask - 1.0) * 1e9).reshape(
        B, tgt_mask.shape[2], tgt_mask.shape[3]).astype(jnp.bfloat16)
    src_add = ((src_mask - 1.0) * 1e9).reshape(
        B, src_mask.shape[2], src_mask.shape[3]).astype(jnp.bfloat16)
    enc2 = enc.reshape(B * Ssrc, D).astype(jnp.bfloat16)

    def block(x2, p):
        # --- self attention (pre-norm, residual fused into output proj) ---
        qkv = ln_linear(x2, p["ln1_a"], p["ln1_b"], p["sa_w_qkv"], p["sa_b_qkv"],
                        out_dtype=jnp.bfloat16)
        q = qkv[:, :D].reshape(B, Sq, D)
        kv = qkv[:, D:].reshape(B, Sq, 2 * D)
        attn = flash_attention(q, kv, tgt_add, h)
        x2 = linear_residual(attn.reshape(B * Sq, D), x2, p["sa_w_o"], p["sa_b_o"])
        # --- cross attention ---
        q = ln_linear(x2, p["ln2_a"], p["ln2_b"], p["ca_w_q"], p["ca_b_q"],
                      out_dtype=jnp.bfloat16).reshape(B, Sq, D)
        kv = linear(enc2, p["ca_w_kv"], p["ca_b_kv"],
                    out_dtype=jnp.bfloat16).reshape(B, Ssrc, 2 * D)
        attn = flash_attention(q, kv, src_add, h)
        x2 = linear_residual(attn.reshape(B * Sq, D), x2, p["ca_w_o"], p["ca_b_o"])
        # --- feed forward ---
        h1 = ln_linear(x2, p["ln3_a"], p["ln3_b"], p["ff_w1"], p["ff_b1"],
                       activation="relu", out_dtype=jnp.bfloat16)
        x2 = linear_residual(h1, x2, p["ff_w2"], p["ff_b2"])
        return x2, None

    x2, _ = jax.lax.scan(block, x.reshape(B * Sq, D), kparams["layers"])
    out = layernorm(x2, kparams["norm_a"], kparams["norm_b"])
    return out.reshape(B, Sq, D)


# -------------------------- deterministic params ---------------------------

def init_params(key, n_layers, d_model, h, d_ff):
    kit = iter(jax.random.split(key, 256))

    def lin(din, dout):
        w = 0.02 * jax.random.normal(next(kit), (din, dout), jnp.float32)
        b = 0.01 * jax.random.normal(next(kit), (dout,), jnp.float32)
        return w, b

    def ln():
        a = 1.0 + 0.1 * jax.random.normal(next(kit), (d_model,), jnp.float32)
        b = 0.1 * jax.random.normal(next(kit), (d_model,), jnp.float32)
        return a, b

    layers = []
    for _ in range(n_layers):
        wq, bq = lin(d_model, d_model)
        wk, bk = lin(d_model, d_model)
        wv, bv = lin(d_model, d_model)
        wo, bo = lin(d_model, d_model)
        cwq, cbq = lin(d_model, d_model)
        cwk, cbk = lin(d_model, d_model)
        cwv, cbv = lin(d_model, d_model)
        cwo, cbo = lin(d_model, d_model)
        w1, b1 = lin(d_model, d_ff)
        w2, b2 = lin(d_ff, d_model)
        ln1a, ln1b = ln(); ln2a, ln2b = ln(); ln3a, ln3b = ln()
        layers.append(dict(
            sa_w_qkv=jnp.concatenate([wq, wk, wv], axis=1),
            sa_b_qkv=jnp.concatenate([bq, bk, bv]),
            sa_w_o=wo, sa_b_o=bo,
            ca_w_q=cwq, ca_b_q=cbq,
            ca_w_kv=jnp.concatenate([cwk, cwv], axis=1),
            ca_b_kv=jnp.concatenate([cbk, cbv]),
            ca_w_o=cwo, ca_b_o=cbo,
            ff_w1=w1, ff_b1=b1, ff_w2=w2, ff_b2=b2,
            ln1_a=ln1a, ln1_b=ln1b, ln2_a=ln2a, ln2_b=ln2b,
            ln3_a=ln3a, ln3_b=ln3b))
    stacked = jax.tree_util.tree_map(lambda *xs: jnp.stack(xs), *layers)
    norm_a, norm_b = ln()
    return dict(layers=stacked, norm_a=norm_a, norm_b=norm_b)


# ------------------------------ pure-JAX ref --------------------------------

def _ref_ln(x, a, b):
    mean = jnp.mean(x, axis=-1, keepdims=True)
    var = jnp.sum((x - mean) ** 2, axis=-1, keepdims=True) / (x.shape[-1] - 1)
    return a * (x - mean) / (jnp.sqrt(var) + EPS) + b


def _ref_attn(q, k, v, mask, h):
    B, Sq, D = q.shape
    Skv = k.shape[1]
    dk = D // h
    qh = q.reshape(B, Sq, h, dk).transpose(0, 2, 1, 3)
    kh = k.reshape(B, Skv, h, dk).transpose(0, 2, 1, 3)
    vh = v.reshape(B, Skv, h, dk).transpose(0, 2, 1, 3)
    s = jnp.einsum("bhqd,bhkd->bhqk", qh, kh) / math.sqrt(dk)
    s = jnp.where(mask == 0, -1e9, s)
    a = jax.nn.softmax(s, axis=-1)
    return jnp.einsum("bhqk,bhkd->bhqd", a, vh).transpose(0, 2, 1, 3).reshape(B, Sq, D)


def ref_decoder_forward(params, x, enc, src_mask, tgt_mask, h):
    D = x.shape[-1]
    L = params["layers"]["sa_w_qkv"].shape[0]
    for i in range(L):
        p = jax.tree_util.tree_map(lambda a, i=i: a[i], params["layers"])
        xn = _ref_ln(x, p["ln1_a"], p["ln1_b"])
        qkv = xn @ p["sa_w_qkv"] + p["sa_b_qkv"]
        q, k, v = qkv[..., :D], qkv[..., D:2 * D], qkv[..., 2 * D:]
        x = x + _ref_attn(q, k, v, tgt_mask, h) @ p["sa_w_o"] + p["sa_b_o"]
        xn = _ref_ln(x, p["ln2_a"], p["ln2_b"])
        q = xn @ p["ca_w_q"] + p["ca_b_q"]
        kv = enc @ p["ca_w_kv"] + p["ca_b_kv"]
        k, v = kv[..., :D], kv[..., D:]
        x = x + _ref_attn(q, k, v, src_mask, h) @ p["ca_w_o"] + p["ca_b_o"]
        xn = _ref_ln(x, p["ln3_a"], p["ln3_b"])
        x = x + jnp.maximum(xn @ p["ff_w1"] + p["ff_b1"], 0.0) @ p["ff_w2"] + p["ff_b2"]
    return _ref_ln(x, params["norm_a"], params["norm_b"])


# ---------------------------------- main ------------------------------------

if __name__ == "__main__":
    B, S_TGT, S_SRC, D, H, D_FF, N_LAYERS = 2, 8, 8, 32, 4, 64, 2

    key = jax.random.PRNGKey(0)
    kx, ke, kp = jax.random.split(key, 3)
    x = jax.random.normal(kx, (B, S_TGT, D), jnp.float32)
    enc = jax.random.normal(ke, (B, S_SRC, D), jnp.float32)
    src_mask = jnp.ones((B, 1, 1, S_SRC), jnp.float32)
    tgt_mask = jnp.tile(
        jnp.tril(jnp.ones((S_TGT, S_TGT), jnp.float32))[None, None], (B, 1, 1, 1))
    params = init_params(kp, N_LAYERS, D, H, D_FF)

    # One-time weight prep (bf16 cast + q-scale folding) outside jit / scan.
    kparams = prepare_params(params, H)

    out = decoder_forward(kparams, x, enc, src_mask, tgt_mask, h=H)
    out = jax.block_until_ready(out)
    assert out.shape == (B, S_TGT, D)
    assert bool(jnp.all(jnp.isfinite(out)))

    ref = jax.block_until_ready(
        ref_decoder_forward(params, x, enc, src_mask, tgt_mask, H))
    # tolerance sized for bf16 MXU inputs / activations + approx reciprocal
    np.testing.assert_allclose(np.asarray(out), np.asarray(ref),
                               rtol=2e-2, atol=2e-2)
    print("KERNEL_OK")
</pallas_src>

<mosaic_0001>
module attributes {stable_mosaic.version = 11 : i64} {
  func.func @_ln_linear_kernel(%arg0: i32, %arg1: i32, %arg2: memref<16x32xf32, #tpu.memory_space<vmem>>, %arg3: memref<1x32xf32, #tpu.memory_space<vmem>>, %arg4: memref<1x32xf32, #tpu.memory_space<vmem>>, %arg5: memref<32x96xbf16, #tpu.memory_space<vmem>>, %arg6: memref<1x96xf32, #tpu.memory_space<vmem>>, %arg7: memref<16x96xbf16, #tpu.memory_space<vmem>>) attributes {dimension_semantics = [#tpu.dimension_semantics<parallel>, #tpu.dimension_semantics<parallel>], iteration_bounds = array<i64: 1, 1>, scalar_prefetch = 0 : i64, scratch_operands = 0 : i64, tpu.core_type = #tpu.core_type<tc>, window_params = [{transform_indices = @transform_0, window_bounds = array<i64: 16, 32>}, {pipeline_mode = #tpu.pipeline_mode<synchronous>, transform_indices = @transform_1, window_bounds = array<i64: 1, 32>}, {pipeline_mode = #tpu.pipeline_mode<synchronous>, transform_indices = @transform_2, window_bounds = array<i64: 1, 32>}, {transform_indices = @transform_3, window_bounds = array<i64: 32, 96>}, {transform_indices = @transform_4, window_bounds = array<i64: 1, 96>}, {transform_indices = @transform_5, window_bounds = array<i64: 16, 96>}]} {
    %c0 = arith.constant 0 : index
    %c0_0 = arith.constant 0 : index
    %0 = vector.load %arg2[%c0, %c0_0] : memref<16x32xf32, #tpu.memory_space<vmem>>, vector<16x32xf32>
    %cst = arith.constant dense<0.000000e+00> : vector<16xf32>
    %1 = vector.multi_reduction <add>, %0, %cst [1] : vector<16x32xf32> to vector<16xf32>
    %2 = vector.shape_cast %1 : vector<16xf32> to vector<16x1xf32>
    %cst_1 = arith.constant 3.200000e+01 : f32
    %3 = vector.broadcast %cst_1 : f32 to vector<16x1xf32>
    %4 = arith.divf %2, %3 : vector<16x1xf32>
    %5 = vector.broadcast %4 : vector<16x1xf32> to vector<16x32xf32>
    %6 = arith.subf %0, %5 : vector<16x32xf32>
    %7 = arith.mulf %6, %6 : vector<16x32xf32>
    %cst_2 = arith.constant dense<0.000000e+00> : vector<16xf32>
    %8 = vector.multi_reduction <add>, %7, %cst_2 [1] : vector<16x32xf32> to vector<16xf32>
    %9 = vector.shape_cast %8 : vector<16xf32> to vector<16x1xf32>
    %cst_3 = arith.constant 3.100000e+01 : f32
    %10 = vector.broadcast %cst_3 : f32 to vector<16x1xf32>
    %11 = arith.divf %9, %10 : vector<16x1xf32>
    %12 = math.sqrt %11 : vector<16x1xf32>
    %cst_4 = arith.constant 9.99999997E-7 : f32
    %13 = vector.broadcast %cst_4 : f32 to vector<16x1xf32>
    %14 = arith.addf %12, %13 : vector<16x1xf32>
    %15 = tpu.reciprocal %14 {approx = true} : vector<16x1xf32> -> vector<16x1xf32>
    %c0_5 = arith.constant 0 : index
    %c0_6 = arith.constant 0 : index
    %16 = vector.load %arg3[%c0_5, %c0_6] : memref<1x32xf32, #tpu.memory_space<vmem>>, vector<1x32xf32>
    %17 = vector.broadcast %4 : vector<16x1xf32> to vector<16x32xf32>
    %18 = arith.subf %0, %17 : vector<16x32xf32>
    %19 = vector.broadcast %16 : vector<1x32xf32> to vector<16x32xf32>
    %20 = arith.mulf %19, %18 : vector<16x32xf32>
    %21 = vector.broadcast %15 : vector<16x1xf32> to vector<16x32xf32>
    %22 = arith.mulf %20, %21 : vector<16x32xf32>
    %c0_7 = arith.constant 0 : index
    %c0_8 = arith.constant 0 : index
    %23 = vector.load %arg4[%c0_7, %c0_8] : memref<1x32xf32, #tpu.memory_space<vmem>>, vector<1x32xf32>
    %24 = vector.broadcast %23 : vector<1x32xf32> to vector<16x32xf32>
    %25 = arith.addf %22, %24 : vector<16x32xf32>
    %26 = arith.truncf %25 : vector<16x32xf32> to vector<16x32xbf16>
    %c0_9 = arith.constant 0 : index
    %c0_10 = arith.constant 0 : index
    %27 = vector.load %arg5[%c0_9, %c0_10] : memref<32x96xbf16, #tpu.memory_space<vmem>>, vector<32x96xbf16>
    %cst_11 = arith.constant dense<0.000000e+00> : vector<16x96xf32>
    %28 = tpu.matmul %26, %27, %cst_11 {dimension_numbers = #tpu.dot_dimension_numbers<[1], [0], [0], [1], [0, 0, 1, 1], [], []>} : vector<16x32xbf16>, vector<32x96xbf16>, vector<16x96xf32> -> vector<16x96xf32>
    %c0_12 = arith.constant 0 : index
    %c0_13 = arith.constant 0 : index
    %29 = vector.load %arg6[%c0_12, %c0_13] : memref<1x96xf32, #tpu.memory_space<vmem>>, vector<1x96xf32>
    %30 = vector.broadcast %29 : vector<1x96xf32> to vector<16x96xf32>
    %31 = arith.addf %28, %30 : vector<16x96xf32>
    %32 = arith.truncf %31 : vector<16x96xf32> to vector<16x96xbf16>
    %c0_14 = arith.constant 0 : index
    %c0_15 = arith.constant 0 : index
    %33 = vector.load %arg7[%c0_14, %c0_15] : memref<16x96xbf16, #tpu.memory_space<vmem>>, vector<16x96xbf16>
    tpu.vector_store %arg7[%c0_14, %c0_15], %32 {strides = array<i32>} : memref<16x96xbf16, #tpu.memory_space<vmem>>, vector<16x96xbf16>,
    return
  }
  func.func @transform_0(%arg0: i32, %arg1: i32) -> (i32, i32) {
    %c0_i32 = arith.constant 0 : i32
    %c0_i32_0 = arith.constant 0 : i32
    return %arg0, %c0_i32 : i32, i32
  }
  func.func @transform_1(%arg0: i32, %arg1: i32) -> (i32, i32) {
    %c0_i32 = arith.constant 0 : i32
    %c0_i32_0 = arith.constant 0 : i32
    %c0_i32_1 = arith.constant 0 : i32
    return %c0_i32, %c0_i32_0 : i32, i32
  }
  func.func @transform_2(%arg0: i32, %arg1: i32) -> (i32, i32) {
    %c0_i32 = arith.constant 0 : i32
    %c0_i32_0 = arith.constant 0 : i32
    %c0_i32_1 = arith.constant 0 : i32
    return %c0_i32, %c0_i32_0 : i32, i32
  }
  func.func @transform_3(%arg0: i32, %arg1: i32) -> (i32, i32) {
    %c0_i32 = arith.constant 0 : i32
    %c0_i32_0 = arith.constant 0 : i32
    return %c0_i32, %arg1 : i32, i32
  }
  func.func @transform_4(%arg0: i32, %arg1: i32) -> (i32, i32) {
    %c0_i32 = arith.constant 0 : i32
    %c0_i32_0 = arith.constant 0 : i32
    return %c0_i32, %arg1 : i32, i32
  }
  func.func @transform_5(%arg0: i32, %arg1: i32) -> (i32, i32) {
    %c0_i32 = arith.constant 0 : i32
    return %arg0, %arg1 : i32, i32
  }
}

module attributes {stable_mosaic.version = 11 : i64} {
  func.func @_ln_linear_kernel(%arg0: i32, %arg1: i32, %arg2: memref<16x32xf32, #tpu.memory_space<vmem>>, %arg3: memref<1x32xf32, #tpu.memory_space<vmem>>, %arg4: memref<1x32xf32, #tpu.memory_space<vmem>>, %arg5: memref<32x32xbf16, #tpu.memory_space<vmem>>, %arg6: memref<1x32xf32, #tpu.memory_space<vmem>>, %arg7: memref<16x32xbf16, #tpu.memory_space<vmem>>) attributes {dimension_semantics = [#tpu.dimension_semantics<parallel>, #tpu.dimension_semantics<parallel>], iteration_bounds = array<i64: 1, 1>, scalar_prefetch = 0 : i64, scratch_operands = 0 : i64, tpu.core_type = #tpu.core_type<tc>, window_params = [{transform_indices = @transform_0, window_bounds = array<i64: 16, 32>}, {pipeline_mode = #tpu.pipeline_mode<synchronous>, transform_indices = @transform_1, window_bounds = array<i64: 1, 32>}, {pipeline_mode = #tpu.pipeline_mode<synchronous>, transform_indices = @transform_2, window_bounds = array<i64: 1, 32>}, {transform_indices = @transform_3, window_bounds = array<i64: 32, 32>}, {transform_indices = @transform_4, window_bounds = array<i64: 1, 32>}, {transform_indices = @transform_5, window_bounds = array<i64: 16, 32>}]} {
    %c0 = arith.constant 0 : index
    %c0_0 = arith.constant 0 : index
    %0 = vector.load %arg2[%c0, %c0_0] : memref<16x32xf32, #tpu.memory_space<vmem>>, vector<16x32xf32>
    %cst = arith.constant dense<0.000000e+00> : vector<16xf32>
    %1 = vector.multi_reduction <add>, %0, %cst [1] : vector<16x32xf32> to vector<16xf32>
    %2 = vector.shape_cast %1 : vector<16xf32> to vector<16x1xf32>
    %cst_1 = arith.constant 3.200000e+01 : f32
    %3 = vector.broadcast %cst_1 : f32 to vector<16x1xf32>
    %4 = arith.divf %2, %3 : vector<16x1xf32>
    %5 = vector.broadcast %4 : vector<16x1xf32> to vector<16x32xf32>
    %6 = arith.subf %0, %5 : vector<16x32xf32>
    %7 = arith.mulf %6, %6 : vector<16x32xf32>
    %cst_2 = arith.constant dense<0.000000e+00> : vector<16xf32>
    %8 = vector.multi_reduction <add>, %7, %cst_2 [1] : vector<16x32xf32> to vector<16xf32>
    %9 = vector.shape_cast %8 : vector<16xf32> to vector<16x1xf32>
    %cst_3 = arith.constant 3.100000e+01 : f32
    %10 = vector.broadcast %cst_3 : f32 to vector<16x1xf32>
    %11 = arith.divf %9, %10 : vector<16x1xf32>
    %12 = math.sqrt %11 : vector<16x1xf32>
    %cst_4 = arith.constant 9.99999997E-7 : f32
    %13 = vector.broadcast %cst_4 : f32 to vector<16x1xf32>
    %14 = arith.addf %12, %13 : vector<16x1xf32>
    %15 = tpu.reciprocal %14 {approx = true} : vector<16x1xf32> -> vector<16x1xf32>
    %c0_5 = arith.constant 0 : index
    %c0_6 = arith.constant 0 : index
    %16 = vector.load %arg3[%c0_5, %c0_6] : memref<1x32xf32, #tpu.memory_space<vmem>>, vector<1x32xf32>
    %17 = vector.broadcast %4 : vector<16x1xf32> to vector<16x32xf32>
    %18 = arith.subf %0, %17 : vector<16x32xf32>
    %19 = vector.broadcast %16 : vector<1x32xf32> to vector<16x32xf32>
    %20 = arith.mulf %19, %18 : vector<16x32xf32>
    %21 = vector.broadcast %15 : vector<16x1xf32> to vector<16x32xf32>
    %22 = arith.mulf %20, %21 : vector<16x32xf32>
    %c0_7 = arith.constant 0 : index
    %c0_8 = arith.constant 0 : index
    %23 = vector.load %arg4[%c0_7, %c0_8] : memref<1x32xf32, #tpu.memory_space<vmem>>, vector<1x32xf32>
    %24 = vector.broadcast %23 : vector<1x32xf32> to vector<16x32xf32>
    %25 = arith.addf %22, %24 : vector<16x32xf32>
    %26 = arith.truncf %25 : vector<16x32xf32> to vector<16x32xbf16>
    %c0_9 = arith.constant 0 : index
    %c0_10 = arith.constant 0 : index
    %27 = vector.load %arg5[%c0_9, %c0_10] : memref<32x32xbf16, #tpu.memory_space<vmem>>, vector<32x32xbf16>
    %cst_11 = arith.constant dense<0.000000e+00> : vector<16x32xf32>
    %28 = tpu.matmul %26, %27, %cst_11 {dimension_numbers = #tpu.dot_dimension_numbers<[1], [0], [0], [1], [0, 0, 1, 1], [], []>} : vector<16x32xbf16>, vector<32x32xbf16>, vector<16x32xf32> -> vector<16x32xf32>
    %c0_12 = arith.constant 0 : index
    %c0_13 = arith.constant 0 : index
    %29 = vector.load %arg6[%c0_12, %c0_13] : memref<1x32xf32, #tpu.memory_space<vmem>>, vector<1x32xf32>
    %30 = vector.broadcast %29 : vector<1x32xf32> to vector<16x32xf32>
    %31 = arith.addf %28, %30 : vector<16x32xf32>
    %32 = arith.truncf %31 : vector<16x32xf32> to vector<16x32xbf16>
    %c0_14 = arith.constant 0 : index
    %c0_15 = arith.constant 0 : index
    %33 = vector.load %arg7[%c0_14, %c0_15] : memref<16x32xbf16, #tpu.memory_space<vmem>>, vector<16x32xbf16>
    tpu.vector_store %arg7[%c0_14, %c0_15], %32 {strides = array<i32>} : memref<16x32xbf16, #tpu.memory_space<vmem>>, vector<16x32xbf16>,
    return
  }
  func.func @transform_0(%arg0: i32, %arg1: i32) -> (i32, i32) {
    %c0_i32 = arith.constant 0 : i32
    %c0_i32_0 = arith.constant 0 : i32
    return %arg0, %c0_i32 : i32, i32
  }
  func.func @transform_1(%arg0: i32, %arg1: i32) -> (i32, i32) {
    %c0_i32 = arith.constant 0 : i32
    %c0_i32_0 = arith.constant 0 : i32
    %c0_i32_1 = arith.constant 0 : i32
    return %c0_i32, %c0_i32_0 : i32, i32
  }
  func.func @transform_2(%arg0: i32, %arg1: i32) -> (i32, i32) {
    %c0_i32 = arith.constant 0 : i32
    %c0_i32_0 = arith.constant 0 : i32
    %c0_i32_1 = arith.constant 0 : i32
    return %c0_i32, %c0_i32_0 : i32, i32
  }
  func.func @transform_3(%arg0: i32, %arg1: i32) -> (i32, i32) {
    %c0_i32 = arith.constant 0 : i32
    %c0_i32_0 = arith.constant 0 : i32
    return %c0_i32, %arg1 : i32, i32
  }
  func.func @transform_4(%arg0: i32, %arg1: i32) -> (i32, i32) {
    %c0_i32 = arith.constant 0 : i32
    %c0_i32_0 = arith.constant 0 : i32
    return %c0_i32, %arg1 : i32, i32
  }
  func.func @transform_5(%arg0: i32, %arg1: i32) -> (i32, i32) {
    %c0_i32 = arith.constant 0 : i32
    return %arg0, %arg1 : i32, i32
  }
}

module attributes {stable_mosaic.version = 11 : i64} {
  func.func @_linear_residual_kernel(%arg0: i32, %arg1: i32, %arg2: memref<16x32xbf16, #tpu.memory_space<vmem>>, %arg3: memref<16x32xf32, #tpu.memory_space<vmem>>, %arg4: memref<32x32xbf16, #tpu.memory_space<vmem>>, %arg5: memref<1x32xf32, #tpu.memory_space<vmem>>, %arg6: memref<16x32xf32, #tpu.memory_space<vmem>>) attributes {dimension_semantics = [#tpu.dimension_semantics<parallel>, #tpu.dimension_semantics<parallel>], iteration_bounds = array<i64: 1, 1>, scalar_prefetch = 0 : i64, scratch_operands = 0 : i64, tpu.core_type = #tpu.core_type<tc>, window_params = [{transform_indices = @transform_0, window_bounds = array<i64: 16, 32>}, {transform_indices = @transform_1, window_bounds = array<i64: 16, 32>}, {transform_indices = @transform_2, window_bounds = array<i64: 32, 32>}, {transform_indices = @transform_3, window_bounds = array<i64: 1, 32>}, {transform_indices = @transform_4, window_bounds = array<i64: 16, 32>}]} {
    %c0 = arith.constant 0 : index
    %c0_0 = arith.constant 0 : index
    %0 = vector.load %arg2[%c0, %c0_0] : memref<16x32xbf16, #tpu.memory_space<vmem>>, vector<16x32xbf16>
    %c0_1 = arith.constant 0 : index
    %c0_2 = arith.constant 0 : index
    %1 = vector.load %arg4[%c0_1, %c0_2] : memref<32x32xbf16, #tpu.memory_space<vmem>>, vector<32x32xbf16>
    %cst = arith.constant dense<0.000000e+00> : vector<16x32xf32>
    %2 = tpu.matmul %0, %1, %cst {dimension_numbers = #tpu.dot_dimension_numbers<[1], [0], [0], [1], [0, 0, 1, 1], [], []>} : vector<16x32xbf16>, vector<32x32xbf16>, vector<16x32xf32> -> vector<16x32xf32>
    %c0_3 = arith.constant 0 : index
    %c0_4 = arith.constant 0 : index
    %3 = vector.load %arg5[%c0_3, %c0_4] : memref<1x32xf32, #tpu.memory_space<vmem>>, vector<1x32xf32>
    %4 = vector.broadcast %3 : vector<1x32xf32> to vector<16x32xf32>
    %5 = arith.addf %2, %4 : vector<16x32xf32>
    %c0_5 = arith.constant 0 : index
    %c0_6 = arith.constant 0 : index
    %6 = vector.load %arg3[%c0_5, %c0_6] : memref<16x32xf32, #tpu.memory_space<vmem>>, vector<16x32xf32>
    %7 = arith.addf %5, %6 : vector<16x32xf32>
    %c0_7 = arith.constant 0 : index
    %c0_8 = arith.constant 0 : index
    %8 = vector.load %arg6[%c0_7, %c0_8] : memref<16x32xf32, #tpu.memory_space<vmem>>, vector<16x32xf32>
    tpu.vector_store %arg6[%c0_7, %c0_8], %7 {strides = array<i32>} : memref<16x32xf32, #tpu.memory_space<vmem>>, vector<16x32xf32>,
    return
  }
  func.func @transform_0(%arg0: i32, %arg1: i32) -> (i32, i32) {
    %c0_i32 = arith.constant 0 : i32
    %c0_i32_0 = arith.constant 0 : i32
    return %arg0, %c0_i32 : i32, i32
  }
  func.func @transform_1(%arg0: i32, %arg1: i32) -> (i32, i32) {
    %c0_i32 = arith.constant 0 : i32
    return %arg0, %arg1 : i32, i32
  }
  func.func @transform_2(%arg0: i32, %arg1: i32) -> (i32, i32) {
    %c0_i32 = arith.constant 0 : i32
    %c0_i32_0 = arith.constant 0 : i32
    return %c0_i32, %arg1 : i32, i32
  }
  func.func @transform_3(%arg0: i32, %arg1: i32) -> (i32, i32) {
    %c0_i32 = arith.constant 0 : i32
    %c0_i32_0 = arith.constant 0 : i32
    return %c0_i32, %arg1 : i32, i32
  }
  func.func @transform_4(%arg0: i32, %arg1: i32) -> (i32, i32) {
    %c0_i32 = arith.constant 0 : i32
    return %arg0, %arg1 : i32, i32
  }
}

module attributes {stable_mosaic.version = 11 : i64} {
  func.func @_flash_attn_kernel(%arg0: i32, %arg1: i32, %arg2: i32, %arg3: memref<1x8x32xbf16, #tpu.memory_space<vmem>>, %arg4: memref<1x8x64xbf16, #tpu.memory_space<vmem>>, %arg5: memref<1x8x8xbf16, #tpu.memory_space<vmem>>, %arg6: memref<1x8x32xbf16, #tpu.memory_space<vmem>>, %arg7: memref<8x32xf32, #tpu.memory_space<vmem>>, %arg8: memref<4x8x1xf32, #tpu.memory_space<vmem>>, %arg9: memref<4x8x1xf32, #tpu.memory_space<vmem>>) attributes {dimension_semantics = [#tpu.dimension_semantics<parallel>, #tpu.dimension_semantics<parallel>, #tpu.dimension_semantics<arbitrary>], iteration_bounds = array<i64: 2, 1, 1>, scalar_prefetch = 0 : i64, scratch_operands = 3 : i64, tpu.core_type = #tpu.core_type<tc>, window_params = [{transform_indices = @transform_0, window_bounds = array<i64: 1, 8, 32>}, {transform_indices = @transform_1, window_bounds = array<i64: 1, 8, 64>}, {transform_indices = @transform_2, window_bounds = array<i64: 1, 8, 8>}, {transform_indices = @transform_3, window_bounds = array<i64: 1, 8, 32>}]} {
    %c0_i32 = arith.constant 0 : i32
    %0 = arith.cmpi eq, %arg2, %c0_i32 : i32
    %1 = arith.extui %0 : i1 to i32
    %c0_i32_0 = arith.constant 0 : i32
    %2 = arith.cmpi ne, %1, %c0_i32_0 : i32
    scf.if %2 {
      %cst_84 = arith.constant 0.000000e+00 : f32
      %149 = vector.broadcast %cst_84 : f32 to vector<8x32xf32>
      %c0_85 = arith.constant 0 : index
      %c0_86 = arith.constant 0 : index
      %150 = vector.load %arg7[%c0_85, %c0_86] : memref<8x32xf32, #tpu.memory_space<vmem>>, vector<8x32xf32>
      tpu.vector_store %arg7[%c0_85, %c0_86], %149 {strides = array<i32>} : memref<8x32xf32, #tpu.memory_space<vmem>>, vector<8x32xf32>,
      %cst_87 = arith.constant 0xFF800000 : f32
      %151 = vector.broadcast %cst_87 : f32 to vector<4x8x1xf32>
      %c0_88 = arith.constant 0 : index
      %c0_89 = arith.constant 0 : index
      %c0_90 = arith.constant 0 : index
      %152 = vector.load %arg8[%c0_88, %c0_89, %c0_90] : memref<4x8x1xf32, #tpu.memory_space<vmem>>, vector<4x8x1xf32>
      tpu.vector_store %arg8[%c0_88, %c0_89, %c0_90], %151 {strides = array<i32>} : memref<4x8x1xf32, #tpu.memory_space<vmem>>, vector<4x8x1xf32>,
      %cst_91 = arith.constant 0.000000e+00 : f32
      %153 = vector.broadcast %cst_91 : f32 to vector<4x8x1xf32>
      %c0_92 = arith.constant 0 : index
      %c0_93 = arith.constant 0 : index
      %c0_94 = arith.constant 0 : index
      %154 = vector.load %arg9[%c0_92, %c0_93, %c0_94] : memref<4x8x1xf32, #tpu.memory_space<vmem>>, vector<4x8x1xf32>
      tpu.vector_store %arg9[%c0_92, %c0_93, %c0_94], %153 {strides = array<i32>} : memref<4x8x1xf32, #tpu.memory_space<vmem>>, vector<4x8x1xf32>,
    } else {
    }
    %c0 = arith.constant 0 : index
    %c0_1 = arith.constant 0 : index
    %c0_2 = arith.constant 0 : index
    %3 = vector.load %arg3[%c0, %c0_1, %c0_2] : memref<1x8x32xbf16, #tpu.memory_space<vmem>>, vector<1x8x32xbf16>
    %4 = vector.shape_cast %3 : vector<1x8x32xbf16> to vector<8x32xbf16>
    %c0_3 = arith.constant 0 : index
    %c0_4 = arith.constant 0 : index
    %c0_5 = arith.constant 0 : index
    %5 = vector.load %arg4[%c0_3, %c0_4, %c0_5] : memref<1x8x64xbf16, #tpu.memory_space<vmem>>, vector<1x8x64xbf16>
    %6 = vector.shape_cast %5 : vector<1x8x64xbf16> to vector<8x64xbf16>
    %c0_6 = arith.constant 0 : index
    %c0_7 = arith.constant 0 : index
    %c0_8 = arith.constant 0 : index
    %7 = vector.load %arg5[%c0_6, %c0_7, %c0_8] : memref<1x8x8xbf16, #tpu.memory_space<vmem>>, vector<1x8x8xbf16>
    %8 = vector.shape_cast %7 : vector<1x8x8xbf16> to vector<8x8xbf16>
    %9 = arith.extf %8 : vector<8x8xbf16> to vector<8x8xf32>
    %10 = vector.extract_strided_slice %4 {offsets = [0, 0], sizes = [8, 8], strides = [1, 1]} : vector<8x32xbf16> to vector<8x8xbf16>
    %11 = vector.extract_strided_slice %6 {offsets = [0, 0], sizes = [8, 8], strides = [1, 1]} : vector<8x64xbf16> to vector<8x8xbf16>
    %12 = vector.extract_strided_slice %6 {offsets = [0, 32], sizes = [8, 8], strides = [1, 1]} : vector<8x64xbf16> to vector<8x8xbf16>
    %cst = arith.constant dense<0.000000e+00> : vector<8x8xf32>
    %13 = tpu.matmul %10, %11, %cst {dimension_numbers = #tpu.dot_dimension_numbers<[1], [1], [0], [0], [0, 0, 1, 0], [], []>} : vector<8x8xbf16>, vector<8x8xbf16>, vector<8x8xf32> -> vector<8x8xf32>
    %14 = arith.addf %13, %9 : vector<8x8xf32>
    %c0_9 = arith.constant 0 : index
    %c0_10 = arith.constant 0 : index
    %c0_11 = arith.constant 0 : index
    %15 = vector.load %arg8[%c0_9, %c0_10, %c0_11] : memref<4x8x1xf32, #tpu.memory_space<vmem>>, vector<1x8x1xf32>
    %16 = vector.shape_cast %15 : vector<1x8x1xf32> to vector<8x1xf32>
    %cst_12 = arith.constant dense<0xFF800000> : vector<8xf32>
    %17 = vector.multi_reduction <maximumf>, %14, %cst_12 [1] : vector<8x8xf32> to vector<8xf32>
    %18 = vector.shape_cast %17 : vector<8xf32> to vector<8x1xf32>
    %19 = arith.maximumf %16, %18 : vector<8x1xf32>
    %20 = arith.subf %16, %19 : vector<8x1xf32>
    %21 = math.exp %20 : vector<8x1xf32>
    %22 = vector.broadcast %19 : vector<8x1xf32> to vector<8x8xf32>
    %23 = arith.subf %14, %22 : vector<8x8xf32>
    %24 = math.exp %23 : vector<8x8xf32>
    %c0_13 = arith.constant 0 : index
    %c0_14 = arith.constant 0 : index
    %c0_15 = arith.constant 0 : index
    %25 = vector.load %arg9[%c0_13, %c0_14, %c0_15] : memref<4x8x1xf32, #tpu.memory_space<vmem>>, vector<1x8x1xf32>
    %26 = vector.shape_cast %25 : vector<1x8x1xf32> to vector<8x1xf32>
    %27 = arith.mulf %21, %26 : vector<8x1xf32>
    %cst_16 = arith.constant dense<0.000000e+00> : vector<8xf32>
    %28 = vector.multi_reduction <add>, %24, %cst_16 [1] : vector<8x8xf32> to vector<8xf32>
    %29 = vector.shape_cast %28 : vector<8xf32> to vector<8x1xf32>
    %30 = arith.addf %27, %29 : vector<8x1xf32>
    %c0_17 = arith.constant 0 : index
    %c0_18 = arith.constant 0 : index
    %c0_19 = arith.constant 0 : index
    %31 = vector.load %arg9[%c0_17, %c0_18, %c0_19] : memref<4x8x1xf32, #tpu.memory_space<vmem>>, vector<1x8x1xf32>
    %32 = vector.shape_cast %31 : vector<1x8x1xf32> to vector<8x1xf32>
    %33 = vector.shape_cast %30 : vector<8x1xf32> to vector<1x8x1xf32>
    tpu.vector_store %arg9[%c0_17, %c0_18, %c0_19], %33 {strides = array<i32>} : memref<4x8x1xf32, #tpu.memory_space<vmem>>, vector<1x8x1xf32>,
    %34 = arith.truncf %24 : vector<8x8xf32> to vector<8x8xbf16>
    %cst_20 = arith.constant dense<0.000000e+00> : vector<8x8xf32>
    %35 = tpu.matmul %34, %12, %cst_20 {dimension_numbers = #tpu.dot_dimension_numbers<[1], [0], [0], [1], [0, 0, 1, 1], [], []>} : vector<8x8xbf16>, vector<8x8xbf16>, vector<8x8xf32> -> vector<8x8xf32>
    %c0_21 = arith.constant 0 : index
    %c0_22 = arith.constant 0 : index
    %36 = vector.load %arg7[%c0_21, %c0_22] : memref<8x32xf32, #tpu.memory_space<vmem>>, vector<8x8xf32>
    %37 = vector.broadcast %21 : vector<8x1xf32> to vector<8x8xf32>
    %38 = arith.mulf %37, %36 : vector<8x8xf32>
    %39 = arith.addf %38, %35 : vector<8x8xf32>
    %c0_23 = arith.constant 0 : index
    %c0_24 = arith.constant 0 : index
    %40 = vector.load %arg7[%c0_23, %c0_24] : memref<8x32xf32, #tpu.memory_space<vmem>>, vector<8x8xf32>
    tpu.vector_store %arg7[%c0_23, %c0_24], %39 {strides = array<i32>} : memref<8x32xf32, #tpu.memory_space<vmem>>, vector<8x8xf32>,
    %c0_25 = arith.constant 0 : index
    %c0_26 = arith.constant 0 : index
    %c0_27 = arith.constant 0 : index
    %41 = vector.load %arg8[%c0_25, %c0_26, %c0_27] : memref<4x8x1xf32, #tpu.memory_space<vmem>>, vector<1x8x1xf32>
    %42 = vector.shape_cast %41 : vector<1x8x1xf32> to vector<8x1xf32>
    %43 = vector.shape_cast %19 : vector<8x1xf32> to vector<1x8x1xf32>
    tpu.vector_store %arg8[%c0_25, %c0_26, %c0_27], %43 {strides = array<i32>} : memref<4x8x1xf32, #tpu.memory_space<vmem>>, vector<1x8x1xf32>,
    %44 = vector.extract_strided_slice %4 {offsets = [0, 8], sizes = [8, 8], strides = [1, 1]} : vector<8x32xbf16> to vector<8x8xbf16>
    %45 = vector.extract_strided_slice %6 {offsets = [0, 8], sizes = [8, 8], strides = [1, 1]} : vector<8x64xbf16> to vector<8x8xbf16>
    %46 = vector.extract_strided_slice %6 {offsets = [0, 40], sizes = [8, 8], strides = [1, 1]} : vector<8x64xbf16> to vector<8x8xbf16>
    %cst_28 = arith.constant dense<0.000000e+00> : vector<8x8xf32>
    %47 = tpu.matmul %44, %45, %cst_28 {dimension_numbers = #tpu.dot_dimension_numbers<[1], [1], [0], [0], [0, 0, 1, 0], [], []>} : vector<8x8xbf16>, vector<8x8xbf16>, vector<8x8xf32> -> vector<8x8xf32>
    %48 = arith.addf %47, %9 : vector<8x8xf32>
    %c1 = arith.constant 1 : index
    %c0_29 = arith.constant 0 : index
    %c0_30 = arith.constant 0 : index
    %49 = vector.load %arg8[%c1, %c0_29, %c0_30] : memref<4x8x1xf32, #tpu.memory_space<vmem>>, vector<1x8x1xf32>
    %50 = vector.shape_cast %49 : vector<1x8x1xf32> to vector<8x1xf32>
    %cst_31 = arith.constant dense<0xFF800000> : vector<8xf32>
    %51 = vector.multi_reduction <maximumf>, %48, %cst_31 [1] : vector<8x8xf32> to vector<8xf32>
    %52 = vector.shape_cast %51 : vector<8xf32> to vector<8x1xf32>
    %53 = arith.maximumf %50, %52 : vector<8x1xf32>
    %54 = arith.subf %50, %53 : vector<8x1xf32>
    %55 = math.exp %54 : vector<8x1xf32>
    %56 = vector.broadcast %53 : vector<8x1xf32> to vector<8x8xf32>
    %57 = arith.subf %48, %56 : vector<8x8xf32>
    %58 = math.exp %57 : vector<8x8xf32>
    %c1_32 = arith.constant 1 : index
    %c0_33 = arith.constant 0 : index
    %c0_34 = arith.constant 0 : index
    %59 = vector.load %arg9[%c1_32, %c0_33, %c0_34] : memref<4x8x1xf32, #tpu.memory_space<vmem>>, vector<1x8x1xf32>
    %60 = vector.shape_cast %59 : vector<1x8x1xf32> to vector<8x1xf32>
    %61 = arith.mulf %55, %60 : vector<8x1xf32>
    %cst_35 = arith.constant dense<0.000000e+00> : vector<8xf32>
    %62 = vector.multi_reduction <add>, %58, %cst_35 [1] : vector<8x8xf32> to vector<8xf32>
    %63 = vector.shape_cast %62 : vector<8xf32> to vector<8x1xf32>
    %64 = arith.addf %61, %63 : vector<8x1xf32>
    %c1_36 = arith.constant 1 : index
    %c0_37 = arith.constant 0 : index
    %c0_38 = arith.constant 0 : index
    %65 = vector.load %arg9[%c1_36, %c0_37, %c0_38] : memref<4x8x1xf32, #tpu.memory_space<vmem>>, vector<1x8x1xf32>
    %66 = vector.shape_cast %65 : vector<1x8x1xf32> to vector<8x1xf32>
    %67 = vector.shape_cast %64 : vector<8x1xf32> to vector<1x8x1xf32>
    tpu.vector_store %arg9[%c1_36, %c0_37, %c0_38], %67 {strides = array<i32>} : memref<4x8x1xf32, #tpu.memory_space<vmem>>, vector<1x8x1xf32>,
    %68 = arith.truncf %58 : vector<8x8xf32> to vector<8x8xbf16>
    %cst_39 = arith.constant dense<0.000000e+00> : vector<8x8xf32>
    %69 = tpu.matmul %68, %46, %cst_39 {dimension_numbers = #tpu.dot_dimension_numbers<[1], [0], [0], [1], [0, 0, 1, 1], [], []>} : vector<8x8xbf16>, vector<8x8xbf16>, vector<8x8xf32> -> vector<8x8xf32>
    %c0_40 = arith.constant 0 : index
    %c8 = arith.constant 8 : index
    %70 = vector.load %arg7[%c0_40, %c8] : memref<8x32xf32, #tpu.memory_space<vmem>>, vector<8x8xf32>
    %71 = vector.broadcast %55 : vector<8x1xf32> to vector<8x8xf32>
    %72 = arith.mulf %71, %70 : vector<8x8xf32>
    %73 = arith.addf %72, %69 : vector<8x8xf32>
    %c0_41 = arith.constant 0 : index
    %c8_42 = arith.constant 8 : index
    %74 = vector.load %arg7[%c0_41, %c8_42] : memref<8x32xf32, #tpu.memory_space<vmem>>, vector<8x8xf32>
    tpu.vector_store %arg7[%c0_41, %c8_42], %73 {strides = array<i32>} : memref<8x32xf32, #tpu.memory_space<vmem>>, vector<8x8xf32>,
    %c1_43 = arith.constant 1 : index
    %c0_44 = arith.constant 0 : index
    %c0_45 = arith.constant 0 : index
    %75 = vector.load %arg8[%c1_43, %c0_44, %c0_45] : memref<4x8x1xf32, #tpu.memory_space<vmem>>, vector<1x8x1xf32>
    %76 = vector.shape_cast %75 : vector<1x8x1xf32> to vector<8x1xf32>
    %77 = vector.shape_cast %53 : vector<8x1xf32> to vector<1x8x1xf32>
    tpu.vector_store %arg8[%c1_43, %c0_44, %c0_45], %77 {strides = array<i32>} : memref<4x8x1xf32, #tpu.memory_space<vmem>>, vector<1x8x1xf32>,
    %78 = vector.extract_strided_slice %4 {offsets = [0, 16], sizes = [8, 8], strides = [1, 1]} : vector<8x32xbf16> to vector<8x8xbf16>
    %79 = vector.extract_strided_slice %6 {offsets = [0, 16], sizes = [8, 8], strides = [1, 1]} : vector<8x64xbf16> to vector<8x8xbf16>
    %80 = vector.extract_strided_slice %6 {offsets = [0, 48], sizes = [8, 8], strides = [1, 1]} : vector<8x64xbf16> to vector<8x8xbf16>
    %cst_46 = arith.constant dense<0.000000e+00> : vector<8x8xf32>
    %81 = tpu.matmul %78, %79, %cst_46 {dimension_numbers = #tpu.dot_dimension_numbers<[1], [1], [0], [0], [0, 0, 1, 0], [], []>} : vector<8x8xbf16>, vector<8x8xbf16>, vector<8x8xf32> -> vector<8x8xf32>
    %82 = arith.addf %81, %9 : vector<8x8xf32>
    %c2 = arith.constant 2 : index
    %c0_47 = arith.constant 0 : index
    %c0_48 = arith.constant 0 : index
    %83 = vector.load %arg8[%c2, %c0_47, %c0_48] : memref<4x8x1xf32, #tpu.memory_space<vmem>>, vector<1x8x1xf32>
    %84 = vector.shape_cast %83 : vector<1x8x1xf32> to vector<8x1xf32>
    %cst_49 = arith.constant dense<0xFF800000> : vector<8xf32>
    %85 = vector.multi_reduction <maximumf>, %82, %cst_49 [1] : vector<8x8xf32> to vector<8xf32>
    %86 = vector.shape_cast %85 : vector<8xf32> to vector<8x1xf32>
    %87 = arith.maximumf %84, %86 : vector<8x1xf32>
    %88 = arith.subf %84, %87 : vector<8x1xf32>
    %89 = math.exp %88 : vector<8x1xf32>
    %90 = vector.broadcast %87 : vector<8x1xf32> to vector<8x8xf32>
    %91 = arith.subf %82, %90 : vector<8x8xf32>
    %92 = math.exp %91 : vector<8x8xf32>
    %c2_50 = arith.constant 2 : index
    %c0_51 = arith.constant 0 : index
    %c0_52 = arith.constant 0 : index
    %93 = vector.load %arg9[%c2_50, %c0_51, %c0_52] : memref<4x8x1xf32, #tpu.memory_space<vmem>>, vector<1x8x1xf32>
    %94 = vector.shape_cast %93 : vector<1x8x1xf32> to vector<8x1xf32>
    %95 = arith.mulf %89, %94 : vector<8x1xf32>
    %cst_53 = arith.constant dense<0.000000e+00> : vector<8xf32>
    %96 = vector.multi_reduction <add>, %92, %cst_53 [1] : vector<8x8xf32> to vector<8xf32>
    %97 = vector.shape_cast %96 : vector<8xf32> to vector<8x1xf32>
    %98 = arith.addf %95, %97 : vector<8x1xf32>
    %c2_54 = arith.constant 2 : index
    %c0_55 = arith.constant 0 : index
    %c0_56 = arith.constant 0 : index
    %99 = vector.load %arg9[%c2_54, %c0_55, %c0_56] : memref<4x8x1xf32, #tpu.memory_space<vmem>>, vector<1x8x1xf32>
    %100 = vector.shape_cast %99 : vector<1x8x1xf32> to vector<8x1xf32>
    %101 = vector.shape_cast %98 : vector<8x1xf32> to vector<1x8x1xf32>
    tpu.vector_store %arg9[%c2_54, %c0_55, %c0_56], %101 {strides = array<i32>} : memref<4x8x1xf32, #tpu.memory_space<vmem>>, vector<1x8x1xf32>,
    %102 = arith.truncf %92 : vector<8x8xf32> to vector<8x8xbf16>
    %cst_57 = arith.constant dense<0.000000e+00> : vector<8x8xf32>
    %103 = tpu.matmul %102, %80, %cst_57 {dimension_numbers = #tpu.dot_dimension_numbers<[1], [0], [0], [1], [0, 0, 1, 1], [], []>} : vector<8x8xbf16>, vector<8x8xbf16>, vector<8x8xf32> -> vector<8x8xf32>
    %c0_58 = arith.constant 0 : index
    %c16 = arith.constant 16 : index
    %104 = vector.load %arg7[%c0_58, %c16] : memref<8x32xf32, #tpu.memory_space<vmem>>, vector<8x8xf32>
    %105 = vector.broadcast %89 : vector<8x1xf32> to vector<8x8xf32>
    %106 = arith.mulf %105, %104 : vector<8x8xf32>
    %107 = arith.addf %106, %103 : vector<8x8xf32>
    %c0_59 = arith.constant 0 : index
    %c16_60 = arith.constant 16 : index
    %108 = vector.load %arg7[%c0_59, %c16_60] : memref<8x32xf32, #tpu.memory_space<vmem>>, vector<8x8xf32>
    tpu.vector_store %arg7[%c0_59, %c16_60], %107 {strides = array<i32>} : memref<8x32xf32, #tpu.memory_space<vmem>>, vector<8x8xf32>,
    %c2_61 = arith.constant 2 : index
    %c0_62 = arith.constant 0 : index
    %c0_63 = arith.constant 0 : index
    %109 = vector.load %arg8[%c2_61, %c0_62, %c0_63] : memref<4x8x1xf32, #tpu.memory_space<vmem>>, vector<1x8x1xf32>
    %110 = vector.shape_cast %109 : vector<1x8x1xf32> to vector<8x1xf32>
    %111 = vector.shape_cast %87 : vector<8x1xf32> to vector<1x8x1xf32>
    tpu.vector_store %arg8[%c2_61, %c0_62, %c0_63], %111 {strides = array<i32>} : memref<4x8x1xf32, #tpu.memory_space<vmem>>, vector<1x8x1xf32>,
    %112 = vector.extract_strided_slice %4 {offsets = [0, 24], sizes = [8, 8], strides = [1, 1]} : vector<8x32xbf16> to vector<8x8xbf16>
    %113 = vector.extract_strided_slice %6 {offsets = [0, 24], sizes = [8, 8], strides = [1, 1]} : vector<8x64xbf16> to vector<8x8xbf16>
    %114 = vector.extract_strided_slice %6 {offsets = [0, 56], sizes = [8, 8], strides = [1, 1]} : vector<8x64xbf16> to vector<8x8xbf16>
    %cst_64 = arith.constant dense<0.000000e+00> : vector<8x8xf32>
    %115 = tpu.matmul %112, %113, %cst_64 {dimension_numbers = #tpu.dot_dimension_numbers<[1], [1], [0], [0], [0, 0, 1, 0], [], []>} : vector<8x8xbf16>, vector<8x8xbf16>, vector<8x8xf32> -> vector<8x8xf32>
    %116 = arith.addf %115, %9 : vector<8x8xf32>
    %c3 = arith.constant 3 : index
    %c0_65 = arith.constant 0 : index
    %c0_66 = arith.constant 0 : index
    %117 = vector.load %arg8[%c3, %c0_65, %c0_66] : memref<4x8x1xf32, #tpu.memory_space<vmem>>, vector<1x8x1xf32>
    %118 = vector.shape_cast %117 : vector<1x8x1xf32> to vector<8x1xf32>
    %cst_67 = arith.constant dense<0xFF800000> : vector<8xf32>
    %119 = vector.multi_reduction <maximumf>, %116, %cst_67 [1] : vector<8x8xf32> to vector<8xf32>
    %120 = vector.shape_cast %119 : vector<8xf32> to vector<8x1xf32>
    %121 = arith.maximumf %118, %120 : vector<8x1xf32>
    %122 = arith.subf %118, %121 : vector<8x1xf32>
    %123 = math.exp %122 : vector<8x1xf32>
    %124 = vector.broadcast %121 : vector<8x1xf32> to vector<8x8xf32>
    %125 = arith.subf %116, %124 : vector<8x8xf32>
    %126 = math.exp %125 : vector<8x8xf32>
    %c3_68 = arith.constant 3 : index
    %c0_69 = arith.constant 0 : index
    %c0_70 = arith.constant 0 : index
    %127 = vector.load %arg9[%c3_68, %c0_69, %c0_70] : memref<4x8x1xf32, #tpu.memory_space<vmem>>, vector<1x8x1xf32>
    %128 = vector.shape_cast %127 : vector<1x8x1xf32> to vector<8x1xf32>
    %129 = arith.mulf %123, %128 : vector<8x1xf32>
    %cst_71 = arith.constant dense<0.000000e+00> : vector<8xf32>
    %130 = vector.multi_reduction <add>, %126, %cst_71 [1] : vector<8x8xf32> to vector<8xf32>
    %131 = vector.shape_cast %130 : vector<8xf32> to vector<8x1xf32>
    %132 = arith.addf %129, %131 : vector<8x1xf32>
    %c3_72 = arith.constant 3 : index
    %c0_73 = arith.constant 0 : index
    %c0_74 = arith.constant 0 : index
    %133 = vector.load %arg9[%c3_72, %c0_73, %c0_74] : memref<4x8x1xf32, #tpu.memory_space<vmem>>, vector<1x8x1xf32>
    %134 = vector.shape_cast %133 : vector<1x8x1xf32> to vector<8x1xf32>
    %135 = vector.shape_cast %132 : vector<8x1xf32> to vector<1x8x1xf32>
    tpu.vector_store %arg9[%c3_72, %c0_73, %c0_74], %135 {strides = array<i32>} : memref<4x8x1xf32, #tpu.memory_space<vmem>>, vector<1x8x1xf32>,
    %136 = arith.truncf %126 : vector<8x8xf32> to vector<8x8xbf16>
    %cst_75 = arith.constant dense<0.000000e+00> : vector<8x8xf32>
    %137 = tpu.matmul %136, %114, %cst_75 {dimension_numbers = #tpu.dot_dimension_numbers<[1], [0], [0], [1], [0, 0, 1, 1], [], []>} : vector<8x8xbf16>, vector<8x8xbf16>, vector<8x8xf32> -> vector<8x8xf32>
    %c0_76 = arith.constant 0 : index
    %c24 = arith.constant 24 : index
    %138 = vector.load %arg7[%c0_76, %c24] : memref<8x32xf32, #tpu.memory_space<vmem>>, vector<8x8xf32>
    %139 = vector.broadcast %123 : vector<8x1xf32> to vector<8x8xf32>
    %140 = arith.mulf %139, %138 : vector<8x8xf32>
    %141 = arith.addf %140, %137 : vector<8x8xf32>
    %c0_77 = arith.constant 0 : index
    %c24_78 = arith.constant 24 : index
    %142 = vector.load %arg7[%c0_77, %c24_78] : memref<8x32xf32, #tpu.memory_space<vmem>>, vector<8x8xf32>
    tpu.vector_store %arg7[%c0_77, %c24_78], %141 {strides = array<i32>} : memref<8x32xf32, #tpu.memory_space<vmem>>, vector<8x8xf32>,
    %c3_79 = arith.constant 3 : index
    %c0_80 = arith.constant 0 : index
    %c0_81 = arith.constant 0 : index
    %143 = vector.load %arg8[%c3_79, %c0_80, %c0_81] : memref<4x8x1xf32, #tpu.memory_space<vmem>>, vector<1x8x1xf32>
    %144 = vector.shape_cast %143 : vector<1x8x1xf32> to vector<8x1xf32>
    %145 = vector.shape_cast %121 : vector<8x1xf32> to vector<1x8x1xf32>
    tpu.vector_store %arg8[%c3_79, %c0_80, %c0_81], %145 {strides = array<i32>} : memref<4x8x1xf32, #tpu.memory_space<vmem>>, vector<1x8x1xf32>,
    %c0_i32_82 = arith.constant 0 : i32
    %146 = arith.cmpi eq, %arg2, %c0_i32_82 : i32
    %147 = arith.extui %146 : i1 to i32
    %c0_i32_83 = arith.constant 0 : i32
    %148 = arith.cmpi ne, %147, %c0_i32_83 : i32
    scf.if %148 {
      %c0_84 = arith.constant 0 : index
      %c0_85 = arith.constant 0 : index
      %c0_86 = arith.constant 0 : index
      %149 = vector.load %arg9[%c0_84, %c0_85, %c0_86] : memref<4x8x1xf32, #tpu.memory_space<vmem>>, vector<1x8x1xf32>
      %150 = vector.shape_cast %149 : vector<1x8x1xf32> to vector<8x1xf32>
      %151 = tpu.reciprocal %150 {approx = true} : vector<8x1xf32> -> vector<8x1xf32>
      %c0_87 = arith.constant 0 : index
      %c0_88 = arith.constant 0 : index
      %152 = vector.load %arg7[%c0_87, %c0_88] : memref<8x32xf32, #tpu.memory_space<vmem>>, vector<8x8xf32>
      %153 = vector.broadcast %151 : vector<8x1xf32> to vector<8x8xf32>
      %154 = arith.mulf %152, %153 : vector<8x8xf32>
      %155 = arith.truncf %154 : vector<8x8xf32> to vector<8x8xbf16>
      %c0_89 = arith.constant 0 : index
      %c0_90 = arith.constant 0 : index
      %c0_91 = arith.constant 0 : index
      %156 = vector.load %arg6[%c0_89, %c0_90, %c0_91] : memref<1x8x32xbf16, #tpu.memory_space<vmem>>, vector<1x8x8xbf16>
      %157 = vector.shape_cast %156 : vector<1x8x8xbf16> to vector<8x8xbf16>
      %158 = vector.shape_cast %155 : vector<8x8xbf16> to vector<1x8x8xbf16>
      tpu.vector_store %arg6[%c0_89, %c0_90, %c0_91], %158 {strides = array<i32>} : memref<1x8x32xbf16, #tpu.memory_space<vmem>>, vector<1x8x8xbf16>,
      %c1_92 = arith.constant 1 : index
      %c0_93 = arith.constant 0 : index
      %c0_94 = arith.constant 0 : index
      %159 = vector.load %arg9[%c1_92, %c0_93, %c0_94] : memref<4x8x1xf32, #tpu.memory_space<vmem>>, vector<1x8x1xf32>
      %160 = vector.shape_cast %159 : vector<1x8x1xf32> to vector<8x1xf32>
      %161 = tpu.reciprocal %160 {approx = true} : vector<8x1xf32> -> vector<8x1xf32>
      %c0_95 = arith.constant 0 : index
      %c8_96 = arith.constant 8 : index
      %162 = vector.load %arg7[%c0_95, %c8_96] : memref<8x32xf32, #tpu.memory_space<vmem>>, vector<8x8xf32>
      %163 = vector.broadcast %161 : vector<8x1xf32> to vector<8x8xf32>
      %164 = arith.mulf %162, %163 : vector<8x8xf32>
      %165 = arith.truncf %164 : vector<8x8xf32> to vector<8x8xbf16>
      %c0_97 = arith.constant 0 : index
      %c0_98 = arith.constant 0 : index
      %c8_99 = arith.constant 8 : index
      %166 = vector.load %arg6[%c0_97, %c0_98, %c8_99] : memref<1x8x32xbf16, #tpu.memory_space<vmem>>, vector<1x8x8xbf16>
      %167 = vector.shape_cast %166 : vector<1x8x8xbf16> to vector<8x8xbf16>
      %168 = vector.shape_cast %165 : vector<8x8xbf16> to vector<1x8x8xbf16>
      tpu.vector_store %arg6[%c0_97, %c0_98, %c8_99], %168 {strides = array<i32>} : memref<1x8x32xbf16, #tpu.memory_space<vmem>>, vector<1x8x8xbf16>,
      %c2_100 = arith.constant 2 : index
      %c0_101 = arith.constant 0 : index
      %c0_102 = arith.constant 0 : index
      %169 = vector.load %arg9[%c2_100, %c0_101, %c0_102] : memref<4x8x1xf32, #tpu.memory_space<vmem>>, vector<1x8x1xf32>
      %170 = vector.shape_cast %169 : vector<1x8x1xf32> to vector<8x1xf32>
      %171 = tpu.reciprocal %170 {approx = true} : vector<8x1xf32> -> vector<8x1xf32>
      %c0_103 = arith.constant 0 : index
      %c16_104 = arith.constant 16 : index
      %172 = vector.load %arg7[%c0_103, %c16_104] : memref<8x32xf32, #tpu.memory_space<vmem>>, vector<8x8xf32>
      %173 = vector.broadcast %171 : vector<8x1xf32> to vector<8x8xf32>
      %174 = arith.mulf %172, %173 : vector<8x8xf32>
      %175 = arith.truncf %174 : vector<8x8xf32> to vector<8x8xbf16>
      %c0_105 = arith.constant 0 : index
      %c0_106 = arith.constant 0 : index
      %c16_107 = arith.constant 16 : index
      %176 = vector.load %arg6[%c0_105, %c0_106, %c16_107] : memref<1x8x32xbf16, #tpu.memory_space<vmem>>, vector<1x8x8xbf16>
      %177 = vector.shape_cast %176 : vector<1x8x8xbf16> to vector<8x8xbf16>
      %178 = vector.shape_cast %175 : vector<8x8xbf16> to vector<1x8x8xbf16>
      tpu.vector_store %arg6[%c0_105, %c0_106, %c16_107], %178 {strides = array<i32>} : memref<1x8x32xbf16, #tpu.memory_space<vmem>>, vector<1x8x8xbf16>,
      %c3_108 = arith.constant 3 : index
      %c0_109 = arith.constant 0 : index
      %c0_110 = arith.constant 0 : index
      %179 = vector.load %arg9[%c3_108, %c0_109, %c0_110] : memref<4x8x1xf32, #tpu.memory_space<vmem>>, vector<1x8x1xf32>
      %180 = vector.shape_cast %179 : vector<1x8x1xf32> to vector<8x1xf32>
      %181 = tpu.reciprocal %180 {approx = true} : vector<8x1xf32> -> vector<8x1xf32>
      %c0_111 = arith.constant 0 : index
      %c24_112 = arith.constant 24 : index
      %182 = vector.load %arg7[%c0_111, %c24_112] : memref<8x32xf32, #tpu.memory_space<vmem>>, vector<8x8xf32>
      %183 = vector.broadcast %181 : vector<8x1xf32> to vector<8x8xf32>
      %184 = arith.mulf %182, %183 : vector<8x8xf32>
      %185 = arith.truncf %184 : vector<8x8xf32> to vector<8x8xbf16>
      %c0_113 = arith.constant 0 : index
      %c0_114 = arith.constant 0 : index
      %c24_115 = arith.constant 24 : index
      %186 = vector.load %arg6[%c0_113, %c0_114, %c24_115] : memref<1x8x32xbf16, #tpu.memory_space<vmem>>, vector<1x8x8xbf16>
      %187 = vector.shape_cast %186 : vector<1x8x8xbf16> to vector<8x8xbf16>
      %188 = vector.shape_cast %185 : vector<8x8xbf16> to vector<1x8x8xbf16>
      tpu.vector_store %arg6[%c0_113, %c0_114, %c24_115], %188 {strides = array<i32>} : memref<1x8x32xbf16, #tpu.memory_space<vmem>>, vector<1x8x8xbf16>,
    } else {
    }
    return
  }
  func.func @transform_0(%arg0: i32, %arg1: i32, %arg2: i32) -> (i32, i32, i32) {
    %c0_i32 = arith.constant 0 : i32
    %c0_i32_0 = arith.constant 0 : i32
    return %arg0, %arg1, %c0_i32 : i32, i32, i32
  }
  func.func @transform_1(%arg0: i32, %arg1: i32, %arg2: i32) -> (i32, i32, i32) {
    %c0_i32 = arith.constant 0 : i32
    %c0_i32_0 = arith.constant 0 : i32
    return %arg0, %arg2, %c0_i32 : i32, i32, i32
  }
  func.func @transform_2(%arg0: i32, %arg1: i32, %arg2: i32) -> (i32, i32, i32) {
    %c0_i32 = arith.constant 0 : i32
    return %arg0, %arg1, %arg2 : i32, i32, i32
  }
  func.func @transform_3(%arg0: i32, %arg1: i32, %arg2: i32) -> (i32, i32, i32) {
    %c0_i32 = arith.constant 0 : i32
    %c0_i32_0 = arith.constant 0 : i32
    return %arg0, %arg1, %c0_i32 : i32, i32, i32
  }
}

module attributes {stable_mosaic.version = 11 : i64} {
  func.func @_linear_kernel(%arg0: i32, %arg1: i32, %arg2: memref<16x32xbf16, #tpu.memory_space<vmem>>, %arg3: memref<32x64xbf16, #tpu.memory_space<vmem>>, %arg4: memref<1x64xf32, #tpu.memory_space<vmem>>, %arg5: memref<16x64xbf16, #tpu.memory_space<vmem>>) attributes {dimension_semantics = [#tpu.dimension_semantics<parallel>, #tpu.dimension_semantics<parallel>], iteration_bounds = array<i64: 1, 1>, scalar_prefetch = 0 : i64, scratch_operands = 0 : i64, tpu.core_type = #tpu.core_type<tc>, window_params = [{transform_indices = @transform_0, window_bounds = array<i64: 16, 32>}, {transform_indices = @transform_1, window_bounds = array<i64: 32, 64>}, {transform_indices = @transform_2, window_bounds = array<i64: 1, 64>}, {transform_indices = @transform_3, window_bounds = array<i64: 16, 64>}]} {
    %c0 = arith.constant 0 : index
    %c0_0 = arith.constant 0 : index
    %0 = vector.load %arg2[%c0, %c0_0] : memref<16x32xbf16, #tpu.memory_space<vmem>>, vector<16x32xbf16>
    %c0_1 = arith.constant 0 : index
    %c0_2 = arith.constant 0 : index
    %1 = vector.load %arg3[%c0_1, %c0_2] : memref<32x64xbf16, #tpu.memory_space<vmem>>, vector<32x64xbf16>
    %cst = arith.constant dense<0.000000e+00> : vector<16x64xf32>
    %2 = tpu.matmul %0, %1, %cst {dimension_numbers = #tpu.dot_dimension_numbers<[1], [0], [0], [1], [0, 0, 1, 1], [], []>} : vector<16x32xbf16>, vector<32x64xbf16>, vector<16x64xf32> -> vector<16x64xf32>
    %c0_3 = arith.constant 0 : index
    %c0_4 = arith.constant 0 : index
    %3 = vector.load %arg4[%c0_3, %c0_4] : memref<1x64xf32, #tpu.memory_space<vmem>>, vector<1x64xf32>
    %4 = vector.broadcast %3 : vector<1x64xf32> to vector<16x64xf32>
    %5 = arith.addf %2, %4 : vector<16x64xf32>
    %6 = arith.truncf %5 : vector<16x64xf32> to vector<16x64xbf16>
    %c0_5 = arith.constant 0 : index
    %c0_6 = arith.constant 0 : index
    %7 = vector.load %arg5[%c0_5, %c0_6] : memref<16x64xbf16, #tpu.memory_space<vmem>>, vector<16x64xbf16>
    tpu.vector_store %arg5[%c0_5, %c0_6], %6 {strides = array<i32>} : memref<16x64xbf16, #tpu.memory_space<vmem>>, vector<16x64xbf16>,
    return
  }
  func.func @transform_0(%arg0: i32, %arg1: i32) -> (i32, i32) {
    %c0_i32 = arith.constant 0 : i32
    %c0_i32_0 = arith.constant 0 : i32
    return %arg0, %c0_i32 : i32, i32
  }
  func.func @transform_1(%arg0: i32, %arg1: i32) -> (i32, i32) {
    %c0_i32 = arith.constant 0 : i32
    %c0_i32_0 = arith.constant 0 : i32
    return %c0_i32, %arg1 : i32, i32
  }
  func.func @transform_2(%arg0: i32, %arg1: i32) -> (i32, i32) {
    %c0_i32 = arith.constant 0 : i32
    %c0_i32_0 = arith.constant 0 : i32
    return %c0_i32, %arg1 : i32, i32
  }
  func.func @transform_3(%arg0: i32, %arg1: i32) -> (i32, i32) {
    %c0_i32 = arith.constant 0 : i32
    return %arg0, %arg1 : i32, i32
  }
}

module attributes {stable_mosaic.version = 11 : i64} {
  func.func @_ln_linear_kernel(%arg0: i32, %arg1: i32, %arg2: memref<16x32xf32, #tpu.memory_space<vmem>>, %arg3: memref<1x32xf32, #tpu.memory_space<vmem>>, %arg4: memref<1x32xf32, #tpu.memory_space<vmem>>, %arg5: memref<32x64xbf16, #tpu.memory_space<vmem>>, %arg6: memref<1x64xf32, #tpu.memory_space<vmem>>, %arg7: memref<16x64xbf16, #tpu.memory_space<vmem>>) attributes {dimension_semantics = [#tpu.dimension_semantics<parallel>, #tpu.dimension_semantics<parallel>], iteration_bounds = array<i64: 1, 1>, scalar_prefetch = 0 : i64, scratch_operands = 0 : i64, tpu.core_type = #tpu.core_type<tc>, window_params = [{transform_indices = @transform_0, window_bounds = array<i64: 16, 32>}, {pipeline_mode = #tpu.pipeline_mode<synchronous>, transform_indices = @transform_1, window_bounds = array<i64: 1, 32>}, {pipeline_mode = #tpu.pipeline_mode<synchronous>, transform_indices = @transform_2, window_bounds = array<i64: 1, 32>}, {transform_indices = @transform_3, window_bounds = array<i64: 32, 64>}, {transform_indices = @transform_4, window_bounds = array<i64: 1, 64>}, {transform_indices = @transform_5, window_bounds = array<i64: 16, 64>}]} {
    %c0 = arith.constant 0 : index
    %c0_0 = arith.constant 0 : index
    %0 = vector.load %arg2[%c0, %c0_0] : memref<16x32xf32, #tpu.memory_space<vmem>>, vector<16x32xf32>
    %cst = arith.constant dense<0.000000e+00> : vector<16xf32>
    %1 = vector.multi_reduction <add>, %0, %cst [1] : vector<16x32xf32> to vector<16xf32>
    %2 = vector.shape_cast %1 : vector<16xf32> to vector<16x1xf32>
    %cst_1 = arith.constant 3.200000e+01 : f32
    %3 = vector.broadcast %cst_1 : f32 to vector<16x1xf32>
    %4 = arith.divf %2, %3 : vector<16x1xf32>
    %5 = vector.broadcast %4 : vector<16x1xf32> to vector<16x32xf32>
    %6 = arith.subf %0, %5 : vector<16x32xf32>
    %7 = arith.mulf %6, %6 : vector<16x32xf32>
    %cst_2 = arith.constant dense<0.000000e+00> : vector<16xf32>
    %8 = vector.multi_reduction <add>, %7, %cst_2 [1] : vector<16x32xf32> to vector<16xf32>
    %9 = vector.shape_cast %8 : vector<16xf32> to vector<16x1xf32>
    %cst_3 = arith.constant 3.100000e+01 : f32
    %10 = vector.broadcast %cst_3 : f32 to vector<16x1xf32>
    %11 = arith.divf %9, %10 : vector<16x1xf32>
    %12 = math.sqrt %11 : vector<16x1xf32>
    %cst_4 = arith.constant 9.99999997E-7 : f32
    %13 = vector.broadcast %cst_4 : f32 to vector<16x1xf32>
    %14 = arith.addf %12, %13 : vector<16x1xf32>
    %15 = tpu.reciprocal %14 {approx = true} : vector<16x1xf32> -> vector<16x1xf32>
    %c0_5 = arith.constant 0 : index
    %c0_6 = arith.constant 0 : index
    %16 = vector.load %arg3[%c0_5, %c0_6] : memref<1x32xf32, #tpu.memory_space<vmem>>, vector<1x32xf32>
    %17 = vector.broadcast %4 : vector<16x1xf32> to vector<16x32xf32>
    %18 = arith.subf %0, %17 : vector<16x32xf32>
    %19 = vector.broadcast %16 : vector<1x32xf32> to vector<16x32xf32>
    %20 = arith.mulf %19, %18 : vector<16x32xf32>
    %21 = vector.broadcast %15 : vector<16x1xf32> to vector<16x32xf32>
    %22 = arith.mulf %20, %21 : vector<16x32xf32>
    %c0_7 = arith.constant 0 : index
    %c0_8 = arith.constant 0 : index
    %23 = vector.load %arg4[%c0_7, %c0_8] : memref<1x32xf32, #tpu.memory_space<vmem>>, vector<1x32xf32>
    %24 = vector.broadcast %23 : vector<1x32xf32> to vector<16x32xf32>
    %25 = arith.addf %22, %24 : vector<16x32xf32>
    %26 = arith.truncf %25 : vector<16x32xf32> to vector<16x32xbf16>
    %c0_9 = arith.constant 0 : index
    %c0_10 = arith.constant 0 : index
    %27 = vector.load %arg5[%c0_9, %c0_10] : memref<32x64xbf16, #tpu.memory_space<vmem>>, vector<32x64xbf16>
    %cst_11 = arith.constant dense<0.000000e+00> : vector<16x64xf32>
    %28 = tpu.matmul %26, %27, %cst_11 {dimension_numbers = #tpu.dot_dimension_numbers<[1], [0], [0], [1], [0, 0, 1, 1], [], []>} : vector<16x32xbf16>, vector<32x64xbf16>, vector<16x64xf32> -> vector<16x64xf32>
    %c0_12 = arith.constant 0 : index
    %c0_13 = arith.constant 0 : index
    %29 = vector.load %arg6[%c0_12, %c0_13] : memref<1x64xf32, #tpu.memory_space<vmem>>, vector<1x64xf32>
    %30 = vector.broadcast %29 : vector<1x64xf32> to vector<16x64xf32>
    %31 = arith.addf %28, %30 : vector<16x64xf32>
    %cst_14 = arith.constant 0.000000e+00 : f32
    %32 = vector.broadcast %cst_14 : f32 to vector<16x64xf32>
    %33 = arith.maximumf %31, %32 : vector<16x64xf32>
    %34 = arith.truncf %33 : vector<16x64xf32> to vector<16x64xbf16>
    %c0_15 = arith.constant 0 : index
    %c0_16 = arith.constant 0 : index
    %35 = vector.load %arg7[%c0_15, %c0_16] : memref<16x64xbf16, #tpu.memory_space<vmem>>, vector<16x64xbf16>
    tpu.vector_store %arg7[%c0_15, %c0_16], %34 {strides = array<i32>} : memref<16x64xbf16, #tpu.memory_space<vmem>>, vector<16x64xbf16>,
    return
  }
  func.func @transform_0(%arg0: i32, %arg1: i32) -> (i32, i32) {
    %c0_i32 = arith.constant 0 : i32
    %c0_i32_0 = arith.constant 0 : i32
    return %arg0, %c0_i32 : i32, i32
  }
  func.func @transform_1(%arg0: i32, %arg1: i32) -> (i32, i32) {
    %c0_i32 = arith.constant 0 : i32
    %c0_i32_0 = arith.constant 0 : i32
    %c0_i32_1 = arith.constant 0 : i32
    return %c0_i32, %c0_i32_0 : i32, i32
  }
  func.func @transform_2(%arg0: i32, %arg1: i32) -> (i32, i32) {
    %c0_i32 = arith.constant 0 : i32
    %c0_i32_0 = arith.constant 0 : i32
    %c0_i32_1 = arith.constant 0 : i32
    return %c0_i32, %c0_i32_0 : i32, i32
  }
  func.func @transform_3(%arg0: i32, %arg1: i32) -> (i32, i32) {
    %c0_i32 = arith.constant 0 : i32
    %c0_i32_0 = arith.constant 0 : i32
    return %c0_i32, %arg1 : i32, i32
  }
  func.func @transform_4(%arg0: i32, %arg1: i32) -> (i32, i32) {
    %c0_i32 = arith.constant 0 : i32
    %c0_i32_0 = arith.constant 0 : i32
    return %c0_i32, %arg1 : i32, i32
  }
  func.func @transform_5(%arg0: i32, %arg1: i32) -> (i32, i32) {
    %c0_i32 = arith.constant 0 : i32
    return %arg0, %arg1 : i32, i32
  }
}

module attributes {stable_mosaic.version = 11 : i64} {
  func.func @_flash_attn_kernel(%arg0: i32, %arg1: i32, %arg2: i32, %arg3: memref<1x8x32xbf16, #tpu.memory_space<vmem>>, %arg4: memref<1x8x64xbf16, #tpu.memory_space<vmem>>, %arg5: memref<1x1x8xbf16, #tpu.memory_space<vmem>>, %arg6: memref<1x8x32xbf16, #tpu.memory_space<vmem>>, %arg7: memref<8x32xf32, #tpu.memory_space<vmem>>, %arg8: memref<4x8x1xf32, #tpu.memory_space<vmem>>, %arg9: memref<4x8x1xf32, #tpu.memory_space<vmem>>) attributes {dimension_semantics = [#tpu.dimension_semantics<parallel>, #tpu.dimension_semantics<parallel>, #tpu.dimension_semantics<arbitrary>], iteration_bounds = array<i64: 2, 1, 1>, scalar_prefetch = 0 : i64, scratch_operands = 3 : i64, tpu.core_type = #tpu.core_type<tc>, window_params = [{transform_indices = @transform_0, window_bounds = array<i64: 1, 8, 32>}, {transform_indices = @transform_1, window_bounds = array<i64: 1, 8, 64>}, {transform_indices = @transform_2, window_bounds = array<i64: 1, 1, 8>}, {transform_indices = @transform_3, window_bounds = array<i64: 1, 8, 32>}]} {
    %c0_i32 = arith.constant 0 : i32
    %0 = arith.cmpi eq, %arg2, %c0_i32 : i32
    %1 = arith.extui %0 : i1 to i32
    %c0_i32_0 = arith.constant 0 : i32
    %2 = arith.cmpi ne, %1, %c0_i32_0 : i32
    scf.if %2 {
      %cst_84 = arith.constant 0.000000e+00 : f32
      %153 = vector.broadcast %cst_84 : f32 to vector<8x32xf32>
      %c0_85 = arith.constant 0 : index
      %c0_86 = arith.constant 0 : index
      %154 = vector.load %arg7[%c0_85, %c0_86] : memref<8x32xf32, #tpu.memory_space<vmem>>, vector<8x32xf32>
      tpu.vector_store %arg7[%c0_85, %c0_86], %153 {strides = array<i32>} : memref<8x32xf32, #tpu.memory_space<vmem>>, vector<8x32xf32>,
      %cst_87 = arith.constant 0xFF800000 : f32
      %155 = vector.broadcast %cst_87 : f32 to vector<4x8x1xf32>
      %c0_88 = arith.constant 0 : index
      %c0_89 = arith.constant 0 : index
      %c0_90 = arith.constant 0 : index
      %156 = vector.load %arg8[%c0_88, %c0_89, %c0_90] : memref<4x8x1xf32, #tpu.memory_space<vmem>>, vector<4x8x1xf32>
      tpu.vector_store %arg8[%c0_88, %c0_89, %c0_90], %155 {strides = array<i32>} : memref<4x8x1xf32, #tpu.memory_space<vmem>>, vector<4x8x1xf32>,
      %cst_91 = arith.constant 0.000000e+00 : f32
      %157 = vector.broadcast %cst_91 : f32 to vector<4x8x1xf32>
      %c0_92 = arith.constant 0 : index
      %c0_93 = arith.constant 0 : index
      %c0_94 = arith.constant 0 : index
      %158 = vector.load %arg9[%c0_92, %c0_93, %c0_94] : memref<4x8x1xf32, #tpu.memory_space<vmem>>, vector<4x8x1xf32>
      tpu.vector_store %arg9[%c0_92, %c0_93, %c0_94], %157 {strides = array<i32>} : memref<4x8x1xf32, #tpu.memory_space<vmem>>, vector<4x8x1xf32>,
    } else {
    }
    %c0 = arith.constant 0 : index
    %c0_1 = arith.constant 0 : index
    %c0_2 = arith.constant 0 : index
    %3 = vector.load %arg3[%c0, %c0_1, %c0_2] : memref<1x8x32xbf16, #tpu.memory_space<vmem>>, vector<1x8x32xbf16>
    %4 = vector.shape_cast %3 : vector<1x8x32xbf16> to vector<8x32xbf16>
    %c0_3 = arith.constant 0 : index
    %c0_4 = arith.constant 0 : index
    %c0_5 = arith.constant 0 : index
    %5 = vector.load %arg4[%c0_3, %c0_4, %c0_5] : memref<1x8x64xbf16, #tpu.memory_space<vmem>>, vector<1x8x64xbf16>
    %6 = vector.shape_cast %5 : vector<1x8x64xbf16> to vector<8x64xbf16>
    %c0_6 = arith.constant 0 : index
    %c0_7 = arith.constant 0 : index
    %c0_8 = arith.constant 0 : index
    %7 = vector.load %arg5[%c0_6, %c0_7, %c0_8] : memref<1x1x8xbf16, #tpu.memory_space<vmem>>, vector<1x1x8xbf16>
    %8 = vector.shape_cast %7 : vector<1x1x8xbf16> to vector<1x8xbf16>
    %9 = arith.extf %8 : vector<1x8xbf16> to vector<1x8xf32>
    %10 = vector.extract_strided_slice %4 {offsets = [0, 0], sizes = [8, 8], strides = [1, 1]} : vector<8x32xbf16> to vector<8x8xbf16>
    %11 = vector.extract_strided_slice %6 {offsets = [0, 0], sizes = [8, 8], strides = [1, 1]} : vector<8x64xbf16> to vector<8x8xbf16>
    %12 = vector.extract_strided_slice %6 {offsets = [0, 32], sizes = [8, 8], strides = [1, 1]} : vector<8x64xbf16> to vector<8x8xbf16>
    %cst = arith.constant dense<0.000000e+00> : vector<8x8xf32>
    %13 = tpu.matmul %10, %11, %cst {dimension_numbers = #tpu.dot_dimension_numbers<[1], [1], [0], [0], [0, 0, 1, 0], [], []>} : vector<8x8xbf16>, vector<8x8xbf16>, vector<8x8xf32> -> vector<8x8xf32>
    %14 = vector.broadcast %9 : vector<1x8xf32> to vector<8x8xf32>
    %15 = arith.addf %13, %14 : vector<8x8xf32>
    %c0_9 = arith.constant 0 : index
    %c0_10 = arith.constant 0 : index
    %c0_11 = arith.constant 0 : index
    %16 = vector.load %arg8[%c0_9, %c0_10, %c0_11] : memref<4x8x1xf32, #tpu.memory_space<vmem>>, vector<1x8x1xf32>
    %17 = vector.shape_cast %16 : vector<1x8x1xf32> to vector<8x1xf32>
    %cst_12 = arith.constant dense<0xFF800000> : vector<8xf32>
    %18 = vector.multi_reduction <maximumf>, %15, %cst_12 [1] : vector<8x8xf32> to vector<8xf32>
    %19 = vector.shape_cast %18 : vector<8xf32> to vector<8x1xf32>
    %20 = arith.maximumf %17, %19 : vector<8x1xf32>
    %21 = arith.subf %17, %20 : vector<8x1xf32>
    %22 = math.exp %21 : vector<8x1xf32>
    %23 = vector.broadcast %20 : vector<8x1xf32> to vector<8x8xf32>
    %24 = arith.subf %15, %23 : vector<8x8xf32>
    %25 = math.exp %24 : vector<8x8xf32>
    %c0_13 = arith.constant 0 : index
    %c0_14 = arith.constant 0 : index
    %c0_15 = arith.constant 0 : index
    %26 = vector.load %arg9[%c0_13, %c0_14, %c0_15] : memref<4x8x1xf32, #tpu.memory_space<vmem>>, vector<1x8x1xf32>
    %27 = vector.shape_cast %26 : vector<1x8x1xf32> to vector<8x1xf32>
    %28 = arith.mulf %22, %27 : vector<8x1xf32>
    %cst_16 = arith.constant dense<0.000000e+00> : vector<8xf32>
    %29 = vector.multi_reduction <add>, %25, %cst_16 [1] : vector<8x8xf32> to vector<8xf32>
    %30 = vector.shape_cast %29 : vector<8xf32> to vector<8x1xf32>
    %31 = arith.addf %28, %30 : vector<8x1xf32>
    %c0_17 = arith.constant 0 : index
    %c0_18 = arith.constant 0 : index
    %c0_19 = arith.constant 0 : index
    %32 = vector.load %arg9[%c0_17, %c0_18, %c0_19] : memref<4x8x1xf32, #tpu.memory_space<vmem>>, vector<1x8x1xf32>
    %33 = vector.shape_cast %32 : vector<1x8x1xf32> to vector<8x1xf32>
    %34 = vector.shape_cast %31 : vector<8x1xf32> to vector<1x8x1xf32>
    tpu.vector_store %arg9[%c0_17, %c0_18, %c0_19], %34 {strides = array<i32>} : memref<4x8x1xf32, #tpu.memory_space<vmem>>, vector<1x8x1xf32>,
    %35 = arith.truncf %25 : vector<8x8xf32> to vector<8x8xbf16>
    %cst_20 = arith.constant dense<0.000000e+00> : vector<8x8xf32>
    %36 = tpu.matmul %35, %12, %cst_20 {dimension_numbers = #tpu.dot_dimension_numbers<[1], [0], [0], [1], [0, 0, 1, 1], [], []>} : vector<8x8xbf16>, vector<8x8xbf16>, vector<8x8xf32> -> vector<8x8xf32>
    %c0_21 = arith.constant 0 : index
    %c0_22 = arith.constant 0 : index
    %37 = vector.load %arg7[%c0_21, %c0_22] : memref<8x32xf32, #tpu.memory_space<vmem>>, vector<8x8xf32>
    %38 = vector.broadcast %22 : vector<8x1xf32> to vector<8x8xf32>
    %39 = arith.mulf %38, %37 : vector<8x8xf32>
    %40 = arith.addf %39, %36 : vector<8x8xf32>
    %c0_23 = arith.constant 0 : index
    %c0_24 = arith.constant 0 : index
    %41 = vector.load %arg7[%c0_23, %c0_24] : memref<8x32xf32, #tpu.memory_space<vmem>>, vector<8x8xf32>
    tpu.vector_store %arg7[%c0_23, %c0_24], %40 {strides = array<i32>} : memref<8x32xf32, #tpu.memory_space<vmem>>, vector<8x8xf32>,
    %c0_25 = arith.constant 0 : index
    %c0_26 = arith.constant 0 : index
    %c0_27 = arith.constant 0 : index
    %42 = vector.load %arg8[%c0_25, %c0_26, %c0_27] : memref<4x8x1xf32, #tpu.memory_space<vmem>>, vector<1x8x1xf32>
    %43 = vector.shape_cast %42 : vector<1x8x1xf32> to vector<8x1xf32>
    %44 = vector.shape_cast %20 : vector<8x1xf32> to vector<1x8x1xf32>
    tpu.vector_store %arg8[%c0_25, %c0_26, %c0_27], %44 {strides = array<i32>} : memref<4x8x1xf32, #tpu.memory_space<vmem>>, vector<1x8x1xf32>,
    %45 = vector.extract_strided_slice %4 {offsets = [0, 8], sizes = [8, 8], strides = [1, 1]} : vector<8x32xbf16> to vector<8x8xbf16>
    %46 = vector.extract_strided_slice %6 {offsets = [0, 8], sizes = [8, 8], strides = [1, 1]} : vector<8x64xbf16> to vector<8x8xbf16>
    %47 = vector.extract_strided_slice %6 {offsets = [0, 40], sizes = [8, 8], strides = [1, 1]} : vector<8x64xbf16> to vector<8x8xbf16>
    %cst_28 = arith.constant dense<0.000000e+00> : vector<8x8xf32>
    %48 = tpu.matmul %45, %46, %cst_28 {dimension_numbers = #tpu.dot_dimension_numbers<[1], [1], [0], [0], [0, 0, 1, 0], [], []>} : vector<8x8xbf16>, vector<8x8xbf16>, vector<8x8xf32> -> vector<8x8xf32>
    %49 = vector.broadcast %9 : vector<1x8xf32> to vector<8x8xf32>
    %50 = arith.addf %48, %49 : vector<8x8xf32>
    %c1 = arith.constant 1 : index
    %c0_29 = arith.constant 0 : index
    %c0_30 = arith.constant 0 : index
    %51 = vector.load %arg8[%c1, %c0_29, %c0_30] : memref<4x8x1xf32, #tpu.memory_space<vmem>>, vector<1x8x1xf32>
    %52 = vector.shape_cast %51 : vector<1x8x1xf32> to vector<8x1xf32>
    %cst_31 = arith.constant dense<0xFF800000> : vector<8xf32>
    %53 = vector.multi_reduction <maximumf>, %50, %cst_31 [1] : vector<8x8xf32> to vector<8xf32>
    %54 = vector.shape_cast %53 : vector<8xf32> to vector<8x1xf32>
    %55 = arith.maximumf %52, %54 : vector<8x1xf32>
    %56 = arith.subf %52, %55 : vector<8x1xf32>
    %57 = math.exp %56 : vector<8x1xf32>
    %58 = vector.broadcast %55 : vector<8x1xf32> to vector<8x8xf32>
    %59 = arith.subf %50, %58 : vector<8x8xf32>
    %60 = math.exp %59 : vector<8x8xf32>
    %c1_32 = arith.constant 1 : index
    %c0_33 = arith.constant 0 : index
    %c0_34 = arith.constant 0 : index
    %61 = vector.load %arg9[%c1_32, %c0_33, %c0_34] : memref<4x8x1xf32, #tpu.memory_space<vmem>>, vector<1x8x1xf32>
    %62 = vector.shape_cast %61 : vector<1x8x1xf32> to vector<8x1xf32>
    %63 = arith.mulf %57, %62 : vector<8x1xf32>
    %cst_35 = arith.constant dense<0.000000e+00> : vector<8xf32>
    %64 = vector.multi_reduction <add>, %60, %cst_35 [1] : vector<8x8xf32> to vector<8xf32>
    %65 = vector.shape_cast %64 : vector<8xf32> to vector<8x1xf32>
    %66 = arith.addf %63, %65 : vector<8x1xf32>
    %c1_36 = arith.constant 1 : index
    %c0_37 = arith.constant 0 : index
    %c0_38 = arith.constant 0 : index
    %67 = vector.load %arg9[%c1_36, %c0_37, %c0_38] : memref<4x8x1xf32, #tpu.memory_space<vmem>>, vector<1x8x1xf32>
    %68 = vector.shape_cast %67 : vector<1x8x1xf32> to vector<8x1xf32>
    %69 = vector.shape_cast %66 : vector<8x1xf32> to vector<1x8x1xf32>
    tpu.vector_store %arg9[%c1_36, %c0_37, %c0_38], %69 {strides = array<i32>} : memref<4x8x1xf32, #tpu.memory_space<vmem>>, vector<1x8x1xf32>,
    %70 = arith.truncf %60 : vector<8x8xf32> to vector<8x8xbf16>
    %cst_39 = arith.constant dense<0.000000e+00> : vector<8x8xf32>
    %71 = tpu.matmul %70, %47, %cst_39 {dimension_numbers = #tpu.dot_dimension_numbers<[1], [0], [0], [1], [0, 0, 1, 1], [], []>} : vector<8x8xbf16>, vector<8x8xbf16>, vector<8x8xf32> -> vector<8x8xf32>
    %c0_40 = arith.constant 0 : index
    %c8 = arith.constant 8 : index
    %72 = vector.load %arg7[%c0_40, %c8] : memref<8x32xf32, #tpu.memory_space<vmem>>, vector<8x8xf32>
    %73 = vector.broadcast %57 : vector<8x1xf32> to vector<8x8xf32>
    %74 = arith.mulf %73, %72 : vector<8x8xf32>
    %75 = arith.addf %74, %71 : vector<8x8xf32>
    %c0_41 = arith.constant 0 : index
    %c8_42 = arith.constant 8 : index
    %76 = vector.load %arg7[%c0_41, %c8_42] : memref<8x32xf32, #tpu.memory_space<vmem>>, vector<8x8xf32>
    tpu.vector_store %arg7[%c0_41, %c8_42], %75 {strides = array<i32>} : memref<8x32xf32, #tpu.memory_space<vmem>>, vector<8x8xf32>,
    %c1_43 = arith.constant 1 : index
    %c0_44 = arith.constant 0 : index
    %c0_45 = arith.constant 0 : index
    %77 = vector.load %arg8[%c1_43, %c0_44, %c0_45] : memref<4x8x1xf32, #tpu.memory_space<vmem>>, vector<1x8x1xf32>
    %78 = vector.shape_cast %77 : vector<1x8x1xf32> to vector<8x1xf32>
    %79 = vector.shape_cast %55 : vector<8x1xf32> to vector<1x8x1xf32>
    tpu.vector_store %arg8[%c1_43, %c0_44, %c0_45], %79 {strides = array<i32>} : memref<4x8x1xf32, #tpu.memory_space<vmem>>, vector<1x8x1xf32>,
    %80 = vector.extract_strided_slice %4 {offsets = [0, 16], sizes = [8, 8], strides = [1, 1]} : vector<8x32xbf16> to vector<8x8xbf16>
    %81 = vector.extract_strided_slice %6 {offsets = [0, 16], sizes = [8, 8], strides = [1, 1]} : vector<8x64xbf16> to vector<8x8xbf16>
    %82 = vector.extract_strided_slice %6 {offsets = [0, 48], sizes = [8, 8], strides = [1, 1]} : vector<8x64xbf16> to vector<8x8xbf16>
    %cst_46 = arith.constant dense<0.000000e+00> : vector<8x8xf32>
    %83 = tpu.matmul %80, %81, %cst_46 {dimension_numbers = #tpu.dot_dimension_numbers<[1], [1], [0], [0], [0, 0, 1, 0], [], []>} : vector<8x8xbf16>, vector<8x8xbf16>, vector<8x8xf32> -> vector<8x8xf32>
    %84 = vector.broadcast %9 : vector<1x8xf32> to vector<8x8xf32>
    %85 = arith.addf %83, %84 : vector<8x8xf32>
    %c2 = arith.constant 2 : index
    %c0_47 = arith.constant 0 : index
    %c0_48 = arith.constant 0 : index
    %86 = vector.load %arg8[%c2, %c0_47, %c0_48] : memref<4x8x1xf32, #tpu.memory_space<vmem>>, vector<1x8x1xf32>
    %87 = vector.shape_cast %86 : vector<1x8x1xf32> to vector<8x1xf32>
    %cst_49 = arith.constant dense<0xFF800000> : vector<8xf32>
    %88 = vector.multi_reduction <maximumf>, %85, %cst_49 [1] : vector<8x8xf32> to vector<8xf32>
    %89 = vector.shape_cast %88 : vector<8xf32> to vector<8x1xf32>
    %90 = arith.maximumf %87, %89 : vector<8x1xf32>
    %91 = arith.subf %87, %90 : vector<8x1xf32>
    %92 = math.exp %91 : vector<8x1xf32>
    %93 = vector.broadcast %90 : vector<8x1xf32> to vector<8x8xf32>
    %94 = arith.subf %85, %93 : vector<8x8xf32>
    %95 = math.exp %94 : vector<8x8xf32>
    %c2_50 = arith.constant 2 : index
    %c0_51 = arith.constant 0 : index
    %c0_52 = arith.constant 0 : index
    %96 = vector.load %arg9[%c2_50, %c0_51, %c0_52] : memref<4x8x1xf32, #tpu.memory_space<vmem>>, vector<1x8x1xf32>
    %97 = vector.shape_cast %96 : vector<1x8x1xf32> to vector<8x1xf32>
    %98 = arith.mulf %92, %97 : vector<8x1xf32>
    %cst_53 = arith.constant dense<0.000000e+00> : vector<8xf32>
    %99 = vector.multi_reduction <add>, %95, %cst_53 [1] : vector<8x8xf32> to vector<8xf32>
    %100 = vector.shape_cast %99 : vector<8xf32> to vector<8x1xf32>
    %101 = arith.addf %98, %100 : vector<8x1xf32>
    %c2_54 = arith.constant 2 : index
    %c0_55 = arith.constant 0 : index
    %c0_56 = arith.constant 0 : index
    %102 = vector.load %arg9[%c2_54, %c0_55, %c0_56] : memref<4x8x1xf32, #tpu.memory_space<vmem>>, vector<1x8x1xf32>
    %103 = vector.shape_cast %102 : vector<1x8x1xf32> to vector<8x1xf32>
    %104 = vector.shape_cast %101 : vector<8x1xf32> to vector<1x8x1xf32>
    tpu.vector_store %arg9[%c2_54, %c0_55, %c0_56], %104 {strides = array<i32>} : memref<4x8x1xf32, #tpu.memory_space<vmem>>, vector<1x8x1xf32>,
    %105 = arith.truncf %95 : vector<8x8xf32> to vector<8x8xbf16>
    %cst_57 = arith.constant dense<0.000000e+00> : vector<8x8xf32>
    %106 = tpu.matmul %105, %82, %cst_57 {dimension_numbers = #tpu.dot_dimension_numbers<[1], [0], [0], [1], [0, 0, 1, 1], [], []>} : vector<8x8xbf16>, vector<8x8xbf16>, vector<8x8xf32> -> vector<8x8xf32>
    %c0_58 = arith.constant 0 : index
    %c16 = arith.constant 16 : index
    %107 = vector.load %arg7[%c0_58, %c16] : memref<8x32xf32, #tpu.memory_space<vmem>>, vector<8x8xf32>
    %108 = vector.broadcast %92 : vector<8x1xf32> to vector<8x8xf32>
    %109 = arith.mulf %108, %107 : vector<8x8xf32>
    %110 = arith.addf %109, %106 : vector<8x8xf32>
    %c0_59 = arith.constant 0 : index
    %c16_60 = arith.constant 16 : index
    %111 = vector.load %arg7[%c0_59, %c16_60] : memref<8x32xf32, #tpu.memory_space<vmem>>, vector<8x8xf32>
    tpu.vector_store %arg7[%c0_59, %c16_60], %110 {strides = array<i32>} : memref<8x32xf32, #tpu.memory_space<vmem>>, vector<8x8xf32>,
    %c2_61 = arith.constant 2 : index
    %c0_62 = arith.constant 0 : index
    %c0_63 = arith.constant 0 : index
    %112 = vector.load %arg8[%c2_61, %c0_62, %c0_63] : memref<4x8x1xf32, #tpu.memory_space<vmem>>, vector<1x8x1xf32>
    %113 = vector.shape_cast %112 : vector<1x8x1xf32> to vector<8x1xf32>
    %114 = vector.shape_cast %90 : vector<8x1xf32> to vector<1x8x1xf32>
    tpu.vector_store %arg8[%c2_61, %c0_62, %c0_63], %114 {strides = array<i32>} : memref<4x8x1xf32, #tpu.memory_space<vmem>>, vector<1x8x1xf32>,
    %115 = vector.extract_strided_slice %4 {offsets = [0, 24], sizes = [8, 8], strides = [1, 1]} : vector<8x32xbf16> to vector<8x8xbf16>
    %116 = vector.extract_strided_slice %6 {offsets = [0, 24], sizes = [8, 8], strides = [1, 1]} : vector<8x64xbf16> to vector<8x8xbf16>
    %117 = vector.extract_strided_slice %6 {offsets = [0, 56], sizes = [8, 8], strides = [1, 1]} : vector<8x64xbf16> to vector<8x8xbf16>
    %cst_64 = arith.constant dense<0.000000e+00> : vector<8x8xf32>
    %118 = tpu.matmul %115, %116, %cst_64 {dimension_numbers = #tpu.dot_dimension_numbers<[1], [1], [0], [0], [0, 0, 1, 0], [], []>} : vector<8x8xbf16>, vector<8x8xbf16>, vector<8x8xf32> -> vector<8x8xf32>
    %119 = vector.broadcast %9 : vector<1x8xf32> to vector<8x8xf32>
    %120 = arith.addf %118, %119 : vector<8x8xf32>
    %c3 = arith.constant 3 : index
    %c0_65 = arith.constant 0 : index
    %c0_66 = arith.constant 0 : index
    %121 = vector.load %arg8[%c3, %c0_65, %c0_66] : memref<4x8x1xf32, #tpu.memory_space<vmem>>, vector<1x8x1xf32>
    %122 = vector.shape_cast %121 : vector<1x8x1xf32> to vector<8x1xf32>
    %cst_67 = arith.constant dense<0xFF800000> : vector<8xf32>
    %123 = vector.multi_reduction <maximumf>, %120, %cst_67 [1] : vector<8x8xf32> to vector<8xf32>
    %124 = vector.shape_cast %123 : vector<8xf32> to vector<8x1xf32>
    %125 = arith.maximumf %122, %124 : vector<8x1xf32>
    %126 = arith.subf %122, %125 : vector<8x1xf32>
    %127 = math.exp %126 : vector<8x1xf32>
    %128 = vector.broadcast %125 : vector<8x1xf32> to vector<8x8xf32>
    %129 = arith.subf %120, %128 : vector<8x8xf32>
    %130 = math.exp %129 : vector<8x8xf32>
    %c3_68 = arith.constant 3 : index
    %c0_69 = arith.constant 0 : index
    %c0_70 = arith.constant 0 : index
    %131 = vector.load %arg9[%c3_68, %c0_69, %c0_70] : memref<4x8x1xf32, #tpu.memory_space<vmem>>, vector<1x8x1xf32>
    %132 = vector.shape_cast %131 : vector<1x8x1xf32> to vector<8x1xf32>
    %133 = arith.mulf %127, %132 : vector<8x1xf32>
    %cst_71 = arith.constant dense<0.000000e+00> : vector<8xf32>
    %134 = vector.multi_reduction <add>, %130, %cst_71 [1] : vector<8x8xf32> to vector<8xf32>
    %135 = vector.shape_cast %134 : vector<8xf32> to vector<8x1xf32>
    %136 = arith.addf %133, %135 : vector<8x1xf32>
    %c3_72 = arith.constant 3 : index
    %c0_73 = arith.constant 0 : index
    %c0_74 = arith.constant 0 : index
    %137 = vector.load %arg9[%c3_72, %c0_73, %c0_74] : memref<4x8x1xf32, #tpu.memory_space<vmem>>, vector<1x8x1xf32>
    %138 = vector.shape_cast %137 : vector<1x8x1xf32> to vector<8x1xf32>
    %139 = vector.shape_cast %136 : vector<8x1xf32> to vector<1x8x1xf32>
    tpu.vector_store %arg9[%c3_72, %c0_73, %c0_74], %139 {strides = array<i32>} : memref<4x8x1xf32, #tpu.memory_space<vmem>>, vector<1x8x1xf32>,
    %140 = arith.truncf %130 : vector<8x8xf32> to vector<8x8xbf16>
    %cst_75 = arith.constant dense<0.000000e+00> : vector<8x8xf32>
    %141 = tpu.matmul %140, %117, %cst_75 {dimension_numbers = #tpu.dot_dimension_numbers<[1], [0], [0], [1], [0, 0, 1, 1], [], []>} : vector<8x8xbf16>, vector<8x8xbf16>, vector<8x8xf32> -> vector<8x8xf32>
    %c0_76 = arith.constant 0 : index
    %c24 = arith.constant 24 : index
    %142 = vector.load %arg7[%c0_76, %c24] : memref<8x32xf32, #tpu.memory_space<vmem>>, vector<8x8xf32>
    %143 = vector.broadcast %127 : vector<8x1xf32> to vector<8x8xf32>
    %144 = arith.mulf %143, %142 : vector<8x8xf32>
    %145 = arith.addf %144, %141 : vector<8x8xf32>
    %c0_77 = arith.constant 0 : index
    %c24_78 = arith.constant 24 : index
    %146 = vector.load %arg7[%c0_77, %c24_78] : memref<8x32xf32, #tpu.memory_space<vmem>>, vector<8x8xf32>
    tpu.vector_store %arg7[%c0_77, %c24_78], %145 {strides = array<i32>} : memref<8x32xf32, #tpu.memory_space<vmem>>, vector<8x8xf32>,
    %c3_79 = arith.constant 3 : index
    %c0_80 = arith.constant 0 : index
    %c0_81 = arith.constant 0 : index
    %147 = vector.load %arg8[%c3_79, %c0_80, %c0_81] : memref<4x8x1xf32, #tpu.memory_space<vmem>>, vector<1x8x1xf32>
    %148 = vector.shape_cast %147 : vector<1x8x1xf32> to vector<8x1xf32>
    %149 = vector.shape_cast %125 : vector<8x1xf32> to vector<1x8x1xf32>
    tpu.vector_store %arg8[%c3_79, %c0_80, %c0_81], %149 {strides = array<i32>} : memref<4x8x1xf32, #tpu.memory_space<vmem>>, vector<1x8x1xf32>,
    %c0_i32_82 = arith.constant 0 : i32
    %150 = arith.cmpi eq, %arg2, %c0_i32_82 : i32
    %151 = arith.extui %150 : i1 to i32
    %c0_i32_83 = arith.constant 0 : i32
    %152 = arith.cmpi ne, %151, %c0_i32_83 : i32
    scf.if %152 {
      %c0_84 = arith.constant 0 : index
      %c0_85 = arith.constant 0 : index
      %c0_86 = arith.constant 0 : index
      %153 = vector.load %arg9[%c0_84, %c0_85, %c0_86] : memref<4x8x1xf32, #tpu.memory_space<vmem>>, vector<1x8x1xf32>
      %154 = vector.shape_cast %153 : vector<1x8x1xf32> to vector<8x1xf32>
      %155 = tpu.reciprocal %154 {approx = true} : vector<8x1xf32> -> vector<8x1xf32>
      %c0_87 = arith.constant 0 : index
      %c0_88 = arith.constant 0 : index
      %156 = vector.load %arg7[%c0_87, %c0_88] : memref<8x32xf32, #tpu.memory_space<vmem>>, vector<8x8xf32>
      %157 = vector.broadcast %155 : vector<8x1xf32> to vector<8x8xf32>
      %158 = arith.mulf %156, %157 : vector<8x8xf32>
      %159 = arith.truncf %158 : vector<8x8xf32> to vector<8x8xbf16>
      %c0_89 = arith.constant 0 : index
      %c0_90 = arith.constant 0 : index
      %c0_91 = arith.constant 0 : index
      %160 = vector.load %arg6[%c0_89, %c0_90, %c0_91] : memref<1x8x32xbf16, #tpu.memory_space<vmem>>, vector<1x8x8xbf16>
      %161 = vector.shape_cast %160 : vector<1x8x8xbf16> to vector<8x8xbf16>
      %162 = vector.shape_cast %159 : vector<8x8xbf16> to vector<1x8x8xbf16>
      tpu.vector_store %arg6[%c0_89, %c0_90, %c0_91], %162 {strides = array<i32>} : memref<1x8x32xbf16, #tpu.memory_space<vmem>>, vector<1x8x8xbf16>,
      %c1_92 = arith.constant 1 : index
      %c0_93 = arith.constant 0 : index
      %c0_94 = arith.constant 0 : index
      %163 = vector.load %arg9[%c1_92, %c0_93, %c0_94] : memref<4x8x1xf32, #tpu.memory_space<vmem>>, vector<1x8x1xf32>
      %164 = vector.shape_cast %163 : vector<1x8x1xf32> to vector<8x1xf32>
      %165 = tpu.reciprocal %164 {approx = true} : vector<8x1xf32> -> vector<8x1xf32>
      %c0_95 = arith.constant 0 : index
      %c8_96 = arith.constant 8 : index
      %166 = vector.load %arg7[%c0_95, %c8_96] : memref<8x32xf32, #tpu.memory_space<vmem>>, vector<8x8xf32>
      %167 = vector.broadcast %165 : vector<8x1xf32> to vector<8x8xf32>
      %168 = arith.mulf %166, %167 : vector<8x8xf32>
      %169 = arith.truncf %168 : vector<8x8xf32> to vector<8x8xbf16>
      %c0_97 = arith.constant 0 : index
      %c0_98 = arith.constant 0 : index
      %c8_99 = arith.constant 8 : index
      %170 = vector.load %arg6[%c0_97, %c0_98, %c8_99] : memref<1x8x32xbf16, #tpu.memory_space<vmem>>, vector<1x8x8xbf16>
      %171 = vector.shape_cast %170 : vector<1x8x8xbf16> to vector<8x8xbf16>
      %172 = vector.shape_cast %169 : vector<8x8xbf16> to vector<1x8x8xbf16>
      tpu.vector_store %arg6[%c0_97, %c0_98, %c8_99], %172 {strides = array<i32>} : memref<1x8x32xbf16, #tpu.memory_space<vmem>>, vector<1x8x8xbf16>,
      %c2_100 = arith.constant 2 : index
      %c0_101 = arith.constant 0 : index
      %c0_102 = arith.constant 0 : index
      %173 = vector.load %arg9[%c2_100, %c0_101, %c0_102] : memref<4x8x1xf32, #tpu.memory_space<vmem>>, vector<1x8x1xf32>
      %174 = vector.shape_cast %173 : vector<1x8x1xf32> to vector<8x1xf32>
      %175 = tpu.reciprocal %174 {approx = true} : vector<8x1xf32> -> vector<8x1xf32>
      %c0_103 = arith.constant 0 : index
      %c16_104 = arith.constant 16 : index
      %176 = vector.load %arg7[%c0_103, %c16_104] : memref<8x32xf32, #tpu.memory_space<vmem>>, vector<8x8xf32>
      %177 = vector.broadcast %175 : vector<8x1xf32> to vector<8x8xf32>
      %178 = arith.mulf %176, %177 : vector<8x8xf32>
      %179 = arith.truncf %178 : vector<8x8xf32> to vector<8x8xbf16>
      %c0_105 = arith.constant 0 : index
      %c0_106 = arith.constant 0 : index
      %c16_107 = arith.constant 16 : index
      %180 = vector.load %arg6[%c0_105, %c0_106, %c16_107] : memref<1x8x32xbf16, #tpu.memory_space<vmem>>, vector<1x8x8xbf16>
      %181 = vector.shape_cast %180 : vector<1x8x8xbf16> to vector<8x8xbf16>
      %182 = vector.shape_cast %179 : vector<8x8xbf16> to vector<1x8x8xbf16>
      tpu.vector_store %arg6[%c0_105, %c0_106, %c16_107], %182 {strides = array<i32>} : memref<1x8x32xbf16, #tpu.memory_space<vmem>>, vector<1x8x8xbf16>,
      %c3_108 = arith.constant 3 : index
      %c0_109 = arith.constant 0 : index
      %c0_110 = arith.constant 0 : index
      %183 = vector.load %arg9[%c3_108, %c0_109, %c0_110] : memref<4x8x1xf32, #tpu.memory_space<vmem>>, vector<1x8x1xf32>
      %184 = vector.shape_cast %183 : vector<1x8x1xf32> to vector<8x1xf32>
      %185 = tpu.reciprocal %184 {approx = true} : vector<8x1xf32> -> vector<8x1xf32>
      %c0_111 = arith.constant 0 : index
      %c24_112 = arith.constant 24 : index
      %186 = vector.load %arg7[%c0_111, %c24_112] : memref<8x32xf32, #tpu.memory_space<vmem>>, vector<8x8xf32>
      %187 = vector.broadcast %185 : vector<8x1xf32> to vector<8x8xf32>
      %188 = arith.mulf %186, %187 : vector<8x8xf32>
      %189 = arith.truncf %188 : vector<8x8xf32> to vector<8x8xbf16>
      %c0_113 = arith.constant 0 : index
      %c0_114 = arith.constant 0 : index
      %c24_115 = arith.constant 24 : index
      %190 = vector.load %arg6[%c0_113, %c0_114, %c24_115] : memref<1x8x32xbf16, #tpu.memory_space<vmem>>, vector<1x8x8xbf16>
      %191 = vector.shape_cast %190 : vector<1x8x8xbf16> to vector<8x8xbf16>
      %192 = vector.shape_cast %189 : vector<8x8xbf16> to vector<1x8x8xbf16>
      tpu.vector_store %arg6[%c0_113, %c0_114, %c24_115], %192 {strides = array<i32>} : memref<1x8x32xbf16, #tpu.memory_space<vmem>>, vector<1x8x8xbf16>,
    } else {
    }
    return
  }
  func.func @transform_0(%arg0: i32, %arg1: i32, %arg2: i32) -> (i32, i32, i32) {
    %c0_i32 = arith.constant 0 : i32
    %c0_i32_0 = arith.constant 0 : i32
    return %arg0, %arg1, %c0_i32 : i32, i32, i32
  }
  func.func @transform_1(%arg0: i32, %arg1: i32, %arg2: i32) -> (i32, i32, i32) {
    %c0_i32 = arith.constant 0 : i32
    %c0_i32_0 = arith.constant 0 : i32
    return %arg0, %arg2, %c0_i32 : i32, i32, i32
  }
  func.func @transform_2(%arg0: i32, %arg1: i32, %arg2: i32) -> (i32, i32, i32) {
    %c0_i32 = arith.constant 0 : i32
    %c0_i32_0 = arith.constant 0 : i32
    return %arg0, %c0_i32, %arg2 : i32, i32, i32
  }
  func.func @transform_3(%arg0: i32, %arg1: i32, %arg2: i32) -> (i32, i32, i32) {
    %c0_i32 = arith.constant 0 : i32
    %c0_i32_0 = arith.constant 0 : i32
    return %arg0, %arg1, %c0_i32 : i32, i32, i32
  }
}

module attributes {stable_mosaic.version = 11 : i64} {
  func.func @_layernorm_kernel(%arg0: i32, %arg1: memref<16x32xf32, #tpu.memory_space<vmem>>, %arg2: memref<1x32xf32, #tpu.memory_space<vmem>>, %arg3: memref<1x32xf32, #tpu.memory_space<vmem>>, %arg4: memref<16x32xf32, #tpu.memory_space<vmem>>) attributes {dimension_semantics = [#tpu.dimension_semantics<parallel>], iteration_bounds = array<i64: 1>, scalar_prefetch = 0 : i64, scratch_operands = 0 : i64, tpu.core_type = #tpu.core_type<tc>, window_params = [{transform_indices = @transform_0, window_bounds = array<i64: 16, 32>}, {pipeline_mode = #tpu.pipeline_mode<synchronous>, transform_indices = @transform_1, window_bounds = array<i64: 1, 32>}, {pipeline_mode = #tpu.pipeline_mode<synchronous>, transform_indices = @transform_2, window_bounds = array<i64: 1, 32>}, {transform_indices = @transform_3, window_bounds = array<i64: 16, 32>}]} {
    %c0 = arith.constant 0 : index
    %c0_0 = arith.constant 0 : index
    %0 = vector.load %arg1[%c0, %c0_0] : memref<16x32xf32, #tpu.memory_space<vmem>>, vector<16x32xf32>
    %cst = arith.constant dense<0.000000e+00> : vector<16xf32>
    %1 = vector.multi_reduction <add>, %0, %cst [1] : vector<16x32xf32> to vector<16xf32>
    %2 = vector.shape_cast %1 : vector<16xf32> to vector<16x1xf32>
    %cst_1 = arith.constant 3.200000e+01 : f32
    %3 = vector.broadcast %cst_1 : f32 to vector<16x1xf32>
    %4 = arith.divf %2, %3 : vector<16x1xf32>
    %5 = vector.broadcast %4 : vector<16x1xf32> to vector<16x32xf32>
    %6 = arith.subf %0, %5 : vector<16x32xf32>
    %7 = arith.mulf %6, %6 : vector<16x32xf32>
    %cst_2 = arith.constant dense<0.000000e+00> : vector<16xf32>
    %8 = vector.multi_reduction <add>, %7, %cst_2 [1] : vector<16x32xf32> to vector<16xf32>
    %9 = vector.shape_cast %8 : vector<16xf32> to vector<16x1xf32>
    %cst_3 = arith.constant 3.100000e+01 : f32
    %10 = vector.broadcast %cst_3 : f32 to vector<16x1xf32>
    %11 = arith.divf %9, %10 : vector<16x1xf32>
    %c0_4 = arith.constant 0 : index
    %c0_5 = arith.constant 0 : index
    %12 = vector.load %arg2[%c0_4, %c0_5] : memref<1x32xf32, #tpu.memory_space<vmem>>, vector<1x32xf32>
    %13 = vector.broadcast %4 : vector<16x1xf32> to vector<16x32xf32>
    %14 = arith.subf %0, %13 : vector<16x32xf32>
    %15 = vector.broadcast %12 : vector<1x32xf32> to vector<16x32xf32>
    %16 = arith.mulf %15, %14 : vector<16x32xf32>
    %17 = math.sqrt %11 : vector<16x1xf32>
    %cst_6 = arith.constant 9.99999997E-7 : f32
    %18 = vector.broadcast %cst_6 : f32 to vector<16x1xf32>
    %19 = arith.addf %17, %18 : vector<16x1xf32>
    %20 = vector.broadcast %19 : vector<16x1xf32> to vector<16x32xf32>
    %21 = arith.divf %16, %20 : vector<16x32xf32>
    %c0_7 = arith.constant 0 : index
    %c0_8 = arith.constant 0 : index
    %22 = vector.load %arg3[%c0_7, %c0_8] : memref<1x32xf32, #tpu.memory_space<vmem>>, vector<1x32xf32>
    %23 = vector.broadcast %22 : vector<1x32xf32> to vector<16x32xf32>
    %24 = arith.addf %21, %23 : vector<16x32xf32>
    %c0_9 = arith.constant 0 : index
    %c0_10 = arith.constant 0 : index
    %25 = vector.load %arg4[%c0_9, %c0_10] : memref<16x32xf32, #tpu.memory_space<vmem>>, vector<16x32xf32>
    tpu.vector_store %arg4[%c0_9, %c0_10], %24 {strides = array<i32>} : memref<16x32xf32, #tpu.memory_space<vmem>>, vector<16x32xf32>,
    return
  }
  func.func @transform_0(%arg0: i32) -> (i32, i32) {
    %c0_i32 = arith.constant 0 : i32
    %c0_i32_0 = arith.constant 0 : i32
    return %arg0, %c0_i32 : i32, i32
  }
  func.func @transform_1(%arg0: i32) -> (i32, i32) {
    %c0_i32 = arith.constant 0 : i32
    %c0_i32_0 = arith.constant 0 : i32
    %c0_i32_1 = arith.constant 0 : i32
    return %c0_i32, %c0_i32_0 : i32, i32
  }
  func.func @transform_2(%arg0: i32) -> (i32, i32) {
    %c0_i32 = arith.constant 0 : i32
    %c0_i32_0 = arith.constant 0 : i32
    %c0_i32_1 = arith.constant 0 : i32
    return %c0_i32, %c0_i32_0 : i32, i32
  }
  func.func @transform_3(%arg0: i32) -> (i32, i32) {
    %c0_i32 = arith.constant 0 : i32
    %c0_i32_0 = arith.constant 0 : i32
    return %arg0, %c0_i32 : i32, i32
  }
}

module attributes {stable_mosaic.version = 11 : i64} {
  func.func @_linear_residual_kernel(%arg0: i32, %arg1: i32, %arg2: memref<16x64xbf16, #tpu.memory_space<vmem>>, %arg3: memref<16x32xf32, #tpu.memory_space<vmem>>, %arg4: memref<64x32xbf16, #tpu.memory_space<vmem>>, %arg5: memref<1x32xf32, #tpu.memory_space<vmem>>, %arg6: memref<16x32xf32, #tpu.memory_space<vmem>>) attributes {dimension_semantics = [#tpu.dimension_semantics<parallel>, #tpu.dimension_semantics<parallel>], iteration_bounds = array<i64: 1, 1>, scalar_prefetch = 0 : i64, scratch_operands = 0 : i64, tpu.core_type = #tpu.core_type<tc>, window_params = [{transform_indices = @transform_0, window_bounds = array<i64: 16, 64>}, {transform_indices = @transform_1, window_bounds = array<i64: 16, 32>}, {transform_indices = @transform_2, window_bounds = array<i64: 64, 32>}, {transform_indices = @transform_3, window_bounds = array<i64: 1, 32>}, {transform_indices = @transform_4, window_bounds = array<i64: 16, 32>}]} {
    %c0 = arith.constant 0 : index
    %c0_0 = arith.constant 0 : index
    %0 = vector.load %arg2[%c0, %c0_0] : memref<16x64xbf16, #tpu.memory_space<vmem>>, vector<16x64xbf16>
    %c0_1 = arith.constant 0 : index
    %c0_2 = arith.constant 0 : index
    %1 = vector.load %arg4[%c0_1, %c0_2] : memref<64x32xbf16, #tpu.memory_space<vmem>>, vector<64x32xbf16>
    %cst = arith.constant dense<0.000000e+00> : vector<16x32xf32>
    %2 = tpu.matmul %0, %1, %cst {dimension_numbers = #tpu.dot_dimension_numbers<[1], [0], [0], [1], [0, 0, 1, 1], [], []>} : vector<16x64xbf16>, vector<64x32xbf16>, vector<16x32xf32> -> vector<16x32xf32>
    %c0_3 = arith.constant 0 : index
    %c0_4 = arith.constant 0 : index
    %3 = vector.load %arg5[%c0_3, %c0_4] : memref<1x32xf32, #tpu.memory_space<vmem>>, vector<1x32xf32>
    %4 = vector.broadcast %3 : vector<1x32xf32> to vector<16x32xf32>
    %5 = arith.addf %2, %4 : vector<16x32xf32>
    %c0_5 = arith.constant 0 : index
    %c0_6 = arith.constant 0 : index
    %6 = vector.load %arg3[%c0_5, %c0_6] : memref<16x32xf32, #tpu.memory_space<vmem>>, vector<16x32xf32>
    %7 = arith.addf %5, %6 : vector<16x32xf32>
    %c0_7 = arith.constant 0 : index
    %c0_8 = arith.constant 0 : index
    %8 = vector.load %arg6[%c0_7, %c0_8] : memref<16x32xf32, #tpu.memory_space<vmem>>, vector<16x32xf32>
    tpu.vector_store %arg6[%c0_7, %c0_8], %7 {strides = array<i32>} : memref<16x32xf32, #tpu.memory_space<vmem>>, vector<16x32xf32>,
    return
  }
  func.func @transform_0(%arg0: i32, %arg1: i32) -> (i32, i32) {
    %c0_i32 = arith.constant 0 : i32
    %c0_i32_0 = arith.constant 0 : i32
    return %arg0, %c0_i32 : i32, i32
  }
  func.func @transform_1(%arg0: i32, %arg1: i32) -> (i32, i32) {
    %c0_i32 = arith.constant 0 : i32
    return %arg0, %arg1 : i32, i32
  }
  func.func @transform_2(%arg0: i32, %arg1: i32) -> (i32, i32) {
    %c0_i32 = arith.constant 0 : i32
    %c0_i32_0 = arith.constant 0 : i32
    return %c0_i32, %arg1 : i32, i32
  }
  func.func @transform_3(%arg0: i32, %arg1: i32) -> (i32, i32) {
    %c0_i32 = arith.constant 0 : i32
    %c0_i32_0 = arith.constant 0 : i32
    return %c0_i32, %arg1 : i32, i32
  }
  func.func @transform_4(%arg0: i32, %arg1: i32) -> (i32, i32) {
    %c0_i32 = arith.constant 0 : i32
    return %arg0, %arg1 : i32, i32
  }
}

</mosaic_0001>

<bundles_post_ra>
// kernel: closed_call.28
= control target key start
LH: loop header
LB: loop body
LE: loop exit
PB: predicated region body
PF: predicated region fallthrough
CT: control target
= control target key end

     0   :  { %vm23_vm0 = vcmask 261120   ;;  %v200_v14 = vmov 0.0   ;;  %vm201_vm1 = vmmov 0   ;;  %vm160_vm6 = vcmask 781312   ;;  %s264_s0 = inlined_call_operand.vmem [shape: f32[16,32], index: 0, kind: input, shape index: {}]   ;;  %s265_s3 = inlined_call_operand.vmem [shape: bf16[32,96], index: 3, kind: input, shape index: {}]   ;;  %s266_s1 = inlined_call_operand.vmem [shape: f32[1,32], index: 1, kind: input, shape index: {}]   ;;  %s267_s2 = inlined_call_operand.vmem [shape: f32[1,32], index: 2, kind: input, shape index: {}]   ;;  %s268_s4 = inlined_call_operand.vmem [shape: f32[1,96], index: 4, kind: input, shape index: {}]   ;;  %s269_s5 = inlined_call_operand.vmem [shape: bf16[16,96], index: 5, kind: output, shape index: {}]  }
   0x1   :  { %v21_v0 = vld [vmem:[%s264_s0] sm:$0xff]  ;;  %v22_v1 = vld [vmem:[%s264_s0 + $0x8] sm:$0xff]  ;;  %180 = vmatprep.subr.bf16.mxu0 %v200_v14  ;;  %184 = vmatprep.mubr.msk.bf16.mxu0 %vm201_vm1, %v200_v14 }
   0x2   :  { %v24_v2 = vsel %vm23_vm0, %v21_v0, 0.0  ;;  %v27_v3 = vsel %vm23_vm0, %v22_v1, 0.0  ;;  %v190_v15 = vld [vmem:[%s265_s3] sm:$0xff]   ;;  %v191_v16 = vld [vmem:[%s265_s3 + $0x8] sm:$0xff]  }
   0x3   :  { %25 = vadd.xlane.f32.xlu0 %v24_v2  ;;  %181 = vmatpush3.bf16.msra.mxu0 %v190_v15  ;;  %v167_v33 = vld [vmem:[%s266_s1] ss:$0 sm:$0xff] }
   0x4   :  { %182 = vmatprep.subr.bf16.mxu0 %v200_v14  ;;  %v168_v39 = vld [vmem:[%s267_s2] ss:$0 sm:$0xff] }
   0x5   :  { %v169_v44 = vld [vmem:[%s268_s4] ss:$0 sm:$0xff] }
   0x7   :  { %28 = vadd.xlane.f32.xlu0 %v27_v3  ;;  %183 = vmatpush3.bf16.msra.mxu0 %v191_v16 }
  0x90   :  { %v26_v4 = vpop.xlane.xlu0 %25 }
  0x91   :  { %v31_v5 = vmul.f32 0.03125, %v26_v4 }
  0x93   :  { %v33_v6 = vsub.f32 %v21_v0, %v31_v5 }
  0x94   :  { %v29_v7 = vpop.xlane.xlu0 %28 }
  0x95   :  { %v32_v8 = vmul.f32 0.03125, %v29_v7  ;;  %v35_v9 = vmul.f32 %v33_v6, %v33_v6  ;;  %v71_v35 = vmul.f32 %v167_v33, %v33_v6 }
  0x97   :  { %v34_v10 = vsub.f32 %v22_v1, %v32_v8  ;;  %v37_v11 = vsel %vm23_vm0, %v35_v9, 0.0 }
  0x98   :  { %38 = vadd.xlane.f32.xlu1 %v37_v11 }
  0x99   :  { %v36_v12 = vmul.f32 %v34_v10, %v34_v10  ;;  %v72_v36 = vmul.f32 %v167_v33, %v34_v10 }
  0x9b   :  { %v40_v13 = vsel %vm23_vm0, %v36_v12, 0.0 }
  0x9c   :  { %41 = vadd.xlane.f32.xlu1 %v40_v13 }
 0x125   :  { %v39_v17 = vpop.xlane.xlu1 %38 }
 0x126   :  { %v44_v18 = vmul.f32 0.032258064, %v39_v17 }
 0x128   :  { %192 = vrsqrt.f32 %v44_v18  ;;  %vm48_vm2 = vcmp.eq.f32.partialorder %v44_v18, inf  ;;  %v51_v23 = vand.u32 2147483648, %v44_v18  ;;  %vm50_vm3 = vcmp.eq.f32.partialorder %v44_v18, 0.0 }
 0x129   :  { %v42_v19 = vpop.xlane.xlu1 %41 }
 0x12a   :  { %v45_v20 = vmul.f32 0.032258064, %v42_v19 }
 0x12c   :  { %194 = vrsqrt.f32 %v45_v20  ;;  %vm55_vm4 = vcmp.eq.f32.partialorder %v45_v20, inf  ;;  %v58_v29 = vand.u32 2147483648, %v45_v20  ;;  %vm57_vm5 = vcmp.eq.f32.partialorder %v45_v20, 0.0 }
 0x132   :  { %v193_v21 = vpop.eup %192 }
 0x133   :  { %v47_v22 = vmul.f32 %v193_v21, %v44_v18 }
 0x135   :  { %v49_v24 = vsel %vm48_vm2, %v44_v18, %v47_v22 }
 0x136   :  { %v195_v25 = vpop.eup %194  ;;  %v52_v26 = vsel %vm50_vm3, %v51_v23, %v49_v24 }
 0x137   :  { %v60_v27 = vadd.f32 1e-06, %v52_v26  ;;  %v54_v28 = vmul.f32 %v195_v25, %v45_v20 }
 0x139   :  { %196 = vrcp.f32 %v60_v27  ;;  %v56_v30 = vsel %vm55_vm4, %v45_v20, %v54_v28 }
 0x13a   :  { %v59_v31 = vsel %vm57_vm5, %v58_v29, %v56_v30 }
 0x13b   :  { %v61_v32 = vadd.f32 1e-06, %v59_v31 }
 0x13d   :  { %198 = vrcp.f32 %v61_v32 }
 0x143   :  { %v197_v34 = vpop.eup %196 }
 0x144   :  { %v73_v37 = vmul.f32 %v197_v34, %v71_v35 }
 0x146   :  { %v82_v41 = vadd.f32 %v168_v39, %v73_v37 }
 0x147   :  { %v199_v38 = vpop.eup %198 }
 0x148   :  { %v74_v40 = vmul.f32 %v199_v38, %v72_v36 }
 0x14a   :  { %v83_v42 = vadd.f32 %v168_v39, %v74_v40 }
 0x14c   :  { %v84_v43 = vpack.c.bf16 %v83_v42, %v82_v41 }
 0x14e   :  { %185 = vmatmul.mubr.msk.bf16.vlgmr.msra.gmra.mrb[0].mxu0 %vm23_vm0, %v84_v43 }
 0x221   :  { %v145_v45 = vpop.f32.mrb[0].mxu0 }
 0x222   :  { %v146_v46 = vadd.f32 %v169_v44, %v145_v45  ;;  %v186_v47 = vpop.f32.mrb[1].mxu0 }
 0x223   :  { %v148_v48 = vpop.f32.mrb[2].mxu0 }
 0x224   :  { %v175_v49 = vpack.c.bf16 %v146_v46, %v146_v46  ;;  %v149_v50 = vadd.f32 %v169_v44, %v148_v48  ;;  %v187_v51 = vpop.f32.mrb[3].mxu0 }
 0x226   :  { %161 = vst.msk [vmem:[%s269_s5] sm:$0xf] %vm160_vm6, %v175_v49  ;;  %v176_v52 = vpack.c.bf16 %v149_v50, %v149_v50 }
 0x228   :  { %162 = vst.msk [vmem:[%s269_s5 + $0x4] sm:$0xf] %vm160_vm6, %v176_v52 }

// kernel: closed_call.31
= control target key start
LH: loop header
LB: loop body
LE: loop exit
PB: predicated region body
PF: predicated region fallthrough
CT: control target
= control target key end

     0   :  { %vm23_vm0 = vcmask 261120   ;;  %v200_v14 = vmov 0.0   ;;  %vm201_vm1 = vmmov 0   ;;  %vm160_vm6 = vcmask 257024   ;;  %s264_s0 = inlined_call_operand.vmem [shape: f32[16,32], index: 0, kind: input, shape index: {}]   ;;  %s265_s3 = inlined_call_operand.vmem [shape: bf16[32,32], index: 3, kind: input, shape index: {}]   ;;  %s266_s1 = inlined_call_operand.vmem [shape: f32[1,32], index: 1, kind: input, shape index: {}]   ;;  %s267_s2 = inlined_call_operand.vmem [shape: f32[1,32], index: 2, kind: input, shape index: {}]   ;;  %s268_s4 = inlined_call_operand.vmem [shape: f32[1,32], index: 4, kind: input, shape index: {}]   ;;  %s269_s5 = inlined_call_operand.vmem [shape: bf16[16,32], index: 5, kind: output, shape index: {}]  }
   0x1   :  { %v21_v0 = vld [vmem:[%s264_s0] sm:$0xff]  ;;  %v22_v1 = vld [vmem:[%s264_s0 + $0x8] sm:$0xff]  ;;  %180 = vmatprep.subr.bf16.mxu0 %v200_v14  ;;  %184 = vmatprep.mubr.msk.bf16.mxu0 %vm201_vm1, %v200_v14 }
   0x2   :  { %v24_v2 = vsel %vm23_vm0, %v21_v0, 0.0  ;;  %v27_v3 = vsel %vm23_vm0, %v22_v1, 0.0  ;;  %v190_v15 = vld [vmem:[%s265_s3] sm:$0xff]   ;;  %v191_v16 = vld [vmem:[%s265_s3 + $0x8] sm:$0xff]  }
   0x3   :  { %25 = vadd.xlane.f32.xlu0 %v24_v2  ;;  %181 = vmatpush3.bf16.msra.mxu0 %v190_v15  ;;  %v167_v33 = vld [vmem:[%s266_s1] ss:$0 sm:$0xff] }
   0x4   :  { %182 = vmatprep.subr.bf16.mxu0 %v200_v14  ;;  %v168_v39 = vld [vmem:[%s267_s2] ss:$0 sm:$0xff] }
   0x5   :  { %v169_v44 = vld [vmem:[%s268_s4] ss:$0 sm:$0xff] }
   0x7   :  { %28 = vadd.xlane.f32.xlu0 %v27_v3  ;;  %183 = vmatpush3.bf16.msra.mxu0 %v191_v16 }
  0x90   :  { %v26_v4 = vpop.xlane.xlu0 %25 }
  0x91   :  { %v31_v5 = vmul.f32 0.03125, %v26_v4 }
  0x93   :  { %v33_v6 = vsub.f32 %v21_v0, %v31_v5 }
  0x94   :  { %v29_v7 = vpop.xlane.xlu0 %28 }
  0x95   :  { %v32_v8 = vmul.f32 0.03125, %v29_v7  ;;  %v35_v9 = vmul.f32 %v33_v6, %v33_v6  ;;  %v71_v35 = vmul.f32 %v167_v33, %v33_v6 }
  0x97   :  { %v34_v10 = vsub.f32 %v22_v1, %v32_v8  ;;  %v37_v11 = vsel %vm23_vm0, %v35_v9, 0.0 }
  0x98   :  { %38 = vadd.xlane.f32.xlu1 %v37_v11 }
  0x99   :  { %v36_v12 = vmul.f32 %v34_v10, %v34_v10  ;;  %v72_v36 = vmul.f32 %v167_v33, %v34_v10 }
  0x9b   :  { %v40_v13 = vsel %vm23_vm0, %v36_v12, 0.0 }
  0x9c   :  { %41 = vadd.xlane.f32.xlu1 %v40_v13 }
 0x125   :  { %v39_v17 = vpop.xlane.xlu1 %38 }
 0x126   :  { %v44_v18 = vmul.f32 0.032258064, %v39_v17 }
 0x128   :  { %192 = vrsqrt.f32 %v44_v18  ;;  %vm48_vm2 = vcmp.eq.f32.partialorder %v44_v18, inf  ;;  %v51_v23 = vand.u32 2147483648, %v44_v18  ;;  %vm50_vm3 = vcmp.eq.f32.partialorder %v44_v18, 0.0 }
 0x129   :  { %v42_v19 = vpop.xlane.xlu1 %41 }
 0x12a   :  { %v45_v20 = vmul.f32 0.032258064, %v42_v19 }
 0x12c   :  { %194 = vrsqrt.f32 %v45_v20  ;;  %vm55_vm4 = vcmp.eq.f32.partialorder %v45_v20, inf  ;;  %v58_v29 = vand.u32 2147483648, %v45_v20  ;;  %vm57_vm5 = vcmp.eq.f32.partialorder %v45_v20, 0.0 }
 0x132   :  { %v193_v21 = vpop.eup %192 }
 0x133   :  { %v47_v22 = vmul.f32 %v193_v21, %v44_v18 }
 0x135   :  { %v49_v24 = vsel %vm48_vm2, %v44_v18, %v47_v22 }
 0x136   :  { %v195_v25 = vpop.eup %194  ;;  %v52_v26 = vsel %vm50_vm3, %v51_v23, %v49_v24 }
 0x137   :  { %v60_v27 = vadd.f32 1e-06, %v52_v26  ;;  %v54_v28 = vmul.f32 %v195_v25, %v45_v20 }
 0x139   :  { %196 = vrcp.f32 %v60_v27  ;;  %v56_v30 = vsel %vm55_vm4, %v45_v20, %v54_v28 }
 0x13a   :  { %v59_v31 = vsel %vm57_vm5, %v58_v29, %v56_v30 }
 0x13b   :  { %v61_v32 = vadd.f32 1e-06, %v59_v31 }
 0x13d   :  { %198 = vrcp.f32 %v61_v32 }
 0x143   :  { %v197_v34 = vpop.eup %196 }
 0x144   :  { %v73_v37 = vmul.f32 %v197_v34, %v71_v35 }
 0x146   :  { %v82_v41 = vadd.f32 %v168_v39, %v73_v37 }
 0x147   :  { %v199_v38 = vpop.eup %198 }
 0x148   :  { %v74_v40 = vmul.f32 %v199_v38, %v72_v36 }
 0x14a   :  { %v83_v42 = vadd.f32 %v168_v39, %v74_v40 }
 0x14c   :  { %v84_v43 = vpack.c.bf16 %v83_v42, %v82_v41 }
 0x14e   :  { %185 = vmatmul.mubr.msk.bf16.vlgmr.msra.gmra.mrb[0].mxu0 %vm23_vm0, %v84_v43 }
 0x221   :  { %v145_v45 = vpop.f32.mrb[0].mxu0 }
 0x222   :  { %v146_v46 = vadd.f32 %v169_v44, %v145_v45  ;;  %v186_v47 = vpop.f32.mrb[1].mxu0 }
 0x223   :  { %v148_v48 = vpop.f32.mrb[2].mxu0 }
 0x224   :  { %v175_v49 = vpack.c.bf16 %v146_v46, %v146_v46  ;;  %v149_v50 = vadd.f32 %v169_v44, %v148_v48  ;;  %v187_v51 = vpop.f32.mrb[3].mxu0 }
 0x226   :  { %161 = vst.msk [vmem:[%s269_s5] sm:$0xf] %vm160_vm6, %v175_v49  ;;  %v176_v52 = vpack.c.bf16 %v149_v50, %v149_v50 }
 0x228   :  { %162 = vst.msk [vmem:[%s269_s5 + $0x4] sm:$0xf] %vm160_vm6, %v176_v52 }

// kernel: closed_call.30
= control target key start
LH: loop header
LB: loop body
LE: loop exit
PB: predicated region body
PF: predicated region fallthrough
CT: control target
= control target key end

     0   :  { %v124_v0 = vmov 0.0   ;;  %vm125_vm0 = vmmov 0   ;;  %vm48_vm1 = vcmask 261120   ;;  %s178_s2 = inlined_call_operand.vmem [shape: bf16[32,32], index: 2, kind: input, shape index: {}]   ;;  %s179_s0 = inlined_call_operand.vmem [shape: bf16[16,32], index: 0, kind: input, shape index: {}]   ;;  %s180_s3 = inlined_call_operand.vmem [shape: f32[1,32], index: 3, kind: input, shape index: {}]   ;;  %s181_s1 = inlined_call_operand.vmem [shape: f32[16,32], index: 1, kind: input, shape index: {}]   ;;  %s182_s4 = inlined_call_operand.vmem [shape: f32[16,32], index: 4, kind: output, shape index: {}]  }
   0x1   :  { %111 = vmatprep.subr.bf16.mxu0 %v124_v0  ;;  %v121_v1 = vld [vmem:[%s178_s2] sm:$0xff]   ;;  %115 = vmatprep.mubr.msk.bf16.mxu0 %vm125_vm0, %v124_v0  ;;  %v122_v2 = vld [vmem:[%s178_s2 + $0x8] sm:$0xff]  }
   0x2   :  { %112 = vmatpush3.bf16.msra.mxu0 %v121_v1  ;;  %v123_v3 = vld [vmem:[%s179_s0] sm:$0xff]   ;;  %v94_v10 = vld [vmem:[%s181_s1 + $0x8] sm:$0xff] }
   0x3   :  { %113 = vmatprep.subr.bf16.mxu0 %v124_v0  ;;  %v103_v4 = vld [vmem:[%s180_s3] ss:$0 sm:$0xff] }
   0x4   :  { %v93_v6 = vld [vmem:[%s181_s1] sm:$0xff] }
   0x6   :  { %114 = vmatpush3.bf16.msra.mxu0 %v122_v2 }
   0x9   :  { %116 = vmatmul.mubr.msk.bf16.vlgmr.msra.gmra.mrb[0].mxu0 %vm48_vm1, %v123_v3 }
  0xdc   :  { %v86_v5 = vpop.f32.mrb[0].mxu0 }
  0xdd   :  { %v87_v7 = vadd.f32 %v103_v4, %v86_v5  ;;  %v117_v8 = vpop.f32.mrb[1].mxu0 }
  0xde   :  { %v89_v9 = vpop.f32.mrb[2].mxu0 }
  0xdf   :  { %v95_v11 = vadd.f32 %v93_v6, %v87_v7  ;;  %v90_v12 = vadd.f32 %v103_v4, %v89_v9  ;;  %v118_v13 = vpop.f32.mrb[3].mxu0 }
  0xe1   :  { %97 = vst.msk [vmem:[%s182_s4] sm:$0xff] %vm48_vm1, %v95_v11  ;;  %v96_v14 = vadd.f32 %v94_v10, %v90_v12 }
  0xe3   :  { %98 = vst.msk [vmem:[%s182_s4 + $0x8] sm:$0xff] %vm48_vm1, %v96_v14 }

// kernel: closed_call.32
= control target key start
LH: loop header
LB: loop body
LE: loop exit
PB: predicated region body
PF: predicated region fallthrough
CT: control target
= control target key end

     0   :  { %v130_v0 = vmov 0.0   ;;  %vm131_vm0 = vmmov 0   ;;  %vm45_vm1 = vcmask 261120   ;;  %vm98_vm2 = vcmask 519168   ;;  %s170_s1 = inlined_call_operand.vmem [shape: bf16[32,64], index: 1, kind: input, shape index: {}]   ;;  %s171_s0 = inlined_call_operand.vmem [shape: bf16[16,32], index: 0, kind: input, shape index: {}]   ;;  %s172_s2 = inlined_call_operand.vmem [shape: f32[1,64], index: 2, kind: input, shape index: {}]   ;;  %s173_s3 = inlined_call_operand.vmem [shape: bf16[16,64], index: 3, kind: output, shape index: {}]  }
   0x1   :  { %117 = vmatprep.subr.bf16.mxu0 %v130_v0  ;;  %v127_v1 = vld [vmem:[%s170_s1] sm:$0xff]   ;;  %121 = vmatprep.mubr.msk.bf16.mxu0 %vm131_vm0, %v130_v0  ;;  %v128_v2 = vld [vmem:[%s170_s1 + $0x8] sm:$0xff]  }
   0x2   :  { %118 = vmatpush3.bf16.msra.mxu0 %v127_v1  ;;  %v129_v3 = vld [vmem:[%s171_s0] sm:$0xff]  }
   0x3   :  { %119 = vmatprep.subr.bf16.mxu0 %v130_v0  ;;  %v105_v4 = vld [vmem:[%s172_s2] ss:$0 sm:$0xff] }
   0x6   :  { %120 = vmatpush3.bf16.msra.mxu0 %v128_v2 }
   0x9   :  { %122 = vmatmul.mubr.msk.bf16.vlgmr.msra.gmra.mrb[0].mxu0 %vm45_vm1, %v129_v3 }
  0xdc   :  { %v83_v5 = vpop.f32.mrb[0].mxu0 }
  0xdd   :  { %v84_v6 = vadd.f32 %v105_v4, %v83_v5  ;;  %v123_v7 = vpop.f32.mrb[1].mxu0 }
  0xde   :  { %v86_v8 = vpop.f32.mrb[2].mxu0 }
  0xdf   :  { %v112_v9 = vpack.c.bf16 %v84_v6, %v84_v6  ;;  %v87_v10 = vadd.f32 %v105_v4, %v86_v8  ;;  %v124_v11 = vpop.f32.mrb[3].mxu0 }
  0xe1   :  { %99 = vst.msk [vmem:[%s173_s3] sm:$0xf] %vm98_vm2, %v112_v9  ;;  %v113_v12 = vpack.c.bf16 %v87_v10, %v87_v10 }
  0xe3   :  { %100 = vst.msk [vmem:[%s173_s3 + $0x4] sm:$0xf] %vm98_vm2, %v113_v12 }

// kernel: closed_call.29
= control target key start
LH: loop header
LB: loop body
LE: loop exit
PB: predicated region body
PF: predicated region fallthrough
CT: control target
= control target key end

     0   :  { %s1214_s12 = smov 0   ;;  %s1216_s13 = smov 0   ;;  %s1400_s0 = inlined_call_operand.vmem [shape: bf16[2,8,32], index: 0, kind: input, shape index: {}]   ;;  %s1401_s1 = inlined_call_operand.vmem [shape: bf16[2,8,64], index: 1, kind: input, shape index: {}]   ;;  %s1402_s2 = inlined_call_operand.vmem [shape: bf16[2,8,8], index: 2, kind: input, shape index: {}]   ;;  %s1403_s3 = inlined_call_operand.vmem [shape: bf16[2,8,32], index: 3, kind: output, shape index: {}]  }
   0x1   :  { %s1218_s14 = smov 0  }
   0x2 LB: > { %s32_s15 = sadd.s32 1, %s1174_s13  ;;  %p1010_p0 = scmp.ge.s32.totalorder %s1178_s14, 1  ;;  %s1178_s14 = sphi %s1218_s14, %s13_s14   ;;  %s1174_s13 = sphi %s1216_s13, %s1405_s13   ;;  %s1170_s12 = sphi %s1214_s12, %s1404_s12  }
   0x3   : > { %p34_p1 = scmp.ge.s32.totalorder %s32_s15, 2  ;;  %p195_p2 = scmp.lt.s32.totalorder %s1178_s14, 3 }
   0x5   : > { %s1407_s15 = smov (%p34_p1, %s32_s15), 0  ;;  %p196_p3 = pnand %p1010_p0, %p195_p2 }
   0x6   : > { %p240_p4 = scmp.lt.s32.totalorder (!%p196_p3), %s1170_s12, 1  ;;  %v1180_v0 = vmov (!%p196_p3), 0.0   ;;  %vm1181_vm0 = vmmov (!%p196_p3), 0   ;;  %vm291_vm1 = vcmask (!%p196_p3), 64512   ;;  %vm278_vm2 = vcmask (!%p196_p3), 7168   ;;  %s1184_s26 = smov (!%p196_p3), 96  }
   0x7   : > { %199 = sbr.rel (%p196_p3) target bundleno = 1418 (0x58a), region = 32  ;;  %1043 = vmatprep.subr.bf16.mxu0 (!%p196_p3), %v1180_v0  ;;  %1045 = vmatprep.mubr.msk.bf16.mxu0 (!%p196_p3), %vm1181_vm0, %v1180_v0  ;;  %v1182_v4 = vmov (!%p196_p3), -inf   ;;  %283 = vst.msk [vmem:[#allocation4] sm:$0xff] (!%p196_p3), %vm278_vm2, %v1180_v0  ;;  %284 = vst.msk [vmem:[#allocation4 + $0x8] sm:$0xff] (!%p196_p3), %vm278_vm2, %v1180_v0  ;;  %v1183_v13 = vmov (!%p196_p3), 0   ;;  %s1185_s27 = smov (!%p196_p3), 120  }
   0x8   : > { %1049 = vmatprep.subr.bf16.mxu1 (!%p196_p3), %v1180_v0  ;;  %1051 = vmatprep.mubr.msk.bf16.mxu1 (!%p196_p3), %vm1181_vm0, %v1180_v0  ;;  %279 = vst.msk [vmem:[#allocation3] sm:$0xff] (!%p196_p3), %vm278_vm2, %v1182_v4  ;;  %280 = vst.msk [vmem:[#allocation3 + $0x8] sm:$0xff] (!%p196_p3), %vm278_vm2, %v1182_v4  ;;  %s1186_s28 = smov (!%p196_p3), 112   ;;  %s1187_s29 = smov (!%p196_p3), 104   ;;  %vm371_vm3 = vcmask (!%p196_p3), 1043456   ;;  %vm276_vm4 = vcmask (!%p196_p3), 261120  }
   0x9   : > { %281 = vst.msk [vmem:[#allocation3 + $0x10] sm:$0xff] (!%p196_p3), %vm278_vm2, %v1182_v4  ;;  %282 = vst.msk [vmem:[#allocation3 + $0x18] sm:$0xff] (!%p196_p3), %vm278_vm2, %v1182_v4  ;;  %1129 = vset.pattern.permute.xlu0 (!%p196_p3), %v1183_v13  ;;  %1130 = vset.pattern.permute.xlu1 (!%p196_p3), %v1183_v13  ;;  %s1188_s30 = smov (!%p196_p3), 88   ;;  %s1189_s4 = smov (!%p196_p3), 80   ;;  %vm564_vm5 = vcmask (!%p196_p3), 130112   ;;  %vm703_vm6 = vcmask (!%p196_p3), 195712  }
   0xa   : > { %285 = vst.msk [vmem:[#allocation4 + $0x10] sm:$0xff] (!%p196_p3), %vm278_vm2, %v1180_v0  ;;  %286 = vst.msk [vmem:[#allocation4 + $0x18] sm:$0xff] (!%p196_p3), %vm278_vm2, %v1180_v0  ;;  %s1190_s5 = smov (!%p196_p3), 72   ;;  %s1191_s6 = smov (!%p196_p3), 8   ;;  %vm842_vm7 = vcmask (!%p196_p3), 261312   ;;  %vm858_vm8 = vcmask (!%p196_p3), 60416  }
   0xb   : > { %277 = vst.msk [vmem:[#allocation2] sm:$0xff] (!%p196_p3), %vm276_vm4, %v1180_v0  ;;  %s1192_s7 = smov (!%p196_p3), 16   ;;  %s1193_s8 = smov (!%p196_p3), 24   ;;  %vm870_vm9 = vcmask (!%p196_p3), 126016   ;;  %vm882_vm10 = vcmask (!%p196_p3), 191616   ;;  %vm894_vm11 = vcmask (!%p196_p3), 257216  }
   0xe   : > { %s1409_s12 = smov (!%p240_p4, %s1170_s12), 1 }
   0xf   : > { %s1238_s16 = sshll.u32 %s1409_s12, 2  ;;  %v1279_v16 = vld [vmem:[#allocation3] sm:$0xff]  ;;  %v1318_v58 = vld [vmem:[#allocation3 + $0x8] sm:$0xff] }
  0x10   : > { %s253_s19 = scalar_lea.vmem %s1401_s1, %s1238_s16  ;;  %s246_s22 = scalar_lea.vmem %s1400_s0, %s1238_s16  ;;  %v1328_v62 = vld [vmem:[#allocation3 + $0x10] sm:$0xff] }
  0x11   : > { %v288_v1 = vld [vmem:[%s253_s19] sm:$0xf]  ;;  %s263_s25 = scalar_lea.vmem %s1402_s2, %s1238_s16  ;;  %s270_s11 = scalar_lea.vmem %s1403_s3, %s1238_s16 }
  0x12   : > { %v296_v2 = vsel %vm291_vm1, %v288_v1, 0  ;;  %v287_v3 = vld [vmem:[%s246_s22] sm:$0xf]  ;;  %v1273_v14 = vcombine.low %v288_v1, %v288_v1 }
  0x13   : > { %1044 = vmatpush3.bf16.xpose.msra.mxu0 %v296_v2  ;;  %v289_v5 = vld [vmem:[%s263_s25] sm:$0xf]  ;;  %v1018_v15 = vcombine.low %v287_v3, %v287_v3 }
  0x14   : > { %1061 = vmatprep.subr.bf16.mxu0 %v1180_v0  ;;  %v1269_v6 = vunpack.c.l.bf16 %v289_v5  ;;  %366 = vrot.lane.b32.xlu1 %v1273_v14, %s1184_s26 }
  0x18   : > { %430 = vrot.lane.b32.xlu1 %v1273_v14, %s1185_s27 }
  0x1a   : > { %1046 = vmatmul.mubr.msk.bf16.vlgmr.msra.gmra.mrb[0].mxu0 %vm291_vm1, %v287_v3  ;;  %v1339_v3 = vld [vmem:[#allocation3 + $0x18] sm:$0xff] }
  0x1b   : > { %1063 = vmatprep.mubr.msk.bf16.mxu0 %vm1181_vm0, %v1180_v0 }
  0x1c   : > { %428 = vrot.lane.b32.xlu1 %v1018_v15, %s1185_s27 }
  0x20   : > { %569 = vrot.lane.b32.xlu1 %v1273_v14, %s1186_s28 }
  0x24   : > { %567 = vrot.lane.b32.xlu1 %v1018_v15, %s1186_s28 }
  0x28   : > { %708 = vrot.lane.b32.xlu1 %v1273_v14, %s1187_s29 }
  0x2c   : > { %706 = vrot.lane.b32.xlu1 %v1018_v15, %s1187_s29 }
  0x86   : > { %v367_v20 = vpop.permute.xlu1 %366 }
  0x87   : > { %v373_v21 = vsel %vm371_vm3, %v367_v20, 0 }
  0x88   : > { %1050 = vmatpush3.bf16.msra.mxu1 %v373_v21 }
  0x89   : > { %1055 = vmatprep.subr.bf16.mxu1 %v1180_v0 }
  0x8a   : > { %v431_v25 = vpop.permute.xlu1 %430 }
  0x8b   : > { %v436_v28 = vsel %vm291_vm1, %v431_v25, 0 }
  0x8e   : > { %v429_v26 = vpop.permute.xlu1 %428 }
  0x92   : > { %v570_v30 = vpop.permute.xlu1 %569 }
  0x93   : > { %v575_v32 = vsel %vm291_vm1, %v570_v30, 0 }
  0x96   : > { %v568_v31 = vpop.permute.xlu1 %567 }
  0x9a   : > { %v709_v33 = vpop.permute.xlu1 %708 }
  0x9b   : > { %v714_v34 = vsel %vm291_vm1, %v709_v33, 0 }
  0x9e   : > { %v707_v35 = vpop.permute.xlu1 %706 }
  0xed   : > { %v332_v7 = vpop.f32.mrb[0].mxu0 }
  0xee   : > { %v333_v8 = vadd.f32 %v332_v7, %v1269_v6  ;;  %v1047_v9 = vpop.f32.mrb[1].mxu0 }
  0xef   : > { %v335_v10 = vpop.f32.mrb[2].mxu0 }
  0xf0   : > { %v1048_v11 = vpop.f32.mrb[3].mxu0  ;;  %v339_v12 = vsel %vm291_vm1, %v333_v8, -inf }
  0xf1   : > { %340 = vmax.xlane.f32.xlu0 %v339_v12 }
 0x17e   : > { %v341_v17 = vpop.xlane.xlu0 %340 }
 0x17f   : > { %v1282_v18 = vmax.f32 %v1279_v16, %v341_v17 }
 0x181   : > { %v343_v19 = vsub.f32 %v1279_v16, %v1282_v18  ;;  %424 = vst.msk [vmem:[#allocation3] sm:$0xff] %vm278_vm2, %v1282_v18  ;;  %348 = vperm.xlu0 %1129, %v1282_v18  }
 0x183   : > { %v344_v4 = vmul.f32 1.442695, %v343_v19 }
 0x200   : > { %v349_v22 = vpop.permute.xlu0 %348 }
 0x201   : > { %v351_v23 = vsub.f32 %v333_v8, %v349_v22 }
 0x203   : > { %v352_v24 = vmul.f32 1.442695, %v351_v23 }
 0x205   : > { %1132 = vpow2.f32 %v352_v24 }
 0x206   : > { %1134 = vpow2.f32 %v344_v4 }
 0x20f   : > { %v1291_v27 = vpop.eup %1132 }
 0x210   : > { %v362_v29 = vpack.c.bf16 %v1291_v27, %v1291_v27  ;;  %v1135_v8 = vpop.eup %1134  ;;  %v356_v9 = vsel %vm291_vm1, %v1291_v27, 0.0 }
 0x212   : > { %1052 = vmatmul.mubr.msk.bf16.vlgmr.msra.gmra.mrb[0].mxu1 %vm291_vm1, %v362_v29 }
 0x213   : > { %1056 = vmatpush3.bf16.xpose.msra.mxu1 %v436_v28  ;;  %1057 = vmatprep.mubr.msk.bf16.mxu1 %vm1181_vm0, %v1180_v0 }
 0x214   : > { %1067 = vmatprep.subr.bf16.mxu1 %v1180_v0 }
 0x21a   : > { %1058 = vmatmul.mubr.msk.bf16.vlgmr.msra.gmra.mrb[4].mxu1 %vm291_vm1, %v429_v26 }
 0x21b   : > { %1068 = vmatpush3.bf16.xpose.msra.mxu1 %v575_v32  ;;  %1069 = vmatprep.mubr.msk.bf16.mxu1 %vm1181_vm0, %v1180_v0 }
 0x21c   : > { %1079 = vmatprep.subr.bf16.mxu1 %v1180_v0 }
 0x222   : > { %1070 = vmatmul.mubr.msk.bf16.vlgmr.msra.gmra.mrb[8].mxu1 %vm291_vm1, %v568_v31  ;;  %v415_v31 = vld [vmem:[#allocation2] sm:$0xff] }
 0x223   : > { %1080 = vmatpush3.bf16.xpose.msra.mxu1 %v714_v34  ;;  %1081 = vmatprep.mubr.msk.bf16.mxu1 %vm1181_vm0, %v1180_v0 }
 0x22a   : > { %1082 = vmatmul.mubr.msk.bf16.vlgmr.msra.gmra.mrb[12].mxu1 %vm291_vm1, %v707_v35 }
 0x2e5   : > { %v1310_v36 = vpop.f32.mrb[0].mxu1 }
 0x2e6   : > { %v1053_v37 = vpop.f32.mrb[1].mxu1 }
 0x2e7   : > { %v412_v38 = vpop.f32.mrb[2].mxu1 }
 0x2e8   : > { %v1054_v39 = vpop.f32.mrb[3].mxu1 }
 0x2ed   : > { %v472_v40 = vpop.f32.mrb[4].mxu1 }
 0x2ee   : > { %v473_v41 = vadd.f32 %v472_v40, %v1269_v6  ;;  %v1059_v42 = vpop.f32.mrb[5].mxu1  ;;  %v354_v40 = vld [vmem:[#allocation4] sm:$0xff] }
 0x2ef   : > { %v475_v43 = vpop.f32.mrb[6].mxu1 }
 0x2f0   : > { %v1060_v44 = vpop.f32.mrb[7].mxu1  ;;  %v480_v45 = vsel %vm291_vm1, %v473_v41, -inf }
 0x2f1   : > { %481 = vmax.xlane.f32.xlu1 %v480_v45  ;;  %v496_v44 = vld [vmem:[#allocation4 + $0x8] sm:$0xff] }
 0x2f5   : > { %v611_v46 = vpop.f32.mrb[8].mxu1 }
 0x2f6   : > { %v612_v47 = vadd.f32 %v611_v46, %v1269_v6  ;;  %v1071_v48 = vpop.f32.mrb[9].mxu1 }
 0x2f7   : > { %v614_v49 = vpop.f32.mrb[10].mxu1 }
 0x2f8   : > { %v1072_v50 = vpop.f32.mrb[11].mxu1  ;;  %v619_v51 = vsel %vm291_vm1, %v612_v47, -inf }
 0x2f9   : > { %620 = vmax.xlane.f32.xlu0 %v619_v51  ;;  %v635_v50 = vld [vmem:[#allocation4 + $0x10] sm:$0xff] }
 0x2fd   : > { %v750_v52 = vpop.f32.mrb[12].mxu1 }
 0x2fe   : > { %v751_v53 = vadd.f32 %v750_v52, %v1269_v6  ;;  %v1083_v54 = vpop.f32.mrb[13].mxu1 }
 0x2ff   : > { %v753_v55 = vpop.f32.mrb[14].mxu1 }
 0x300   : > { %v1084_v56 = vpop.f32.mrb[15].mxu1  ;;  %v758_v57 = vsel %vm291_vm1, %v751_v53, -inf  ;;  %v774_v55 = vld [vmem:[#allocation4 + $0x18] sm:$0xff] }
 0x301   : > { %759 = vmax.xlane.f32.xlu1 %v758_v57 }
 0x37e   : > { %v482_v59 = vpop.xlane.xlu1 %481 }
 0x37f   : > { %v1321_v60 = vmax.f32 %v1318_v58, %v482_v59 }
 0x381   : > { %v484_v61 = vsub.f32 %v1318_v58, %v1321_v60  ;;  %566 = vst.msk [vmem:[#allocation3 + $0x8] sm:$0xff] %vm278_vm2, %v1321_v60  ;;  %489 = vperm.xlu1 %1130, %v1321_v60  }
 0x383   : > { %v485_v39 = vmul.f32 1.442695, %v484_v61 }
 0x385   : > { %504 = vrot.lane.b32.xlu1 %v1273_v14, %s1188_s30 }
 0x386   : > { %v621_v63 = vpop.xlane.xlu0 %620 }
 0x387   : > { %v1332_v1 = vmax.f32 %v1328_v62, %v621_v63 }
 0x389   : > { %v623_v2 = vsub.f32 %v1328_v62, %v1332_v1  ;;  %705 = vst.msk [vmem:[#allocation3 + $0x10] sm:$0xff] %vm278_vm2, %v1332_v1  ;;  %628 = vperm.xlu0 %1129, %v1332_v1  }
 0x38e   : > { %v760_v5 = vpop.xlane.xlu1 %759 }
 0x38f   : > { %v1345_v6 = vmax.f32 %v1339_v3, %v760_v5 }
 0x391   : > { %v762_v7 = vsub.f32 %v1339_v3, %v1345_v6  ;;  %844 = vst.msk [vmem:[#allocation3 + $0x18] sm:$0xff] %vm278_vm2, %v1345_v6  ;;  %767 = vperm.xlu1 %1130, %v1345_v6  }
 0x393   : > { %v763_v45 = vmul.f32 1.442695, %v762_v7 }
 0x395   : > { %643 = vrot.lane.b32.xlu1 %v1273_v14, %s1189_s4 }
 0x399   : > { %782 = vrot.lane.b32.xlu1 %v1273_v14, %s1190_s5 }
 0x39d   : > { %418 = vperm.xlu1 %1130, %v1135_v8  }
 0x3a8   : > { %357 = vadd.xlane.f32.xlu0 %v356_v9 }
 0x400   : > { %v490_v10 = vpop.permute.xlu1 %489 }
 0x401   : > { %v492_v11 = vsub.f32 %v473_v41, %v490_v10 }
 0x403   : > { %v493_v12 = vmul.f32 1.442695, %v492_v11 }
 0x404   : > { %v505_v13 = vpop.permute.xlu1 %504 }
 0x405   : > { %1136 = vpow2.f32 %v493_v12  ;;  %v510_v15 = vsel %vm371_vm3, %v505_v13, 0 }
 0x406   : > { %1062 = vmatpush3.bf16.msra.mxu0 %v510_v15 }
 0x407   : > { %1073 = vmatprep.subr.bf16.mxu0 %v1180_v0 }
 0x408   : > { %v629_v16 = vpop.permute.xlu0 %628 }
 0x409   : > { %v631_v17 = vsub.f32 %v612_v47, %v629_v16 }
 0x40b   : > { %v632_v18 = vmul.f32 1.442695, %v631_v17 }
 0x40d   : > { %1138 = vpow2.f32 %v632_v18 }
 0x40f   : > { %v1137_v14 = vpop.eup %1136 }
 0x410   : > { %v768_v19 = vpop.permute.xlu1 %767  ;;  %v498_v20 = vsel %vm291_vm1, %v1137_v14, 0.0  ;;  %v503_v21 = vpack.c.bf16 %v1137_v14, %v1137_v14 }
 0x411   : > { %v770_v22 = vsub.f32 %v751_v53, %v768_v19  ;;  %499 = vadd.xlane.f32.xlu1 %v498_v20 }
 0x412   : > { %1064 = vmatmul.mubr.msk.bf16.vlgmr.msra.gmra.mrb[4].mxu0 %vm291_vm1, %v503_v21 }
 0x413   : > { %v771_v23 = vmul.f32 1.442695, %v770_v22  ;;  %1075 = vmatprep.mubr.msk.bf16.mxu0 %vm1181_vm0, %v1180_v0 }
 0x414   : > { %v644_v24 = vpop.permute.xlu1 %643 }
 0x415   : > { %1140 = vpow2.f32 %v771_v23  ;;  %v649_v25 = vsel %vm371_vm3, %v644_v24, 0 }
 0x416   : > { %1074 = vmatpush3.bf16.msra.mxu0 %v649_v25  ;;  %1142 = vpow2.f32 %v485_v39 }
 0x417   : > { %v1139_v26 = vpop.eup %1138  ;;  %1085 = vmatprep.subr.bf16.mxu0 %v1180_v0 }
 0x418   : > { %v783_v27 = vpop.permute.xlu1 %782  ;;  %v637_v28 = vsel %vm291_vm1, %v1139_v26, 0.0  ;;  %v642_v29 = vpack.c.bf16 %v1139_v26, %v1139_v26 }
 0x419   : > { %v788_v30 = vsel %vm371_vm3, %v783_v27, 0  ;;  %638 = vadd.xlane.f32.xlu0 %v637_v28 }
 0x41a   : > { %1076 = vmatmul.mubr.msk.bf16.vlgmr.msra.gmra.mrb[8].mxu0 %vm291_vm1, %v642_v29 }
 0x41b   : > { %1086 = vmatpush3.bf16.msra.mxu0 %v788_v30  ;;  %1087 = vmatprep.mubr.msk.bf16.mxu0 %vm1181_vm0, %v1180_v0  ;;  %v355_v0 = vmul.f32 %v1135_v8, %v354_v40 }
 0x41c   : > { %v419_v32 = vpop.permute.xlu1 %418 }
 0x41d   : > { %v421_v33 = vmul.f32 %v419_v32, %v415_v31 }
 0x41f   : > { %v1141_v34 = vpop.eup %1140  ;;  %v422_v35 = vadd.f32 %v421_v33, %v1310_v36  ;;  %v624_v36 = vmul.f32 1.442695, %v623_v2 }
 0x420   : > { %v776_v37 = vsel %vm291_vm1, %v1141_v34, 0.0  ;;  %v781_v38 = vpack.c.bf16 %v1141_v34, %v1141_v34  ;;  %v1143_v42 = vpop.eup %1142 }
 0x421   : > { %423 = vst.msk [vmem:[#allocation2] sm:$0xff] %vm291_vm1, %v422_v35  ;;  %777 = vadd.xlane.f32.xlu0 %v776_v37  ;;  %1144 = vpow2.f32 %v624_v36  ;;  %v497_v46 = vmul.f32 %v1143_v42, %v496_v44 }
 0x422   : > { %1088 = vmatmul.mubr.msk.bf16.vlgmr.msra.gmra.mrb[12].mxu0 %vm291_vm1, %v781_v38  ;;  %1146 = vpow2.f32 %v763_v45 }
 0x428   : > { %v552_v18 = vld [vmem:[#allocation2] sm:$0xff] }
 0x42b   : > { %v1145_v49 = vpop.eup %1144 }
 0x42c   : > { %v636_v51 = vmul.f32 %v1145_v49, %v635_v50  ;;  %v1147_v54 = vpop.eup %1146 }
 0x42d   : > { %v775_v56 = vmul.f32 %v1147_v54, %v774_v55 }
 0x435   : > { %v358_v41 = vpop.xlane.xlu0 %357 }
 0x436   : > { %v359_v43 = vadd.f32 %v358_v41, %v355_v0 }
 0x437   : > { %555 = vperm.xlu0 %1129, %v1143_v42  }
 0x438   : > { %361 = vst.msk [vmem:[#allocation4] sm:$0xff] %vm278_vm2, %v359_v43 }
 0x43f   : > { %v848_v59 = vld [vmem:[#allocation4] sm:$0xff] }
 0x440   : > { %1148 = vrcp.f32 %v848_v59 }
 0x44a   : > { %v1149_v8 = vpop.eup %1148 }
 0x49e   : > { %v500_v47 = vpop.xlane.xlu1 %499 }
 0x49f   : > { %v501_v48 = vadd.f32 %v500_v47, %v497_v46 }
 0x4a1   : > { %502 = vst.msk [vmem:[#allocation4 + $0x8] sm:$0xff] %vm278_vm2, %v501_v48 }
 0x4a6   : > { %v639_v52 = vpop.xlane.xlu0 %638 }
 0x4a7   : > { %v640_v53 = vadd.f32 %v639_v52, %v636_v51 }
 0x4a8   : > { %v860_v2 = vld [vmem:[#allocation4 + $0x8] sm:$0xff] }
 0x4a9   : > { %641 = vst.msk [vmem:[#allocation4 + $0x10] sm:$0xff] %vm278_vm2, %v640_v53 }
 0x4ae   : > { %v778_v57 = vpop.xlane.xlu0 %777 }
 0x4af   : > { %v779_v58 = vadd.f32 %v778_v57, %v775_v56 }
 0x4b0   : > { %v872_v1 = vld [vmem:[#allocation4 + $0x10] sm:$0xff] }
 0x4b1   : > { %780 = vst.msk [vmem:[#allocation4 + $0x18] sm:$0xff] %vm278_vm2, %v779_v58  ;;  %1150 = vrcp.f32 %v872_v1 }
 0x4b2   : > { %1152 = vrcp.f32 %v860_v2 }
 0x4b6   : > { %v556_v17 = vpop.permute.xlu0 %555 }
 0x4b7   : > { %v558_v14 = vmul.f32 %v556_v17, %v552_v18 }
 0x4b8   : > { %v884_v7 = vld [vmem:[#allocation4 + $0x18] sm:$0xff] }
 0x4b9   : > { %1154 = vrcp.f32 %v884_v7 }
 0x4bb   : > { %v1151_v9 = vpop.eup %1150 }
 0x4bc   : > { %v1153_v15 = vpop.eup %1152 }
 0x4c3   : > { %v1155_v16 = vpop.eup %1154 }
 0x4e5   : > { %v546_v60 = vpop.f32.mrb[4].mxu0 }
 0x4e6   : > { %560 = vrot.lane.b32.xlu1 %v546_v60, %s1191_s6  ;;  %v1065_v61 = vpop.f32.mrb[5].mxu0 }
 0x4e7   : > { %v549_v62 = vpop.f32.mrb[6].mxu0 }
 0x4e8   : > { %v1066_v63 = vpop.f32.mrb[7].mxu0 }
 0x4ea   : > { %694 = vperm.xlu1 %1130, %v1145_v49  }
 0x4ed   : > { %v685_v3 = vpop.f32.mrb[8].mxu0 }
 0x4ee   : > { %833 = vperm.xlu1 %1130, %v1147_v54   ;;  %699 = vrot.lane.b32.xlu0 %v685_v3, %s1192_s7  ;;  %v1077_v4 = vpop.f32.mrb[9].mxu0 }
 0x4ef   : > { %v688_v5 = vpop.f32.mrb[10].mxu0 }
 0x4f0   : > { %v1078_v6 = vpop.f32.mrb[11].mxu0 }
 0x4f2   : > { %853 = vperm.xlu1 %1130, %v1149_v8  }
 0x4f5   : > { %v824_v10 = vpop.f32.mrb[12].mxu0 }
 0x4f6   : > { %877 = vperm.xlu1 %1130, %v1151_v9   ;;  %838 = vrot.lane.b32.xlu0 %v824_v10, %s1193_s8  ;;  %v1089_v11 = vpop.f32.mrb[13].mxu0 }
 0x4f7   : > { %v827_v12 = vpop.f32.mrb[14].mxu0 }
 0x4f8   : > { %v1090_v13 = vpop.f32.mrb[15].mxu0 }
 0x4fa   : > { %865 = vperm.xlu0 %1129, %v1153_v15  }
 0x4fe   : > { %889 = vperm.xlu0 %1129, %v1155_v16  }
 0x558   : > { %v561_v19 = vpop.permute.xlu1 %560 }
 0x559   : > { %v563_v20 = vadd.f32 %v561_v19, %v558_v14 }
 0x55b   : > { %565 = vst.msk [vmem:[#allocation2] sm:$0xff] %vm564_vm5, %v563_v20 }
 0x560   : > { %v700_v24 = vpop.permute.xlu0 %699 }
 0x562   : > { %v691_v21 = vld [vmem:[#allocation2] sm:$0xff] }
 0x568   : > { %v839_v29 = vpop.permute.xlu0 %838 }
 0x569   : > { %v695_v22 = vpop.permute.xlu1 %694 }
 0x56a   : > { %v697_v23 = vmul.f32 %v695_v22, %v691_v21 }
 0x56c   : > { %v702_v25 = vadd.f32 %v700_v24, %v697_v23 }
 0x56d   : > { %v834_v26 = vpop.permute.xlu1 %833 }
 0x56e   : > { %704 = vst.msk [vmem:[#allocation2] sm:$0xff] %vm703_vm6, %v702_v25 }
 0x571   : > { %v854_v31 = vpop.permute.xlu1 %853 }
 0x575   : > { %v830_v27 = vld [vmem:[#allocation2] sm:$0xff]  ;;  %v878_v34 = vpop.permute.xlu1 %877 }
 0x576   : > { %v836_v28 = vmul.f32 %v834_v26, %v830_v27 }
 0x578   : > { %v841_v30 = vadd.f32 %v839_v29, %v836_v28 }
 0x579   : > { %v866_v32 = vpop.permute.xlu0 %865 }
 0x57a   : > { %843 = vst.msk [vmem:[#allocation2] sm:$0xff] %vm842_vm7, %v841_v30 }
 0x57d   : > { %v890_v39 = vpop.permute.xlu0 %889 }
 0x581   : > { %v850_v33 = vld [vmem:[#allocation2] sm:$0xff] }
 0x582   : > { %v856_v35 = vmul.f32 %v854_v31, %v850_v33  ;;  %v880_v37 = vmul.f32 %v878_v34, %v850_v33  ;;  %v868_v38 = vmul.f32 %v866_v32, %v850_v33  ;;  %v892_v40 = vmul.f32 %v890_v39, %v850_v33 }
 0x584   : > { %v857_v0 = vpack.c.bf16 %v856_v35, %v856_v35  ;;  %v869_v41 = vpack.c.bf16 %v868_v38, %v868_v38  ;;  %v881_v42 = vpack.c.bf16 %v880_v37, %v880_v37  ;;  %v893_v43 = vpack.c.bf16 %v892_v40, %v892_v40 }
 0x586   : > { %859 = vst.msk [vmem:[%s270_s11] sm:$0xf] %vm858_vm8, %v857_v0 }
 0x587   : > { %871 = vst.msk [vmem:[%s270_s11] sm:$0xf] %vm870_vm9, %v869_v41 }
 0x588   : > { %883 = vst.msk [vmem:[%s270_s11] sm:$0xf] %vm882_vm10, %v881_v42 }
 0x589   : > { %895 = vst.msk [vmem:[%s270_s11] sm:$0xf] %vm894_vm11, %v893_v43 }
 0x58a PF: > { %s13_s14 = sadd.s32 1, %s1178_s14   ;;  %s1404_s12 = smov %s1174_s13 }
 0x58b   : > { %p10_p5 = scmp.ge.s32.totalorder %s13_s14, 4   ;;  %s1405_s13 = smov %s1407_s15 }
 0x58d   :  { %12 = sbr.rel (!%p10_p5) target bundleno = 2 (0x2), region = 82 }

// kernel: closed_call.35
= control target key start
LH: loop header
LB: loop body
LE: loop exit
PB: predicated region body
PF: predicated region fallthrough
CT: control target
= control target key end

     0   :  { %vm23_vm0 = vcmask 261120   ;;  %v202_v14 = vmov 0.0   ;;  %vm203_vm1 = vmmov 0   ;;  %vm162_vm6 = vcmask 519168   ;;  %s266_s0 = inlined_call_operand.vmem [shape: f32[16,32], index: 0, kind: input, shape index: {}]   ;;  %s267_s3 = inlined_call_operand.vmem [shape: bf16[32,64], index: 3, kind: input, shape index: {}]   ;;  %s268_s1 = inlined_call_operand.vmem [shape: f32[1,32], index: 1, kind: input, shape index: {}]   ;;  %s269_s2 = inlined_call_operand.vmem [shape: f32[1,32], index: 2, kind: input, shape index: {}]   ;;  %s270_s4 = inlined_call_operand.vmem [shape: f32[1,64], index: 4, kind: input, shape index: {}]   ;;  %s271_s5 = inlined_call_operand.vmem [shape: bf16[16,64], index: 5, kind: output, shape index: {}]  }
   0x1   :  { %v21_v0 = vld [vmem:[%s266_s0] sm:$0xff]  ;;  %v22_v1 = vld [vmem:[%s266_s0 + $0x8] sm:$0xff]  ;;  %182 = vmatprep.subr.bf16.mxu0 %v202_v14  ;;  %186 = vmatprep.mubr.msk.bf16.mxu0 %vm203_vm1, %v202_v14 }
   0x2   :  { %v24_v2 = vsel %vm23_vm0, %v21_v0, 0.0  ;;  %v27_v3 = vsel %vm23_vm0, %v22_v1, 0.0  ;;  %v192_v15 = vld [vmem:[%s267_s3] sm:$0xff]   ;;  %v193_v16 = vld [vmem:[%s267_s3 + $0x8] sm:$0xff]  }
   0x3   :  { %25 = vadd.xlane.f32.xlu0 %v24_v2  ;;  %183 = vmatpush3.bf16.msra.mxu0 %v192_v15  ;;  %v169_v33 = vld [vmem:[%s268_s1] ss:$0 sm:$0xff] }
   0x4   :  { %184 = vmatprep.subr.bf16.mxu0 %v202_v14  ;;  %v170_v39 = vld [vmem:[%s269_s2] ss:$0 sm:$0xff] }
   0x5   :  { %v171_v44 = vld [vmem:[%s270_s4] ss:$0 sm:$0xff] }
   0x7   :  { %28 = vadd.xlane.f32.xlu0 %v27_v3  ;;  %185 = vmatpush3.bf16.msra.mxu0 %v193_v16 }
  0x90   :  { %v26_v4 = vpop.xlane.xlu0 %25 }
  0x91   :  { %v31_v5 = vmul.f32 0.03125, %v26_v4 }
  0x93   :  { %v33_v6 = vsub.f32 %v21_v0, %v31_v5 }
  0x94   :  { %v29_v7 = vpop.xlane.xlu0 %28 }
  0x95   :  { %v32_v8 = vmul.f32 0.03125, %v29_v7  ;;  %v35_v9 = vmul.f32 %v33_v6, %v33_v6  ;;  %v71_v35 = vmul.f32 %v169_v33, %v33_v6 }
  0x97   :  { %v34_v10 = vsub.f32 %v22_v1, %v32_v8  ;;  %v37_v11 = vsel %vm23_vm0, %v35_v9, 0.0 }
  0x98   :  { %38 = vadd.xlane.f32.xlu1 %v37_v11 }
  0x99   :  { %v36_v12 = vmul.f32 %v34_v10, %v34_v10  ;;  %v72_v36 = vmul.f32 %v169_v33, %v34_v10 }
  0x9b   :  { %v40_v13 = vsel %vm23_vm0, %v36_v12, 0.0 }
  0x9c   :  { %41 = vadd.xlane.f32.xlu1 %v40_v13 }
 0x125   :  { %v39_v17 = vpop.xlane.xlu1 %38 }
 0x126   :  { %v44_v18 = vmul.f32 0.032258064, %v39_v17 }
 0x128   :  { %194 = vrsqrt.f32 %v44_v18  ;;  %vm48_vm2 = vcmp.eq.f32.partialorder %v44_v18, inf  ;;  %v51_v23 = vand.u32 2147483648, %v44_v18  ;;  %vm50_vm3 = vcmp.eq.f32.partialorder %v44_v18, 0.0 }
 0x129   :  { %v42_v19 = vpop.xlane.xlu1 %41 }
 0x12a   :  { %v45_v20 = vmul.f32 0.032258064, %v42_v19 }
 0x12c   :  { %196 = vrsqrt.f32 %v45_v20  ;;  %vm55_vm4 = vcmp.eq.f32.partialorder %v45_v20, inf  ;;  %v58_v29 = vand.u32 2147483648, %v45_v20  ;;  %vm57_vm5 = vcmp.eq.f32.partialorder %v45_v20, 0.0 }
 0x132   :  { %v195_v21 = vpop.eup %194 }
 0x133   :  { %v47_v22 = vmul.f32 %v195_v21, %v44_v18 }
 0x135   :  { %v49_v24 = vsel %vm48_vm2, %v44_v18, %v47_v22 }
 0x136   :  { %v197_v25 = vpop.eup %196  ;;  %v52_v26 = vsel %vm50_vm3, %v51_v23, %v49_v24 }
 0x137   :  { %v60_v27 = vadd.f32 1e-06, %v52_v26  ;;  %v54_v28 = vmul.f32 %v197_v25, %v45_v20 }
 0x139   :  { %198 = vrcp.f32 %v60_v27  ;;  %v56_v30 = vsel %vm55_vm4, %v45_v20, %v54_v28 }
 0x13a   :  { %v59_v31 = vsel %vm57_vm5, %v58_v29, %v56_v30 }
 0x13b   :  { %v61_v32 = vadd.f32 1e-06, %v59_v31 }
 0x13d   :  { %200 = vrcp.f32 %v61_v32 }
 0x143   :  { %v199_v34 = vpop.eup %198 }
 0x144   :  { %v73_v37 = vmul.f32 %v199_v34, %v71_v35 }
 0x146   :  { %v82_v41 = vadd.f32 %v170_v39, %v73_v37 }
 0x147   :  { %v201_v38 = vpop.eup %200 }
 0x148   :  { %v74_v40 = vmul.f32 %v201_v38, %v72_v36 }
 0x14a   :  { %v83_v42 = vadd.f32 %v170_v39, %v74_v40 }
 0x14c   :  { %v84_v43 = vpack.c.bf16 %v83_v42, %v82_v41 }
 0x14e   :  { %187 = vmatmul.mubr.msk.bf16.vlgmr.msra.gmra.mrb[0].mxu0 %vm23_vm0, %v84_v43 }
 0x221   :  { %v145_v45 = vpop.f32.mrb[0].mxu0 }
 0x222   :  { %v146_v46 = vadd.f32 %v171_v44, %v145_v45  ;;  %v188_v47 = vpop.f32.mrb[1].mxu0 }
 0x223   :  { %v148_v48 = vpop.f32.mrb[2].mxu0 }
 0x224   :  { %v152_v49 = vmax.f32 %v146_v46, 0.0  ;;  %v149_v50 = vadd.f32 %v171_v44, %v148_v48  ;;  %v189_v51 = vpop.f32.mrb[3].mxu0 }
 0x226   :  { %v177_v52 = vpack.c.bf16 %v152_v49, %v152_v49  ;;  %v153_v53 = vmax.f32 %v149_v50, 0.0 }
 0x228   :  { %163 = vst.msk [vmem:[%s271_s5] sm:$0xf] %vm162_vm6, %v177_v52  ;;  %v178_v54 = vpack.c.bf16 %v153_v53, %v153_v53 }
 0x22a   :  { %164 = vst.msk [vmem:[%s271_s5 + $0x4] sm:$0xf] %vm162_vm6, %v178_v54 }

// kernel: closed_call.33
= control target key start
LH: loop header
LB: loop body
LE: loop exit
PB: predicated region body
PF: predicated region fallthrough
CT: control target
= control target key end

     0   :  { %s1197_s12 = smov 0   ;;  %s1199_s13 = smov 0   ;;  %s1382_s0 = inlined_call_operand.vmem [shape: bf16[2,8,32], index: 0, kind: input, shape index: {}]   ;;  %s1383_s1 = inlined_call_operand.vmem [shape: bf16[2,8,64], index: 1, kind: input, shape index: {}]   ;;  %s1384_s2 = inlined_call_operand.vmem [shape: bf16[2,1,8], index: 2, kind: input, shape index: {}]   ;;  %s1385_s3 = inlined_call_operand.vmem [shape: bf16[2,8,32], index: 3, kind: output, shape index: {}]  }
   0x1   :  { %s1201_s14 = smov 0  }
   0x2 LB: > { %s32_s15 = sadd.s32 1, %s1157_s13  ;;  %p994_p0 = scmp.ge.s32.totalorder %s1161_s14, 1  ;;  %s1161_s14 = sphi %s1201_s14, %s13_s14   ;;  %s1157_s13 = sphi %s1199_s13, %s1387_s13   ;;  %s1153_s12 = sphi %s1197_s12, %s1386_s12  }
   0x3   : > { %p34_p1 = scmp.ge.s32.totalorder %s32_s15, 2  ;;  %p189_p2 = scmp.lt.s32.totalorder %s1161_s14, 3 }
   0x5   : > { %s1389_s15 = smov (%p34_p1, %s32_s15), 0  ;;  %p190_p3 = pnand %p994_p0, %p189_p2 }
   0x6   : > { %p230_p4 = scmp.lt.s32.totalorder (!%p190_p3), %s1153_s12, 1  ;;  %v1163_v0 = vmov (!%p190_p3), 0.0   ;;  %vm1164_vm0 = vmmov (!%p190_p3), 0   ;;  %vm281_vm1 = vcmask (!%p190_p3), 64512   ;;  %vm264_vm2 = vcmask (!%p190_p3), 7168   ;;  %s1167_s26 = smov (!%p190_p3), 96  }
   0x7   : > { %193 = sbr.rel (%p190_p3) target bundleno = 1418 (0x58a), region = 32  ;;  %1026 = vmatprep.subr.bf16.mxu0 (!%p190_p3), %v1163_v0  ;;  %1028 = vmatprep.mubr.msk.bf16.mxu0 (!%p190_p3), %vm1164_vm0, %v1163_v0  ;;  %v1165_v4 = vmov (!%p190_p3), -inf   ;;  %269 = vst.msk [vmem:[#allocation4] sm:$0xff] (!%p190_p3), %vm264_vm2, %v1163_v0  ;;  %270 = vst.msk [vmem:[#allocation4 + $0x8] sm:$0xff] (!%p190_p3), %vm264_vm2, %v1163_v0  ;;  %v277_v5 = vlaneseq (!%p190_p3)  ;;  %v1166_v17 = vmov (!%p190_p3), 0   ;;  %s1168_s27 = smov (!%p190_p3), 120  }
   0x8   : > { %1032 = vmatprep.subr.bf16.mxu1 (!%p190_p3), %v1163_v0  ;;  %1034 = vmatprep.mubr.msk.bf16.mxu1 (!%p190_p3), %vm1164_vm0, %v1163_v0  ;;  %265 = vst.msk [vmem:[#allocation3] sm:$0xff] (!%p190_p3), %vm264_vm2, %v1165_v4  ;;  %266 = vst.msk [vmem:[#allocation3 + $0x8] sm:$0xff] (!%p190_p3), %vm264_vm2, %v1165_v4  ;;  %s1169_s28 = smov (!%p190_p3), 112   ;;  %s1170_s29 = smov (!%p190_p3), 104   ;;  %vm361_vm3 = vcmask (!%p190_p3), 1043456   ;;  %vm262_vm4 = vcmask (!%p190_p3), 261120  }
   0x9   : > { %267 = vst.msk [vmem:[#allocation3 + $0x10] sm:$0xff] (!%p190_p3), %vm264_vm2, %v1165_v4  ;;  %268 = vst.msk [vmem:[#allocation3 + $0x18] sm:$0xff] (!%p190_p3), %vm264_vm2, %v1165_v4  ;;  %v278_v6 = vshrl.u32 (!%p190_p3), %v277_v5, 7  ;;  %1112 = vset.pattern.permute.xlu0 (!%p190_p3), %v1166_v17  ;;  %1113 = vset.pattern.permute.xlu1 (!%p190_p3), %v1166_v17  ;;  %s1171_s30 = smov (!%p190_p3), 88   ;;  %s1172_s4 = smov (!%p190_p3), 80   ;;  %vm554_vm5 = vcmask (!%p190_p3), 130112  }
   0xa   : > { %271 = vst.msk [vmem:[#allocation4 + $0x10] sm:$0xff] (!%p190_p3), %vm264_vm2, %v1163_v0  ;;  %272 = vst.msk [vmem:[#allocation4 + $0x18] sm:$0xff] (!%p190_p3), %vm264_vm2, %v1163_v0  ;;  %s1173_s5 = smov (!%p190_p3), 72   ;;  %s1174_s6 = smov (!%p190_p3), 8   ;;  %vm693_vm6 = vcmask (!%p190_p3), 195712   ;;  %vm832_vm7 = vcmask (!%p190_p3), 261312  }
   0xb   : > { %v279_v9 = vsub.s32 (!%p190_p3), 0, %v278_v6  ;;  %263 = vst.msk [vmem:[#allocation2] sm:$0xff] (!%p190_p3), %vm262_vm4, %v1163_v0  ;;  %s1175_s7 = smov (!%p190_p3), 16   ;;  %s1176_s8 = smov (!%p190_p3), 24   ;;  %vm848_vm8 = vcmask (!%p190_p3), 60416   ;;  %vm860_vm9 = vcmask (!%p190_p3), 126016  }
   0xc   : > { %vm872_vm10 = vcmask (!%p190_p3), 191616   ;;  %vm884_vm11 = vcmask (!%p190_p3), 257216  }
   0xe   : > { %s1391_s12 = smov (!%p230_p4, %s1153_s12), 1 }
   0xf   : > { %s1221_s16 = sshll.u32 %s1391_s12, 2  ;;  %s249_s25 = scalar_lea.vmem %s1384_s2, %s1391_s12  ;;  %v1261_v20 = vld [vmem:[#allocation3] sm:$0xff]  ;;  %v1300_v62 = vld [vmem:[#allocation3 + $0x8] sm:$0xff] }
  0x10   : > { %s243_s19 = scalar_lea.vmem %s1383_s1, %s1221_s16  ;;  %s236_s22 = scalar_lea.vmem %s1382_s0, %s1221_s16  ;;  %v275_v7 = vld [vmem:[%s249_s25] sm:$0x1] }
  0x11   : > { %v274_v1 = vld [vmem:[%s243_s19] sm:$0xf]  ;;  %v276_v8 = vunpack.c.l.bf16 %v275_v7  ;;  %s256_s11 = scalar_lea.vmem %s1385_s3, %s1221_s16 }
  0x12   : > { %v286_v2 = vsel %vm281_vm1, %v274_v1, 0  ;;  %v273_v3 = vld [vmem:[%s236_s22] sm:$0xf]  ;;  %v1255_v18 = vcombine.low %v274_v1, %v274_v1 }
  0x13   : > { %1027 = vmatpush3.bf16.xpose.msra.mxu0 %v286_v2  ;;  %v1251_v10 = vrot.slane %v276_v8, %v279_v9  ;;  %v1001_v19 = vcombine.low %v273_v3, %v273_v3  ;;  %v1321_v7 = vld [vmem:[#allocation3 + $0x18] sm:$0xff] }
  0x14   : > { %1044 = vmatprep.subr.bf16.mxu0 %v1163_v0  ;;  %356 = vrot.lane.b32.xlu1 %v1255_v18, %s1167_s26 }
  0x18   : > { %420 = vrot.lane.b32.xlu1 %v1255_v18, %s1168_s27 }
  0x1a   : > { %1029 = vmatmul.mubr.msk.bf16.vlgmr.msra.gmra.mrb[0].mxu0 %vm281_vm1, %v273_v3  ;;  %v1310_v3 = vld [vmem:[#allocation3 + $0x10] sm:$0xff] }
  0x1b   : > { %1046 = vmatprep.mubr.msk.bf16.mxu0 %vm1164_vm0, %v1163_v0 }
  0x1c   : > { %418 = vrot.lane.b32.xlu1 %v1001_v19, %s1168_s27 }
  0x20   : > { %559 = vrot.lane.b32.xlu1 %v1255_v18, %s1169_s28 }
  0x24   : > { %557 = vrot.lane.b32.xlu1 %v1001_v19, %s1169_s28 }
  0x28   : > { %698 = vrot.lane.b32.xlu1 %v1255_v18, %s1170_s29 }
  0x2c   : > { %696 = vrot.lane.b32.xlu1 %v1001_v19, %s1170_s29 }
  0x86   : > { %v357_v24 = vpop.permute.xlu1 %356 }
  0x87   : > { %v363_v25 = vsel %vm361_vm3, %v357_v24, 0 }
  0x88   : > { %1033 = vmatpush3.bf16.msra.mxu1 %v363_v25 }
  0x89   : > { %1038 = vmatprep.subr.bf16.mxu1 %v1163_v0 }
  0x8a   : > { %v421_v29 = vpop.permute.xlu1 %420 }
  0x8b   : > { %v426_v32 = vsel %vm281_vm1, %v421_v29, 0 }
  0x8e   : > { %v419_v30 = vpop.permute.xlu1 %418 }
  0x92   : > { %v560_v34 = vpop.permute.xlu1 %559 }
  0x93   : > { %v565_v36 = vsel %vm281_vm1, %v560_v34, 0 }
  0x96   : > { %v558_v35 = vpop.permute.xlu1 %557 }
  0x9a   : > { %v699_v37 = vpop.permute.xlu1 %698 }
  0x9b   : > { %v704_v38 = vsel %vm281_vm1, %v699_v37, 0 }
  0x9e   : > { %v697_v39 = vpop.permute.xlu1 %696 }
  0xed   : > { %v322_v11 = vpop.f32.mrb[0].mxu0 }
  0xee   : > { %v323_v12 = vadd.f32 %v322_v11, %v1251_v10  ;;  %v1030_v13 = vpop.f32.mrb[1].mxu0 }
  0xef   : > { %v325_v14 = vpop.f32.mrb[2].mxu0 }
  0xf0   : > { %v1031_v15 = vpop.f32.mrb[3].mxu0  ;;  %v329_v16 = vsel %vm281_vm1, %v323_v12, -inf }
  0xf1   : > { %330 = vmax.xlane.f32.xlu0 %v329_v16 }
 0x17e   : > { %v331_v21 = vpop.xlane.xlu0 %330 }
 0x17f   : > { %v1264_v22 = vmax.f32 %v1261_v20, %v331_v21 }
 0x181   : > { %v333_v23 = vsub.f32 %v1261_v20, %v1264_v22  ;;  %414 = vst.msk [vmem:[#allocation3] sm:$0xff] %vm264_vm2, %v1264_v22  ;;  %338 = vperm.xlu0 %1112, %v1264_v22  }
 0x183   : > { %v334_v8 = vmul.f32 1.442695, %v333_v23 }
 0x200   : > { %v339_v26 = vpop.permute.xlu0 %338 }
 0x201   : > { %v341_v27 = vsub.f32 %v323_v12, %v339_v26 }
 0x203   : > { %v342_v28 = vmul.f32 1.442695, %v341_v27 }
 0x205   : > { %1115 = vpow2.f32 %v342_v28 }
 0x206   : > { %1117 = vpow2.f32 %v334_v8 }
 0x20f   : > { %v1273_v31 = vpop.eup %1115 }
 0x210   : > { %v352_v33 = vpack.c.bf16 %v1273_v31, %v1273_v31  ;;  %v1118_v12 = vpop.eup %1117  ;;  %v346_v13 = vsel %vm281_vm1, %v1273_v31, 0.0 }
 0x212   : > { %1035 = vmatmul.mubr.msk.bf16.vlgmr.msra.gmra.mrb[0].mxu1 %vm281_vm1, %v352_v33 }
 0x213   : > { %1039 = vmatpush3.bf16.xpose.msra.mxu1 %v426_v32  ;;  %1040 = vmatprep.mubr.msk.bf16.mxu1 %vm1164_vm0, %v1163_v0 }
 0x214   : > { %1050 = vmatprep.subr.bf16.mxu1 %v1163_v0 }
 0x21a   : > { %1041 = vmatmul.mubr.msk.bf16.vlgmr.msra.gmra.mrb[4].mxu1 %vm281_vm1, %v419_v30 }
 0x21b   : > { %1051 = vmatpush3.bf16.xpose.msra.mxu1 %v565_v36  ;;  %1052 = vmatprep.mubr.msk.bf16.mxu1 %vm1164_vm0, %v1163_v0 }
 0x21c   : > { %1062 = vmatprep.subr.bf16.mxu1 %v1163_v0 }
 0x222   : > { %1053 = vmatmul.mubr.msk.bf16.vlgmr.msra.gmra.mrb[8].mxu1 %vm281_vm1, %v558_v35  ;;  %v405_v35 = vld [vmem:[#allocation2] sm:$0xff] }
 0x223   : > { %1063 = vmatpush3.bf16.xpose.msra.mxu1 %v704_v38  ;;  %1064 = vmatprep.mubr.msk.bf16.mxu1 %vm1164_vm0, %v1163_v0 }
 0x22a   : > { %1065 = vmatmul.mubr.msk.bf16.vlgmr.msra.gmra.mrb[12].mxu1 %vm281_vm1, %v697_v39 }
 0x2e5   : > { %v1292_v40 = vpop.f32.mrb[0].mxu1 }
 0x2e6   : > { %v1036_v41 = vpop.f32.mrb[1].mxu1 }
 0x2e7   : > { %v402_v42 = vpop.f32.mrb[2].mxu1 }
 0x2e8   : > { %v1037_v43 = vpop.f32.mrb[3].mxu1 }
 0x2ed   : > { %v462_v44 = vpop.f32.mrb[4].mxu1 }
 0x2ee   : > { %v463_v45 = vadd.f32 %v462_v44, %v1251_v10  ;;  %v1042_v46 = vpop.f32.mrb[5].mxu1  ;;  %v344_v44 = vld [vmem:[#allocation4] sm:$0xff] }
 0x2ef   : > { %v465_v47 = vpop.f32.mrb[6].mxu1 }
 0x2f0   : > { %v1043_v48 = vpop.f32.mrb[7].mxu1  ;;  %v470_v49 = vsel %vm281_vm1, %v463_v45, -inf }
 0x2f1   : > { %471 = vmax.xlane.f32.xlu1 %v470_v49  ;;  %v486_v48 = vld [vmem:[#allocation4 + $0x8] sm:$0xff] }
 0x2f5   : > { %v601_v50 = vpop.f32.mrb[8].mxu1 }
 0x2f6   : > { %v602_v51 = vadd.f32 %v601_v50, %v1251_v10  ;;  %v1054_v52 = vpop.f32.mrb[9].mxu1 }
 0x2f7   : > { %v604_v53 = vpop.f32.mrb[10].mxu1 }
 0x2f8   : > { %v1055_v54 = vpop.f32.mrb[11].mxu1  ;;  %v609_v55 = vsel %vm281_vm1, %v602_v51, -inf }
 0x2f9   : > { %610 = vmax.xlane.f32.xlu0 %v609_v55  ;;  %v625_v54 = vld [vmem:[#allocation4 + $0x10] sm:$0xff] }
 0x2fd   : > { %v740_v56 = vpop.f32.mrb[12].mxu1 }
 0x2fe   : > { %v741_v57 = vadd.f32 %v740_v56, %v1251_v10  ;;  %v1066_v58 = vpop.f32.mrb[13].mxu1 }
 0x2ff   : > { %v743_v59 = vpop.f32.mrb[14].mxu1 }
 0x300   : > { %v1067_v60 = vpop.f32.mrb[15].mxu1  ;;  %v748_v61 = vsel %vm281_vm1, %v741_v57, -inf  ;;  %v764_v59 = vld [vmem:[#allocation4 + $0x18] sm:$0xff] }
 0x301   : > { %749 = vmax.xlane.f32.xlu1 %v748_v61 }
 0x37e   : > { %v472_v63 = vpop.xlane.xlu1 %471 }
 0x37f   : > { %v1303_v1 = vmax.f32 %v1300_v62, %v472_v63 }
 0x381   : > { %v474_v2 = vsub.f32 %v1300_v62, %v1303_v1  ;;  %556 = vst.msk [vmem:[#allocation3 + $0x8] sm:$0xff] %vm264_vm2, %v1303_v1  ;;  %479 = vperm.xlu1 %1113, %v1303_v1  }
 0x383   : > { %v475_v43 = vmul.f32 1.442695, %v474_v2 }
 0x385   : > { %494 = vrot.lane.b32.xlu1 %v1255_v18, %s1171_s30 }
 0x386   : > { %v611_v4 = vpop.xlane.xlu0 %610 }
 0x387   : > { %v1314_v5 = vmax.f32 %v1310_v3, %v611_v4 }
 0x389   : > { %v613_v6 = vsub.f32 %v1310_v3, %v1314_v5  ;;  %695 = vst.msk [vmem:[#allocation3 + $0x10] sm:$0xff] %vm264_vm2, %v1314_v5  ;;  %618 = vperm.xlu0 %1112, %v1314_v5  }
 0x38e   : > { %v750_v9 = vpop.xlane.xlu1 %749 }
 0x38f   : > { %v1327_v10 = vmax.f32 %v1321_v7, %v750_v9 }
 0x391   : > { %v752_v11 = vsub.f32 %v1321_v7, %v1327_v10  ;;  %834 = vst.msk [vmem:[#allocation3 + $0x18] sm:$0xff] %vm264_vm2, %v1327_v10  ;;  %757 = vperm.xlu1 %1113, %v1327_v10  }
 0x393   : > { %v753_v49 = vmul.f32 1.442695, %v752_v11 }
 0x395   : > { %633 = vrot.lane.b32.xlu1 %v1255_v18, %s1172_s4 }
 0x399   : > { %772 = vrot.lane.b32.xlu1 %v1255_v18, %s1173_s5 }
 0x39d   : > { %408 = vperm.xlu1 %1113, %v1118_v12  }
 0x3a8   : > { %347 = vadd.xlane.f32.xlu0 %v346_v13 }
 0x400   : > { %v480_v14 = vpop.permute.xlu1 %479 }
 0x401   : > { %v482_v15 = vsub.f32 %v463_v45, %v480_v14 }
 0x403   : > { %v483_v16 = vmul.f32 1.442695, %v482_v15 }
 0x404   : > { %v495_v17 = vpop.permute.xlu1 %494 }
 0x405   : > { %1119 = vpow2.f32 %v483_v16  ;;  %v500_v19 = vsel %vm361_vm3, %v495_v17, 0 }
 0x406   : > { %1045 = vmatpush3.bf16.msra.mxu0 %v500_v19 }
 0x407   : > { %1056 = vmatprep.subr.bf16.mxu0 %v1163_v0 }
 0x408   : > { %v619_v20 = vpop.permute.xlu0 %618 }
 0x409   : > { %v621_v21 = vsub.f32 %v602_v51, %v619_v20 }
 0x40b   : > { %v622_v22 = vmul.f32 1.442695, %v621_v21 }
 0x40d   : > { %1121 = vpow2.f32 %v622_v22 }
 0x40f   : > { %v1120_v18 = vpop.eup %1119 }
 0x410   : > { %v758_v23 = vpop.permute.xlu1 %757  ;;  %v488_v24 = vsel %vm281_vm1, %v1120_v18, 0.0  ;;  %v493_v25 = vpack.c.bf16 %v1120_v18, %v1120_v18 }
 0x411   : > { %v760_v26 = vsub.f32 %v741_v57, %v758_v23  ;;  %489 = vadd.xlane.f32.xlu1 %v488_v24 }
 0x412   : > { %1047 = vmatmul.mubr.msk.bf16.vlgmr.msra.gmra.mrb[4].mxu0 %vm281_vm1, %v493_v25 }
 0x413   : > { %v761_v27 = vmul.f32 1.442695, %v760_v26  ;;  %1058 = vmatprep.mubr.msk.bf16.mxu0 %vm1164_vm0, %v1163_v0 }
 0x414   : > { %v634_v28 = vpop.permute.xlu1 %633 }
 0x415   : > { %1123 = vpow2.f32 %v761_v27  ;;  %v639_v29 = vsel %vm361_vm3, %v634_v28, 0 }
 0x416   : > { %1057 = vmatpush3.bf16.msra.mxu0 %v639_v29  ;;  %1125 = vpow2.f32 %v475_v43 }
 0x417   : > { %v1122_v30 = vpop.eup %1121  ;;  %1068 = vmatprep.subr.bf16.mxu0 %v1163_v0 }
 0x418   : > { %v773_v31 = vpop.permute.xlu1 %772  ;;  %v627_v32 = vsel %vm281_vm1, %v1122_v30, 0.0  ;;  %v632_v33 = vpack.c.bf16 %v1122_v30, %v1122_v30 }
 0x419   : > { %v778_v34 = vsel %vm361_vm3, %v773_v31, 0  ;;  %628 = vadd.xlane.f32.xlu0 %v627_v32 }
 0x41a   : > { %1059 = vmatmul.mubr.msk.bf16.vlgmr.msra.gmra.mrb[8].mxu0 %vm281_vm1, %v632_v33 }
 0x41b   : > { %1069 = vmatpush3.bf16.msra.mxu0 %v778_v34  ;;  %1070 = vmatprep.mubr.msk.bf16.mxu0 %vm1164_vm0, %v1163_v0  ;;  %v345_v0 = vmul.f32 %v1118_v12, %v344_v44 }
 0x41c   : > { %v409_v36 = vpop.permute.xlu1 %408 }
 0x41d   : > { %v411_v37 = vmul.f32 %v409_v36, %v405_v35 }
 0x41f   : > { %v1124_v38 = vpop.eup %1123  ;;  %v412_v39 = vadd.f32 %v411_v37, %v1292_v40  ;;  %v614_v40 = vmul.f32 1.442695, %v613_v6 }
 0x420   : > { %v766_v41 = vsel %vm281_vm1, %v1124_v38, 0.0  ;;  %v771_v42 = vpack.c.bf16 %v1124_v38, %v1124_v38  ;;  %v1126_v46 = vpop.eup %1125 }
 0x421   : > { %413 = vst.msk [vmem:[#allocation2] sm:$0xff] %vm281_vm1, %v412_v39  ;;  %767 = vadd.xlane.f32.xlu0 %v766_v41  ;;  %1127 = vpow2.f32 %v614_v40  ;;  %v487_v50 = vmul.f32 %v1126_v46, %v486_v48 }
 0x422   : > { %1071 = vmatmul.mubr.msk.bf16.vlgmr.msra.gmra.mrb[12].mxu0 %vm281_vm1, %v771_v42  ;;  %1129 = vpow2.f32 %v753_v49 }
 0x428   : > { %v542_v22 = vld [vmem:[#allocation2] sm:$0xff] }
 0x42b   : > { %v1128_v53 = vpop.eup %1127 }
 0x42c   : > { %v626_v55 = vmul.f32 %v1128_v53, %v625_v54  ;;  %v1130_v58 = vpop.eup %1129 }
 0x42d   : > { %v765_v60 = vmul.f32 %v1130_v58, %v764_v59 }
 0x435   : > { %v348_v45 = vpop.xlane.xlu0 %347 }
 0x436   : > { %v349_v47 = vadd.f32 %v348_v45, %v345_v0 }
 0x437   : > { %545 = vperm.xlu0 %1112, %v1126_v46  }
 0x438   : > { %351 = vst.msk [vmem:[#allocation4] sm:$0xff] %vm264_vm2, %v349_v47 }
 0x43f   : > { %v838_v63 = vld [vmem:[#allocation4] sm:$0xff] }
 0x440   : > { %1131 = vrcp.f32 %v838_v63 }
 0x44a   : > { %v1132_v12 = vpop.eup %1131 }
 0x49e   : > { %v490_v51 = vpop.xlane.xlu1 %489 }
 0x49f   : > { %v491_v52 = vadd.f32 %v490_v51, %v487_v50 }
 0x4a1   : > { %492 = vst.msk [vmem:[#allocation4 + $0x8] sm:$0xff] %vm264_vm2, %v491_v52 }
 0x4a6   : > { %v629_v56 = vpop.xlane.xlu0 %628 }
 0x4a7   : > { %v630_v57 = vadd.f32 %v629_v56, %v626_v55 }
 0x4a8   : > { %v850_v6 = vld [vmem:[#allocation4 + $0x8] sm:$0xff] }
 0x4a9   : > { %631 = vst.msk [vmem:[#allocation4 + $0x10] sm:$0xff] %vm264_vm2, %v630_v57 }
 0x4ae   : > { %v768_v61 = vpop.xlane.xlu0 %767 }
 0x4af   : > { %v769_v62 = vadd.f32 %v768_v61, %v765_v60 }
 0x4b0   : > { %v862_v5 = vld [vmem:[#allocation4 + $0x10] sm:$0xff] }
 0x4b1   : > { %770 = vst.msk [vmem:[#allocation4 + $0x18] sm:$0xff] %vm264_vm2, %v769_v62  ;;  %1133 = vrcp.f32 %v862_v5 }
 0x4b2   : > { %1135 = vrcp.f32 %v850_v6 }
 0x4b6   : > { %v546_v21 = vpop.permute.xlu0 %545 }
 0x4b7   : > { %v548_v18 = vmul.f32 %v546_v21, %v542_v22 }
 0x4b8   : > { %v874_v11 = vld [vmem:[#allocation4 + $0x18] sm:$0xff] }
 0x4b9   : > { %1137 = vrcp.f32 %v874_v11 }
 0x4bb   : > { %v1134_v13 = vpop.eup %1133 }
 0x4bc   : > { %v1136_v19 = vpop.eup %1135 }
 0x4c3   : > { %v1138_v20 = vpop.eup %1137 }
 0x4e5   : > { %v536_v1 = vpop.f32.mrb[4].mxu0 }
 0x4e6   : > { %550 = vrot.lane.b32.xlu1 %v536_v1, %s1174_s6  ;;  %v1048_v2 = vpop.f32.mrb[5].mxu0 }
 0x4e7   : > { %v539_v3 = vpop.f32.mrb[6].mxu0 }
 0x4e8   : > { %v1049_v4 = vpop.f32.mrb[7].mxu0 }
 0x4ea   : > { %684 = vperm.xlu1 %1113, %v1128_v53  }
 0x4ed   : > { %v675_v7 = vpop.f32.mrb[8].mxu0 }
 0x4ee   : > { %823 = vperm.xlu1 %1113, %v1130_v58   ;;  %689 = vrot.lane.b32.xlu0 %v675_v7, %s1175_s7  ;;  %v1060_v8 = vpop.f32.mrb[9].mxu0 }
 0x4ef   : > { %v678_v9 = vpop.f32.mrb[10].mxu0 }
 0x4f0   : > { %v1061_v10 = vpop.f32.mrb[11].mxu0 }
 0x4f2   : > { %843 = vperm.xlu1 %1113, %v1132_v12  }
 0x4f5   : > { %v814_v14 = vpop.f32.mrb[12].mxu0 }
 0x4f6   : > { %867 = vperm.xlu1 %1113, %v1134_v13   ;;  %828 = vrot.lane.b32.xlu0 %v814_v14, %s1176_s8  ;;  %v1072_v15 = vpop.f32.mrb[13].mxu0 }
 0x4f7   : > { %v817_v16 = vpop.f32.mrb[14].mxu0 }
 0x4f8   : > { %v1073_v17 = vpop.f32.mrb[15].mxu0 }
 0x4fa   : > { %855 = vperm.xlu0 %1112, %v1136_v19  }
 0x4fe   : > { %879 = vperm.xlu0 %1112, %v1138_v20  }
 0x558   : > { %v551_v23 = vpop.permute.xlu1 %550 }
 0x559   : > { %v553_v24 = vadd.f32 %v551_v23, %v548_v18 }
 0x55b   : > { %555 = vst.msk [vmem:[#allocation2] sm:$0xff] %vm554_vm5, %v553_v24 }
 0x560   : > { %v690_v28 = vpop.permute.xlu0 %689 }
 0x562   : > { %v681_v25 = vld [vmem:[#allocation2] sm:$0xff] }
 0x568   : > { %v829_v33 = vpop.permute.xlu0 %828 }
 0x569   : > { %v685_v26 = vpop.permute.xlu1 %684 }
 0x56a   : > { %v687_v27 = vmul.f32 %v685_v26, %v681_v25 }
 0x56c   : > { %v692_v29 = vadd.f32 %v690_v28, %v687_v27 }
 0x56d   : > { %v824_v30 = vpop.permute.xlu1 %823 }
 0x56e   : > { %694 = vst.msk [vmem:[#allocation2] sm:$0xff] %vm693_vm6, %v692_v29 }
 0x571   : > { %v844_v35 = vpop.permute.xlu1 %843 }
 0x575   : > { %v820_v31 = vld [vmem:[#allocation2] sm:$0xff]  ;;  %v868_v38 = vpop.permute.xlu1 %867 }
 0x576   : > { %v826_v32 = vmul.f32 %v824_v30, %v820_v31 }
 0x578   : > { %v831_v34 = vadd.f32 %v829_v33, %v826_v32 }
 0x579   : > { %v856_v36 = vpop.permute.xlu0 %855 }
 0x57a   : > { %833 = vst.msk [vmem:[#allocation2] sm:$0xff] %vm832_vm7, %v831_v34 }
 0x57d   : > { %v880_v43 = vpop.permute.xlu0 %879 }
 0x581   : > { %v840_v37 = vld [vmem:[#allocation2] sm:$0xff] }
 0x582   : > { %v846_v39 = vmul.f32 %v844_v35, %v840_v37  ;;  %v870_v41 = vmul.f32 %v868_v38, %v840_v37  ;;  %v858_v42 = vmul.f32 %v856_v36, %v840_v37  ;;  %v882_v44 = vmul.f32 %v880_v43, %v840_v37 }
 0x584   : > { %v847_v0 = vpack.c.bf16 %v846_v39, %v846_v39  ;;  %v859_v45 = vpack.c.bf16 %v858_v42, %v858_v42  ;;  %v871_v46 = vpack.c.bf16 %v870_v41, %v870_v41  ;;  %v883_v47 = vpack.c.bf16 %v882_v44, %v882_v44 }
 0x586   : > { %849 = vst.msk [vmem:[%s256_s11] sm:$0xf] %vm848_vm8, %v847_v0 }
 0x587   : > { %861 = vst.msk [vmem:[%s256_s11] sm:$0xf] %vm860_vm9, %v859_v45 }
 0x588   : > { %873 = vst.msk [vmem:[%s256_s11] sm:$0xf] %vm872_vm10, %v871_v46 }
 0x589   : > { %885 = vst.msk [vmem:[%s256_s11] sm:$0xf] %vm884_vm11, %v883_v47 }
 0x58a PF: > { %s13_s14 = sadd.s32 1, %s1161_s14   ;;  %s1386_s12 = smov %s1157_s13 }
 0x58b   : > { %p10_p5 = scmp.ge.s32.totalorder %s13_s14, 4   ;;  %s1387_s13 = smov %s1389_s15 }
 0x58d   :  { %12 = sbr.rel (!%p10_p5) target bundleno = 2 (0x2), region = 82 }

// kernel: decoder_forward.1
= control target key start
LH: loop header
LB: loop body
LE: loop exit
PB: predicated region body
PF: predicated region fallthrough
CT: control target
= control target key end

     0   :  { %vm17_vm0 = vcmask 261120   ;;  %s186_s0 = inlined_call_operand.vmem [shape: f32[16,32], index: 0, kind: input, shape index: {}]   ;;  %s187_s1 = inlined_call_operand.vmem [shape: f32[1,32], index: 1, kind: input, shape index: {}]   ;;  %s188_s2 = inlined_call_operand.vmem [shape: f32[1,32], index: 2, kind: input, shape index: {}]   ;;  %s189_s3 = inlined_call_operand.hbm [shape: f32[16,32], index: 3, kind: output, shape index: {}]  }
   0x1   :  { %v15_v0 = vld [vmem:[%s186_s0] sm:$0xff]  ;;  %v16_v1 = vld [vmem:[%s186_s0 + $0x8] sm:$0xff] }
   0x2   :  { %v18_v2 = vsel %vm17_vm0, %v15_v0, 0.0 }
   0x3   :  { %8 = vsyncpa [#allocation3], 0  ;;  %19 = vadd.xlane.f32.xlu0 %v18_v2  ;;  %v21_v3 = vsel %vm17_vm0, %v16_v1, 0.0  ;;  %v96_v30 = vld [vmem:[%s187_s1] ss:$0 sm:$0xff]  ;;  %s133_s19 = smov [#allocation2]  }
   0x4   :  { %v97_v33 = vld [vmem:[%s188_s2] ss:$0 sm:$0xff]  ;;  %s85_s20 = sshll.u32 %s133_s19, 4  ;;  %s86_s20 = int_to_ptr.vmem [resolvable:$true] %s85_s20 }
   0x5   :  { %s109_s1 = scalar_lea.vmem %s86_s20, 256  ;;  %p114_p1 = scmp.lt.s32.totalorder %s86_s20, %s86_s20 }
   0x6   :  { %p110_p0 = scmp.ne.s32.totalorder %s86_s20, %s109_s1  ;;  %p115_p2 = scmp.lt.s32.totalorder %s109_s1, %s109_s1 }
   0x7   :  { %22 = vadd.xlane.f32.xlu0 %v21_v3 }
   0x8   :  { %p116_p3 = por %p115_p2, %p114_p1 }
   0xa   :  { %p117_p4 = pnand %p116_p3, %p110_p0 }
  0x90   :  { %v20_v4 = vpop.xlane.xlu0 %19 }
  0x91   :  { %v25_v5 = vmul.f32 0.03125, %v20_v4 }
  0x93   :  { %v27_v6 = vsub.f32 %v15_v0, %v25_v5 }
  0x94   :  { %v23_v7 = vpop.xlane.xlu0 %22 }
  0x95   :  { %v26_v8 = vmul.f32 0.03125, %v23_v7  ;;  %v29_v9 = vmul.f32 %v27_v6, %v27_v6  ;;  %v47_v31 = vmul.f32 %v96_v30, %v27_v6 }
  0x97   :  { %v28_v10 = vsub.f32 %v16_v1, %v26_v8  ;;  %v31_v11 = vsel %vm17_vm0, %v29_v9, 0.0 }
  0x98   :  { %32 = vadd.xlane.f32.xlu1 %v31_v11 }
  0x99   :  { %v30_v12 = vmul.f32 %v28_v10, %v28_v10  ;;  %v48_v35 = vmul.f32 %v96_v30, %v28_v10 }
  0x9b   :  { %v34_v13 = vsel %vm17_vm0, %v30_v12, 0.0 }
  0x9c   :  { %35 = vadd.xlane.f32.xlu1 %v34_v13 }
 0x125   :  { %v33_v14 = vpop.xlane.xlu1 %32 }
 0x126   :  { %v38_v15 = vmul.f32 0.032258064, %v33_v14 }
 0x128   :  { %101 = vrsqrt.f32 %v38_v15  ;;  %vm51_vm1 = vcmp.eq.f32.partialorder %v38_v15, inf  ;;  %v54_v20 = vand.u32 2147483648, %v38_v15  ;;  %vm53_vm2 = vcmp.eq.f32.partialorder %v38_v15, 0.0 }
 0x129   :  { %v36_v16 = vpop.xlane.xlu1 %35 }
 0x12a   :  { %v39_v17 = vmul.f32 0.032258064, %v36_v16 }
 0x12c   :  { %103 = vrsqrt.f32 %v39_v17  ;;  %vm58_vm3 = vcmp.eq.f32.partialorder %v39_v17, inf  ;;  %v61_v26 = vand.u32 2147483648, %v39_v17  ;;  %vm60_vm4 = vcmp.eq.f32.partialorder %v39_v17, 0.0 }
 0x132   :  { %v102_v18 = vpop.eup %101 }
 0x133   :  { %v50_v19 = vmul.f32 %v102_v18, %v38_v15 }
 0x135   :  { %v52_v21 = vsel %vm51_vm1, %v38_v15, %v50_v19 }
 0x136   :  { %v104_v22 = vpop.eup %103  ;;  %v55_v23 = vsel %vm53_vm2, %v54_v20, %v52_v21 }
 0x137   :  { %v63_v24 = vadd.f32 1e-06, %v55_v23  ;;  %v57_v25 = vmul.f32 %v104_v22, %v39_v17 }
 0x139   :  { %105 = vrcp.f32 %v63_v24  ;;  %v59_v27 = vsel %vm58_vm3, %v39_v17, %v57_v25 }
 0x13a   :  { %v62_v28 = vsel %vm60_vm4, %v61_v26, %v59_v27 }
 0x13b   :  { %v64_v29 = vadd.f32 1e-06, %v62_v28 }
 0x13d   :  { %107 = vrcp.f32 %v64_v29 }
 0x143   :  { %v106_v32 = vpop.eup %105 }
 0x144   :  { %v66_v34 = vmul.f32 %v106_v32, %v47_v31 }
 0x146   :  { %v76_v36 = vadd.f32 %v97_v33, %v66_v34 }
 0x147   :  { %v108_v37 = vpop.eup %107 }
 0x148   :  { %v68_v38 = vmul.f32 %v108_v37, %v48_v35  ;;  %78 = vst.msk [vmem:[#allocation2] sm:$0xff] %vm17_vm0, %v76_v36 }
 0x14a   :  { %v77_v39 = vadd.f32 %v97_v33, %v68_v38 }
 0x14c   :  { %79 = vst.msk [vmem:[#allocation2 + $0x8] sm:$0xff] %vm17_vm0, %v77_v39 }
 0x14d   :  { %120 = shalt.err (!%p117_p4)
}
 0x14e   :  { %s121_s22 = scalar_lea.hbm %s189_s3, 256 }
 0x14f   :  { %p122_p5 = scmp.ne.s32.totalorder %s189_s3, %s121_s22  ;;  %p125_p6 = scmp.lt.u32.totalorder %s121_s22, %s189_s3 }
 0x151   :  { %p127_p7 = pnand %p125_p6, %p122_p5 }
 0x153   :  { %130 = shalt.err (!%p127_p7)
}
 0x154   :  { %s134_s27 = smov 128   ;;  %s135_s28 = smov 8  }
 0x155   :  { %91 = dma.vmem_to_hbm [thread:$0]  %s86_s20, 256, %s189_s3, [#allocation3], %s134_s27, %s134_s27, %s135_s28  }
 0x156   :  { %131 = dma.done.wait [#allocation3], 256  }
 0x157   :  { %132 = vsyncadd [#allocation3], 4294967040 }
 0x158   :  { %95 = vsyncpa [#allocation3], 1 }

// kernel: closed_call.36
= control target key start
LH: loop header
LB: loop body
LE: loop exit
PB: predicated region body
PF: predicated region fallthrough
CT: control target
= control target key end

     0   :  { %v151_v0 = vmov 0.0   ;;  %vm152_vm0 = vmmov 0   ;;  %vm64_vm1 = vcmask 523264   ;;  %vm113_vm2 = vcmask 261120   ;;  %s208_s2 = inlined_call_operand.vmem [shape: bf16[64,32], index: 2, kind: input, shape index: {}]   ;;  %s209_s0 = inlined_call_operand.vmem [shape: bf16[16,64], index: 0, kind: input, shape index: {}]   ;;  %s210_s3 = inlined_call_operand.vmem [shape: f32[1,32], index: 3, kind: input, shape index: {}]   ;;  %s211_s1 = inlined_call_operand.vmem [shape: f32[16,32], index: 1, kind: input, shape index: {}]   ;;  %s212_s4 = inlined_call_operand.vmem [shape: f32[16,32], index: 4, kind: output, shape index: {}]  }
   0x1   :  { %132 = vmatprep.subr.bf16.mxu0 %v151_v0  ;;  %v146_v1 = vld [vmem:[%s208_s2] sm:$0xff]   ;;  %140 = vmatprep.mubr.msk.bf16.mxu0 %vm152_vm0, %v151_v0  ;;  %v147_v2 = vld [vmem:[%s208_s2 + $0x8] sm:$0xff]   ;;  %v148_v3 = vld [vmem:[%s208_s2 + $0x10] sm:$0xff]  }
   0x2   :  { %133 = vmatpush3.bf16.msra.mxu0 %v146_v1  ;;  %v149_v4 = vld [vmem:[%s208_s2 + $0x18] sm:$0xff]   ;;  %v150_v5 = vld [vmem:[%s209_s0] sm:$0xff]   ;;  %v110_v12 = vld [vmem:[%s211_s1 + $0x8] sm:$0xff] }
   0x3   :  { %134 = vmatprep.subr.bf16.mxu0 %v151_v0  ;;  %v120_v6 = vld [vmem:[%s210_s3] ss:$0 sm:$0xff] }
   0x4   :  { %v109_v8 = vld [vmem:[%s211_s1] sm:$0xff] }
   0x6   :  { %135 = vmatpush3.bf16.msra.mxu0 %v147_v2 }
   0x7   :  { %136 = vmatprep.subr.bf16.mxu0 %v151_v0 }
   0xa   :  { %137 = vmatpush3.bf16.msra.mxu0 %v148_v3 }
   0xb   :  { %138 = vmatprep.subr.bf16.mxu0 %v151_v0 }
   0xe   :  { %139 = vmatpush3.bf16.msra.mxu0 %v149_v4 }
  0x11   :  { %141 = vmatmul.mubr.msk.bf16.vlgmr.msra.gmra.mrb[0].mxu0 %vm64_vm1, %v150_v5 }
  0xe4   :  { %v102_v7 = vpop.f32.mrb[0].mxu0 }
  0xe5   :  { %v103_v9 = vadd.f32 %v120_v6, %v102_v7  ;;  %v142_v10 = vpop.f32.mrb[1].mxu0 }
  0xe6   :  { %v105_v11 = vpop.f32.mrb[2].mxu0 }
  0xe7   :  { %v111_v13 = vadd.f32 %v109_v8, %v103_v9  ;;  %v106_v14 = vadd.f32 %v120_v6, %v105_v11  ;;  %v143_v15 = vpop.f32.mrb[3].mxu0 }
  0xe9   :  { %114 = vst.msk [vmem:[%s212_s4] sm:$0xff] %vm113_vm2, %v111_v13  ;;  %v112_v16 = vadd.f32 %v110_v12, %v106_v14 }
  0xeb   :  { %115 = vst.msk [vmem:[%s212_s4 + $0x8] sm:$0xff] %vm113_vm2, %v112_v16 }

</bundles_post_ra>
